<compile_context>
chip_gen: v7x
topology: tpu7x:2x2x1
jax: 0.10.0
libtpu: 0.0.40
codegen_flags: <defaults>
</compile_context>

<pallas_src>
import functools
import math

import jax
import jax.numpy as jnp
from jax.experimental import pallas as pl
from jax.experimental.pallas import tpu as pltpu  # noqa: F401  (kept for parity)

MLP_MATMUL_DTYPE = jnp.bfloat16   # MXU operands for the d_ff matmuls only
LN_EPS = 1e-6                     # matches nn.LayerNorm(embed_dim, eps=1e-06)
MLP_CHUNK = 512                   # (M, 512) f32 partial = 16 vregs, stays resident


def _transformer_block_kernel(
    x_ref, ln1w_ref, ln1b_ref,
    wqkv_ref, bqkv_ref, wo_ref, bo_ref,
    ln2w_ref, ln2b_ref, w1_ref, b1_ref, w2_ref, b2_ref,
    out_ref, *, batch, seq, num_heads, head_dim):
  f32 = jnp.float32
  x = x_ref[...].astype(f32)                        # (M, E), M = batch * seq
  embed_dim = num_heads * head_dim

  def layer_norm(v, w_row, b_row):
    mu = jnp.mean(v, axis=-1, keepdims=True)
    var = jnp.mean(jnp.square(v - mu), axis=-1, keepdims=True)
    return (v - mu) * jax.lax.rsqrt(var + LN_EPS) * w_row + b_row

  # ---------------- attention branch (pre-norm) ----------------
  xn = layer_norm(x, ln1w_ref[...].astype(f32), ln1b_ref[...].astype(f32))

  # Fused QKV projection; 1/sqrt(Dh) already folded into the Q columns/bias.
  qkv = jnp.dot(xn, wqkv_ref[...].astype(f32),
                preferred_element_type=f32) + bqkv_ref[...].astype(f32)
  q = qkv[:, 0:embed_dim]
  k = qkv[:, embed_dim:2 * embed_dim]
  v = qkv[:, 2 * embed_dim:3 * embed_dim]

  # Per-(batch, head) attention: static unroll (tiny B, H), f32 throughout,
  # exact softmax normalization.  attn_dropout is identity (eval mode).
  ctx_rows = []
  for b in range(batch):
    r0 = b * seq
    q_b = q[r0:r0 + seq]                            # (S, E) sublane slice
    k_b = k[r0:r0 + seq]
    v_b = v[r0:r0 + seq]
    heads = []
    for h in range(num_heads):
      c0 = h * head_dim
      q_h = q_b[:, c0:c0 + head_dim]                # (S, Dh)
      k_h = k_b[:, c0:c0 + head_dim]
      v_h = v_b[:, c0:c0 + head_dim]
      scores = jax.lax.dot_general(                 # q_h @ k_h^T, scale pre-folded
          q_h, k_h, (((1,), (1,)), ((), ())),
          preferred_element_type=f32)               # (S, S)
      scores = scores - jnp.max(scores, axis=-1, keepdims=True)
      p = jnp.exp(scores)
      p = p / jnp.sum(p, axis=-1, keepdims=True)
      heads.append(jnp.dot(p, v_h, preferred_element_type=f32))   # (S, Dh)
    ctx_rows.append(jnp.concatenate(heads, axis=-1))               # (S, E)
  ctx = jnp.concatenate(ctx_rows, axis=0)                          # (M, E)

  # Single output projection (one K=E matmul instead of H*B K=Dh folds).
  attn = jnp.dot(ctx, wo_ref[...].astype(f32),
                 preferred_element_type=f32) + bo_ref[...].astype(f32)
  # proj_dropout: identity (eval mode)
  x = x + attn                                      # residual 1

  # ---------------- MLP branch (pre-norm), tiled over d_ff ----------------
  xn2 = layer_norm(x, ln2w_ref[...].astype(f32), ln2b_ref[...].astype(f32))
  xn2_mm = xn2.astype(MLP_MATMUL_DTYPE)
  d_ff = w1_ref.shape[1]
  n_rows = x.shape[0]
  y = jnp.zeros((n_rows, embed_dim), f32)
  for c0 in range(0, d_ff, MLP_CHUNK):
    cw = min(MLP_CHUNK, d_ff - c0)
    w1_c = w1_ref[:, c0:c0 + cw].astype(MLP_MATMUL_DTYPE)
    b1_c = b1_ref[:, c0:c0 + cw].astype(f32)
    mid_c = jnp.maximum(
        jnp.dot(xn2_mm, w1_c, preferred_element_type=f32) + b1_c, 0.0)
    # mlp dropout: identity (eval mode)
    w2_c = w2_ref[c0:c0 + cw, :].astype(MLP_MATMUL_DTYPE)
    y = y + jnp.dot(mid_c.astype(MLP_MATMUL_DTYPE), w2_c,
                    preferred_element_type=f32)
  y = y + b2_ref[...].astype(f32)
  out_ref[...] = (x + y).astype(out_ref.dtype)      # residual 2


def transformer_block_forward(x, params, num_heads):
  """x: (B, S, E).  All weight matrices stored (in_features, out_features)."""
  B, S, E = x.shape
  assert E % num_heads == 0
  Dh = E // num_heads
  M = B * S
  x2d = x.reshape(M, E)                             # fuse batch into matmul M axis
  scale = 1.0 / math.sqrt(Dh)

  def row(a):
    return a.reshape(1, -1)

  # Host-side packing: fused QKV weight/bias with the softmax scale folded
  # into the Q columns.
  wqkv = jnp.concatenate(
      [params["wq"] * scale, params["wk"], params["wv"]], axis=1)      # (E, 3E)
  bqkv = jnp.concatenate(
      [params["bq"] * scale, params["bk"], params["bv"]]).reshape(1, -1)

  kernel = functools.partial(
      _transformer_block_kernel,
      batch=B, seq=S, num_heads=num_heads, head_dim=Dh)

  out2d = pl.pallas_call(
      kernel,
      out_shape=jax.ShapeDtypeStruct((M, E), x.dtype),
  )(x2d,
    row(params["ln1_w"]), row(params["ln1_b"]),
    wqkv, bqkv,
    params["wo"], row(params["bo"]),
    row(params["ln2_w"]), row(params["ln2_b"]),
    params["w1"], row(params["b1"]),
    params["w2"], row(params["b2"]))

  # vis=False in the PyTorch module -> attention weights are None.
  return out2d.reshape(B, S, E), None


def _reference(x, p, num_heads):
  """Pure-JAX f32 reference matching the PyTorch forward (eval mode)."""
  B, S, E = x.shape
  Dh = E // num_heads
  hp = jax.lax.Precision.HIGHEST

  def ln(v, w, b):
    mu = jnp.mean(v, axis=-1, keepdims=True)
    var = jnp.mean((v - mu) ** 2, axis=-1, keepdims=True)
    return (v - mu) / jnp.sqrt(var + LN_EPS) * w + b

  h = x
  xn = ln(x, p["ln1_w"], p["ln1_b"])
  q = jnp.einsum("bse,ef->bsf", xn, p["wq"], precision=hp) + p["bq"]
  k = jnp.einsum("bse,ef->bsf", xn, p["wk"], precision=hp) + p["bk"]
  v = jnp.einsum("bse,ef->bsf", xn, p["wv"], precision=hp) + p["bv"]
  qh = q.reshape(B, S, num_heads, Dh).transpose(0, 2, 1, 3)
  kh = k.reshape(B, S, num_heads, Dh).transpose(0, 2, 1, 3)
  vh = v.reshape(B, S, num_heads, Dh).transpose(0, 2, 1, 3)
  scores = jnp.einsum("bhqd,bhkd->bhqk", qh, kh, precision=hp) / math.sqrt(Dh)
  probs = jax.nn.softmax(scores, axis=-1)
  ctx = jnp.einsum("bhqk,bhkd->bhqd", probs, vh, precision=hp)
  ctx = ctx.transpose(0, 2, 1, 3).reshape(B, S, E)
  attn = jnp.einsum("bse,ef->bsf", ctx, p["wo"], precision=hp) + p["bo"]
  x1 = attn + h
  xn2 = ln(x1, p["ln2_w"], p["ln2_b"])
  mid = jax.nn.relu(jnp.einsum("bse,ef->bsf", xn2, p["w1"], precision=hp) + p["b1"])
  y = jnp.einsum("bsf,fe->bse", mid, p["w2"], precision=hp) + p["b2"]
  return x1 + y


if __name__ == "__main__":
  # Shapes consistent with the module: embed_dim=32, num_heads=4,
  # qdt_size=(16,16), patch_size=4 -> seq (n_patches) = 16; d_ff=2048 hardcoded.
  B, S, E, H = 2, 16, 32, 4
  D_FF = 2048

  key = jax.random.PRNGKey(0)
  ks = jax.random.split(key, 20)

  def rnd(k, shape, scale=0.05):
    return scale * jax.random.normal(k, shape, dtype=jnp.float32)

  x = jax.random.normal(ks[0], (B, S, E), dtype=jnp.float32)
  params = dict(
      ln1_w=1.0 + rnd(ks[1], (E,)), ln1_b=rnd(ks[2], (E,)),
      wq=rnd(ks[3], (E, E)), bq=rnd(ks[4], (E,)),
      wk=rnd(ks[5], (E, E)), bk=rnd(ks[6], (E,)),
      wv=rnd(ks[7], (E, E)), bv=rnd(ks[8], (E,)),
      wo=rnd(ks[9], (E, E)), bo=rnd(ks[10], (E,)),
      ln2_w=1.0 + rnd(ks[11], (E,)), ln2_b=rnd(ks[12], (E,)),
      w1=rnd(ks[13], (E, D_FF)), b1=rnd(ks[14], (D_FF,)),
      w2=rnd(ks[15], (D_FF, E)), b2=rnd(ks[16], (E,)),
  )

  out, weights = transformer_block_forward(x, params, num_heads=H)
  out = jax.block_until_ready(out)

  ref = _reference(x, params, H)
  assert out.shape == (B, S, E)
  assert weights is None
  # Attention path is f32 with exact softmax; only the d_ff MLP matmuls use
  # bf16 MXU operands (f32 accumulation), hence the modest tolerance.
  assert jnp.allclose(out, ref, atol=2e-2, rtol=2e-2), float(jnp.max(jnp.abs(out - ref)))
  print("KERNEL_OK")
</pallas_src>

<mosaic_0001>
module attributes {stable_mosaic.version = 11 : i64} {
  func.func @_transformer_block_kernel(%arg0: memref<32x32xf32, #tpu.memory_space<vmem>>, %arg1: memref<1x32xf32, #tpu.memory_space<vmem>>, %arg2: memref<1x32xf32, #tpu.memory_space<vmem>>, %arg3: memref<32x96xf32, #tpu.memory_space<vmem>>, %arg4: memref<1x96xf32, #tpu.memory_space<vmem>>, %arg5: memref<32x32xf32, #tpu.memory_space<vmem>>, %arg6: memref<1x32xf32, #tpu.memory_space<vmem>>, %arg7: memref<1x32xf32, #tpu.memory_space<vmem>>, %arg8: memref<1x32xf32, #tpu.memory_space<vmem>>, %arg9: memref<32x2048xf32, #tpu.memory_space<vmem>>, %arg10: memref<1x2048xf32, #tpu.memory_space<vmem>>, %arg11: memref<2048x32xf32, #tpu.memory_space<vmem>>, %arg12: memref<1x32xf32, #tpu.memory_space<vmem>>, %arg13: memref<32x32xf32, #tpu.memory_space<vmem>>) attributes {dimension_semantics = [], scalar_prefetch = 0 : i64, scratch_operands = 0 : i64, tpu.core_type = #tpu.core_type<tc>} {
    %c0 = arith.constant 0 : index
    %c0_0 = arith.constant 0 : index
    %0 = vector.load %arg0[%c0, %c0_0] : memref<32x32xf32, #tpu.memory_space<vmem>>, vector<32x32xf32>
    %c0_1 = arith.constant 0 : index
    %c0_2 = arith.constant 0 : index
    %1 = vector.load %arg1[%c0_1, %c0_2] : memref<1x32xf32, #tpu.memory_space<vmem>>, vector<1x32xf32>
    %c0_3 = arith.constant 0 : index
    %c0_4 = arith.constant 0 : index
    %2 = vector.load %arg2[%c0_3, %c0_4] : memref<1x32xf32, #tpu.memory_space<vmem>>, vector<1x32xf32>
    %cst = arith.constant dense<0.000000e+00> : vector<32xf32>
    %3 = vector.multi_reduction <add>, %0, %cst [1] : vector<32x32xf32> to vector<32xf32>
    %4 = vector.shape_cast %3 : vector<32xf32> to vector<32x1xf32>
    %cst_5 = arith.constant 3.200000e+01 : f32
    %5 = vector.broadcast %cst_5 : f32 to vector<32x1xf32>
    %6 = arith.divf %4, %5 : vector<32x1xf32>
    %7 = vector.broadcast %6 : vector<32x1xf32> to vector<32x32xf32>
    %8 = arith.subf %0, %7 : vector<32x32xf32>
    %9 = arith.mulf %8, %8 : vector<32x32xf32>
    %cst_6 = arith.constant dense<0.000000e+00> : vector<32xf32>
    %10 = vector.multi_reduction <add>, %9, %cst_6 [1] : vector<32x32xf32> to vector<32xf32>
    %11 = vector.shape_cast %10 : vector<32xf32> to vector<32x1xf32>
    %cst_7 = arith.constant 3.200000e+01 : f32
    %12 = vector.broadcast %cst_7 : f32 to vector<32x1xf32>
    %13 = arith.divf %11, %12 : vector<32x1xf32>
    %14 = vector.broadcast %6 : vector<32x1xf32> to vector<32x32xf32>
    %15 = arith.subf %0, %14 : vector<32x32xf32>
    %cst_8 = arith.constant 9.99999997E-7 : f32
    %16 = vector.broadcast %cst_8 : f32 to vector<32x1xf32>
    %17 = arith.addf %13, %16 : vector<32x1xf32>
    %18 = math.rsqrt %17 : vector<32x1xf32>
    %19 = vector.broadcast %18 : vector<32x1xf32> to vector<32x32xf32>
    %20 = arith.mulf %15, %19 : vector<32x32xf32>
    %21 = vector.broadcast %1 : vector<1x32xf32> to vector<32x32xf32>
    %22 = arith.mulf %20, %21 : vector<32x32xf32>
    %23 = vector.broadcast %2 : vector<1x32xf32> to vector<32x32xf32>
    %24 = arith.addf %22, %23 : vector<32x32xf32>
    %c0_9 = arith.constant 0 : index
    %c0_10 = arith.constant 0 : index
    %25 = vector.load %arg3[%c0_9, %c0_10] : memref<32x96xf32, #tpu.memory_space<vmem>>, vector<32x96xf32>
    %cst_11 = arith.constant dense<0.000000e+00> : vector<32x96xf32>
    %26 = tpu.matmul %24, %25, %cst_11 {dimension_numbers = #tpu.dot_dimension_numbers<[1], [0], [0], [1], [0, 0, 1, 1], [], []>} : vector<32x32xf32>, vector<32x96xf32>, vector<32x96xf32> -> vector<32x96xf32>
    %c0_12 = arith.constant 0 : index
    %c0_13 = arith.constant 0 : index
    %27 = vector.load %arg4[%c0_12, %c0_13] : memref<1x96xf32, #tpu.memory_space<vmem>>, vector<1x96xf32>
    %28 = vector.broadcast %27 : vector<1x96xf32> to vector<32x96xf32>
    %29 = arith.addf %26, %28 : vector<32x96xf32>
    %30 = vector.extract_strided_slice %29 {offsets = [0, 0], sizes = [32, 32], strides = [1, 1]} : vector<32x96xf32> to vector<32x32xf32>
    %31 = vector.extract_strided_slice %29 {offsets = [0, 32], sizes = [32, 32], strides = [1, 1]} : vector<32x96xf32> to vector<32x32xf32>
    %32 = vector.extract_strided_slice %29 {offsets = [0, 64], sizes = [32, 32], strides = [1, 1]} : vector<32x96xf32> to vector<32x32xf32>
    %33 = vector.extract_strided_slice %30 {offsets = [0, 0], sizes = [16, 32], strides = [1, 1]} : vector<32x32xf32> to vector<16x32xf32>
    %34 = vector.extract_strided_slice %31 {offsets = [0, 0], sizes = [16, 32], strides = [1, 1]} : vector<32x32xf32> to vector<16x32xf32>
    %35 = vector.extract_strided_slice %32 {offsets = [0, 0], sizes = [16, 32], strides = [1, 1]} : vector<32x32xf32> to vector<16x32xf32>
    %36 = vector.extract_strided_slice %33 {offsets = [0, 0], sizes = [16, 8], strides = [1, 1]} : vector<16x32xf32> to vector<16x8xf32>
    %37 = vector.extract_strided_slice %34 {offsets = [0, 0], sizes = [16, 8], strides = [1, 1]} : vector<16x32xf32> to vector<16x8xf32>
    %38 = vector.extract_strided_slice %35 {offsets = [0, 0], sizes = [16, 8], strides = [1, 1]} : vector<16x32xf32> to vector<16x8xf32>
    %cst_14 = arith.constant dense<0.000000e+00> : vector<16x16xf32>
    %39 = tpu.matmul %36, %37, %cst_14 {dimension_numbers = #tpu.dot_dimension_numbers<[1], [1], [0], [0], [0, 0, 1, 0], [], []>} : vector<16x8xf32>, vector<16x8xf32>, vector<16x16xf32> -> vector<16x16xf32>
    %cst_15 = arith.constant dense<0xFF800000> : vector<16xf32>
    %40 = vector.multi_reduction <maximumf>, %39, %cst_15 [1] : vector<16x16xf32> to vector<16xf32>
    %41 = vector.shape_cast %40 : vector<16xf32> to vector<16x1xf32>
    %42 = vector.broadcast %41 : vector<16x1xf32> to vector<16x16xf32>
    %43 = arith.subf %39, %42 : vector<16x16xf32>
    %44 = math.exp %43 : vector<16x16xf32>
    %cst_16 = arith.constant dense<0.000000e+00> : vector<16xf32>
    %45 = vector.multi_reduction <add>, %44, %cst_16 [1] : vector<16x16xf32> to vector<16xf32>
    %46 = vector.shape_cast %45 : vector<16xf32> to vector<16x1xf32>
    %47 = vector.broadcast %46 : vector<16x1xf32> to vector<16x16xf32>
    %48 = arith.divf %44, %47 : vector<16x16xf32>
    %cst_17 = arith.constant dense<0.000000e+00> : vector<16x8xf32>
    %49 = tpu.matmul %48, %38, %cst_17 {dimension_numbers = #tpu.dot_dimension_numbers<[1], [0], [0], [1], [0, 0, 1, 1], [], []>} : vector<16x16xf32>, vector<16x8xf32>, vector<16x8xf32> -> vector<16x8xf32>
    %50 = vector.extract_strided_slice %33 {offsets = [0, 8], sizes = [16, 8], strides = [1, 1]} : vector<16x32xf32> to vector<16x8xf32>
    %51 = vector.extract_strided_slice %34 {offsets = [0, 8], sizes = [16, 8], strides = [1, 1]} : vector<16x32xf32> to vector<16x8xf32>
    %52 = vector.extract_strided_slice %35 {offsets = [0, 8], sizes = [16, 8], strides = [1, 1]} : vector<16x32xf32> to vector<16x8xf32>
    %cst_18 = arith.constant dense<0.000000e+00> : vector<16x16xf32>
    %53 = tpu.matmul %50, %51, %cst_18 {dimension_numbers = #tpu.dot_dimension_numbers<[1], [1], [0], [0], [0, 0, 1, 0], [], []>} : vector<16x8xf32>, vector<16x8xf32>, vector<16x16xf32> -> vector<16x16xf32>
    %cst_19 = arith.constant dense<0xFF800000> : vector<16xf32>
    %54 = vector.multi_reduction <maximumf>, %53, %cst_19 [1] : vector<16x16xf32> to vector<16xf32>
    %55 = vector.shape_cast %54 : vector<16xf32> to vector<16x1xf32>
    %56 = vector.broadcast %55 : vector<16x1xf32> to vector<16x16xf32>
    %57 = arith.subf %53, %56 : vector<16x16xf32>
    %58 = math.exp %57 : vector<16x16xf32>
    %cst_20 = arith.constant dense<0.000000e+00> : vector<16xf32>
    %59 = vector.multi_reduction <add>, %58, %cst_20 [1] : vector<16x16xf32> to vector<16xf32>
    %60 = vector.shape_cast %59 : vector<16xf32> to vector<16x1xf32>
    %61 = vector.broadcast %60 : vector<16x1xf32> to vector<16x16xf32>
    %62 = arith.divf %58, %61 : vector<16x16xf32>
    %cst_21 = arith.constant dense<0.000000e+00> : vector<16x8xf32>
    %63 = tpu.matmul %62, %52, %cst_21 {dimension_numbers = #tpu.dot_dimension_numbers<[1], [0], [0], [1], [0, 0, 1, 1], [], []>} : vector<16x16xf32>, vector<16x8xf32>, vector<16x8xf32> -> vector<16x8xf32>
    %64 = vector.extract_strided_slice %33 {offsets = [0, 16], sizes = [16, 8], strides = [1, 1]} : vector<16x32xf32> to vector<16x8xf32>
    %65 = vector.extract_strided_slice %34 {offsets = [0, 16], sizes = [16, 8], strides = [1, 1]} : vector<16x32xf32> to vector<16x8xf32>
    %66 = vector.extract_strided_slice %35 {offsets = [0, 16], sizes = [16, 8], strides = [1, 1]} : vector<16x32xf32> to vector<16x8xf32>
    %cst_22 = arith.constant dense<0.000000e+00> : vector<16x16xf32>
    %67 = tpu.matmul %64, %65, %cst_22 {dimension_numbers = #tpu.dot_dimension_numbers<[1], [1], [0], [0], [0, 0, 1, 0], [], []>} : vector<16x8xf32>, vector<16x8xf32>, vector<16x16xf32> -> vector<16x16xf32>
    %cst_23 = arith.constant dense<0xFF800000> : vector<16xf32>
    %68 = vector.multi_reduction <maximumf>, %67, %cst_23 [1] : vector<16x16xf32> to vector<16xf32>
    %69 = vector.shape_cast %68 : vector<16xf32> to vector<16x1xf32>
    %70 = vector.broadcast %69 : vector<16x1xf32> to vector<16x16xf32>
    %71 = arith.subf %67, %70 : vector<16x16xf32>
    %72 = math.exp %71 : vector<16x16xf32>
    %cst_24 = arith.constant dense<0.000000e+00> : vector<16xf32>
    %73 = vector.multi_reduction <add>, %72, %cst_24 [1] : vector<16x16xf32> to vector<16xf32>
    %74 = vector.shape_cast %73 : vector<16xf32> to vector<16x1xf32>
    %75 = vector.broadcast %74 : vector<16x1xf32> to vector<16x16xf32>
    %76 = arith.divf %72, %75 : vector<16x16xf32>
    %cst_25 = arith.constant dense<0.000000e+00> : vector<16x8xf32>
    %77 = tpu.matmul %76, %66, %cst_25 {dimension_numbers = #tpu.dot_dimension_numbers<[1], [0], [0], [1], [0, 0, 1, 1], [], []>} : vector<16x16xf32>, vector<16x8xf32>, vector<16x8xf32> -> vector<16x8xf32>
    %78 = vector.extract_strided_slice %33 {offsets = [0, 24], sizes = [16, 8], strides = [1, 1]} : vector<16x32xf32> to vector<16x8xf32>
    %79 = vector.extract_strided_slice %34 {offsets = [0, 24], sizes = [16, 8], strides = [1, 1]} : vector<16x32xf32> to vector<16x8xf32>
    %80 = vector.extract_strided_slice %35 {offsets = [0, 24], sizes = [16, 8], strides = [1, 1]} : vector<16x32xf32> to vector<16x8xf32>
    %cst_26 = arith.constant dense<0.000000e+00> : vector<16x16xf32>
    %81 = tpu.matmul %78, %79, %cst_26 {dimension_numbers = #tpu.dot_dimension_numbers<[1], [1], [0], [0], [0, 0, 1, 0], [], []>} : vector<16x8xf32>, vector<16x8xf32>, vector<16x16xf32> -> vector<16x16xf32>
    %cst_27 = arith.constant dense<0xFF800000> : vector<16xf32>
    %82 = vector.multi_reduction <maximumf>, %81, %cst_27 [1] : vector<16x16xf32> to vector<16xf32>
    %83 = vector.shape_cast %82 : vector<16xf32> to vector<16x1xf32>
    %84 = vector.broadcast %83 : vector<16x1xf32> to vector<16x16xf32>
    %85 = arith.subf %81, %84 : vector<16x16xf32>
    %86 = math.exp %85 : vector<16x16xf32>
    %cst_28 = arith.constant dense<0.000000e+00> : vector<16xf32>
    %87 = vector.multi_reduction <add>, %86, %cst_28 [1] : vector<16x16xf32> to vector<16xf32>
    %88 = vector.shape_cast %87 : vector<16xf32> to vector<16x1xf32>
    %89 = vector.broadcast %88 : vector<16x1xf32> to vector<16x16xf32>
    %90 = arith.divf %86, %89 : vector<16x16xf32>
    %cst_29 = arith.constant dense<0.000000e+00> : vector<16x8xf32>
    %91 = tpu.matmul %90, %80, %cst_29 {dimension_numbers = #tpu.dot_dimension_numbers<[1], [0], [0], [1], [0, 0, 1, 1], [], []>} : vector<16x16xf32>, vector<16x8xf32>, vector<16x8xf32> -> vector<16x8xf32>
    %92 = tpu.concatenate %49, %63, %77, %91 in 1 : vector<16x8xf32>, vector<16x8xf32>, vector<16x8xf32>, vector<16x8xf32> -> vector<16x32xf32>
    %93 = vector.extract_strided_slice %30 {offsets = [16, 0], sizes = [16, 32], strides = [1, 1]} : vector<32x32xf32> to vector<16x32xf32>
    %94 = vector.extract_strided_slice %31 {offsets = [16, 0], sizes = [16, 32], strides = [1, 1]} : vector<32x32xf32> to vector<16x32xf32>
    %95 = vector.extract_strided_slice %32 {offsets = [16, 0], sizes = [16, 32], strides = [1, 1]} : vector<32x32xf32> to vector<16x32xf32>
    %96 = vector.extract_strided_slice %93 {offsets = [0, 0], sizes = [16, 8], strides = [1, 1]} : vector<16x32xf32> to vector<16x8xf32>
    %97 = vector.extract_strided_slice %94 {offsets = [0, 0], sizes = [16, 8], strides = [1, 1]} : vector<16x32xf32> to vector<16x8xf32>
    %98 = vector.extract_strided_slice %95 {offsets = [0, 0], sizes = [16, 8], strides = [1, 1]} : vector<16x32xf32> to vector<16x8xf32>
    %cst_30 = arith.constant dense<0.000000e+00> : vector<16x16xf32>
    %99 = tpu.matmul %96, %97, %cst_30 {dimension_numbers = #tpu.dot_dimension_numbers<[1], [1], [0], [0], [0, 0, 1, 0], [], []>} : vector<16x8xf32>, vector<16x8xf32>, vector<16x16xf32> -> vector<16x16xf32>
    %cst_31 = arith.constant dense<0xFF800000> : vector<16xf32>
    %100 = vector.multi_reduction <maximumf>, %99, %cst_31 [1] : vector<16x16xf32> to vector<16xf32>
    %101 = vector.shape_cast %100 : vector<16xf32> to vector<16x1xf32>
    %102 = vector.broadcast %101 : vector<16x1xf32> to vector<16x16xf32>
    %103 = arith.subf %99, %102 : vector<16x16xf32>
    %104 = math.exp %103 : vector<16x16xf32>
    %cst_32 = arith.constant dense<0.000000e+00> : vector<16xf32>
    %105 = vector.multi_reduction <add>, %104, %cst_32 [1] : vector<16x16xf32> to vector<16xf32>
    %106 = vector.shape_cast %105 : vector<16xf32> to vector<16x1xf32>
    %107 = vector.broadcast %106 : vector<16x1xf32> to vector<16x16xf32>
    %108 = arith.divf %104, %107 : vector<16x16xf32>
    %cst_33 = arith.constant dense<0.000000e+00> : vector<16x8xf32>
    %109 = tpu.matmul %108, %98, %cst_33 {dimension_numbers = #tpu.dot_dimension_numbers<[1], [0], [0], [1], [0, 0, 1, 1], [], []>} : vector<16x16xf32>, vector<16x8xf32>, vector<16x8xf32> -> vector<16x8xf32>
    %110 = vector.extract_strided_slice %93 {offsets = [0, 8], sizes = [16, 8], strides = [1, 1]} : vector<16x32xf32> to vector<16x8xf32>
    %111 = vector.extract_strided_slice %94 {offsets = [0, 8], sizes = [16, 8], strides = [1, 1]} : vector<16x32xf32> to vector<16x8xf32>
    %112 = vector.extract_strided_slice %95 {offsets = [0, 8], sizes = [16, 8], strides = [1, 1]} : vector<16x32xf32> to vector<16x8xf32>
    %cst_34 = arith.constant dense<0.000000e+00> : vector<16x16xf32>
    %113 = tpu.matmul %110, %111, %cst_34 {dimension_numbers = #tpu.dot_dimension_numbers<[1], [1], [0], [0], [0, 0, 1, 0], [], []>} : vector<16x8xf32>, vector<16x8xf32>, vector<16x16xf32> -> vector<16x16xf32>
    %cst_35 = arith.constant dense<0xFF800000> : vector<16xf32>
    %114 = vector.multi_reduction <maximumf>, %113, %cst_35 [1] : vector<16x16xf32> to vector<16xf32>
    %115 = vector.shape_cast %114 : vector<16xf32> to vector<16x1xf32>
    %116 = vector.broadcast %115 : vector<16x1xf32> to vector<16x16xf32>
    %117 = arith.subf %113, %116 : vector<16x16xf32>
    %118 = math.exp %117 : vector<16x16xf32>
    %cst_36 = arith.constant dense<0.000000e+00> : vector<16xf32>
    %119 = vector.multi_reduction <add>, %118, %cst_36 [1] : vector<16x16xf32> to vector<16xf32>
    %120 = vector.shape_cast %119 : vector<16xf32> to vector<16x1xf32>
    %121 = vector.broadcast %120 : vector<16x1xf32> to vector<16x16xf32>
    %122 = arith.divf %118, %121 : vector<16x16xf32>
    %cst_37 = arith.constant dense<0.000000e+00> : vector<16x8xf32>
    %123 = tpu.matmul %122, %112, %cst_37 {dimension_numbers = #tpu.dot_dimension_numbers<[1], [0], [0], [1], [0, 0, 1, 1], [], []>} : vector<16x16xf32>, vector<16x8xf32>, vector<16x8xf32> -> vector<16x8xf32>
    %124 = vector.extract_strided_slice %93 {offsets = [0, 16], sizes = [16, 8], strides = [1, 1]} : vector<16x32xf32> to vector<16x8xf32>
    %125 = vector.extract_strided_slice %94 {offsets = [0, 16], sizes = [16, 8], strides = [1, 1]} : vector<16x32xf32> to vector<16x8xf32>
    %126 = vector.extract_strided_slice %95 {offsets = [0, 16], sizes = [16, 8], strides = [1, 1]} : vector<16x32xf32> to vector<16x8xf32>
    %cst_38 = arith.constant dense<0.000000e+00> : vector<16x16xf32>
    %127 = tpu.matmul %124, %125, %cst_38 {dimension_numbers = #tpu.dot_dimension_numbers<[1], [1], [0], [0], [0, 0, 1, 0], [], []>} : vector<16x8xf32>, vector<16x8xf32>, vector<16x16xf32> -> vector<16x16xf32>
    %cst_39 = arith.constant dense<0xFF800000> : vector<16xf32>
    %128 = vector.multi_reduction <maximumf>, %127, %cst_39 [1] : vector<16x16xf32> to vector<16xf32>
    %129 = vector.shape_cast %128 : vector<16xf32> to vector<16x1xf32>
    %130 = vector.broadcast %129 : vector<16x1xf32> to vector<16x16xf32>
    %131 = arith.subf %127, %130 : vector<16x16xf32>
    %132 = math.exp %131 : vector<16x16xf32>
    %cst_40 = arith.constant dense<0.000000e+00> : vector<16xf32>
    %133 = vector.multi_reduction <add>, %132, %cst_40 [1] : vector<16x16xf32> to vector<16xf32>
    %134 = vector.shape_cast %133 : vector<16xf32> to vector<16x1xf32>
    %135 = vector.broadcast %134 : vector<16x1xf32> to vector<16x16xf32>
    %136 = arith.divf %132, %135 : vector<16x16xf32>
    %cst_41 = arith.constant dense<0.000000e+00> : vector<16x8xf32>
    %137 = tpu.matmul %136, %126, %cst_41 {dimension_numbers = #tpu.dot_dimension_numbers<[1], [0], [0], [1], [0, 0, 1, 1], [], []>} : vector<16x16xf32>, vector<16x8xf32>, vector<16x8xf32> -> vector<16x8xf32>
    %138 = vector.extract_strided_slice %93 {offsets = [0, 24], sizes = [16, 8], strides = [1, 1]} : vector<16x32xf32> to vector<16x8xf32>
    %139 = vector.extract_strided_slice %94 {offsets = [0, 24], sizes = [16, 8], strides = [1, 1]} : vector<16x32xf32> to vector<16x8xf32>
    %140 = vector.extract_strided_slice %95 {offsets = [0, 24], sizes = [16, 8], strides = [1, 1]} : vector<16x32xf32> to vector<16x8xf32>
    %cst_42 = arith.constant dense<0.000000e+00> : vector<16x16xf32>
    %141 = tpu.matmul %138, %139, %cst_42 {dimension_numbers = #tpu.dot_dimension_numbers<[1], [1], [0], [0], [0, 0, 1, 0], [], []>} : vector<16x8xf32>, vector<16x8xf32>, vector<16x16xf32> -> vector<16x16xf32>
    %cst_43 = arith.constant dense<0xFF800000> : vector<16xf32>
    %142 = vector.multi_reduction <maximumf>, %141, %cst_43 [1] : vector<16x16xf32> to vector<16xf32>
    %143 = vector.shape_cast %142 : vector<16xf32> to vector<16x1xf32>
    %144 = vector.broadcast %143 : vector<16x1xf32> to vector<16x16xf32>
    %145 = arith.subf %141, %144 : vector<16x16xf32>
    %146 = math.exp %145 : vector<16x16xf32>
    %cst_44 = arith.constant dense<0.000000e+00> : vector<16xf32>
    %147 = vector.multi_reduction <add>, %146, %cst_44 [1] : vector<16x16xf32> to vector<16xf32>
    %148 = vector.shape_cast %147 : vector<16xf32> to vector<16x1xf32>
    %149 = vector.broadcast %148 : vector<16x1xf32> to vector<16x16xf32>
    %150 = arith.divf %146, %149 : vector<16x16xf32>
    %cst_45 = arith.constant dense<0.000000e+00> : vector<16x8xf32>
    %151 = tpu.matmul %150, %140, %cst_45 {dimension_numbers = #tpu.dot_dimension_numbers<[1], [0], [0], [1], [0, 0, 1, 1], [], []>} : vector<16x16xf32>, vector<16x8xf32>, vector<16x8xf32> -> vector<16x8xf32>
    %152 = tpu.concatenate %109, %123, %137, %151 in 1 : vector<16x8xf32>, vector<16x8xf32>, vector<16x8xf32>, vector<16x8xf32> -> vector<16x32xf32>
    %153 = tpu.concatenate %92, %152 in 0 : vector<16x32xf32>, vector<16x32xf32> -> vector<32x32xf32>
    %c0_46 = arith.constant 0 : index
    %c0_47 = arith.constant 0 : index
    %154 = vector.load %arg5[%c0_46, %c0_47] : memref<32x32xf32, #tpu.memory_space<vmem>>, vector<32x32xf32>
    %cst_48 = arith.constant dense<0.000000e+00> : vector<32x32xf32>
    %155 = tpu.matmul %153, %154, %cst_48 {dimension_numbers = #tpu.dot_dimension_numbers<[1], [0], [0], [1], [0, 0, 1, 1], [], []>} : vector<32x32xf32>, vector<32x32xf32>, vector<32x32xf32> -> vector<32x32xf32>
    %c0_49 = arith.constant 0 : index
    %c0_50 = arith.constant 0 : index
    %156 = vector.load %arg6[%c0_49, %c0_50] : memref<1x32xf32, #tpu.memory_space<vmem>>, vector<1x32xf32>
    %157 = vector.broadcast %156 : vector<1x32xf32> to vector<32x32xf32>
    %158 = arith.addf %155, %157 : vector<32x32xf32>
    %159 = arith.addf %0, %158 : vector<32x32xf32>
    %c0_51 = arith.constant 0 : index
    %c0_52 = arith.constant 0 : index
    %160 = vector.load %arg7[%c0_51, %c0_52] : memref<1x32xf32, #tpu.memory_space<vmem>>, vector<1x32xf32>
    %c0_53 = arith.constant 0 : index
    %c0_54 = arith.constant 0 : index
    %161 = vector.load %arg8[%c0_53, %c0_54] : memref<1x32xf32, #tpu.memory_space<vmem>>, vector<1x32xf32>
    %cst_55 = arith.constant dense<0.000000e+00> : vector<32xf32>
    %162 = vector.multi_reduction <add>, %159, %cst_55 [1] : vector<32x32xf32> to vector<32xf32>
    %163 = vector.shape_cast %162 : vector<32xf32> to vector<32x1xf32>
    %cst_56 = arith.constant 3.200000e+01 : f32
    %164 = vector.broadcast %cst_56 : f32 to vector<32x1xf32>
    %165 = arith.divf %163, %164 : vector<32x1xf32>
    %166 = vector.broadcast %165 : vector<32x1xf32> to vector<32x32xf32>
    %167 = arith.subf %159, %166 : vector<32x32xf32>
    %168 = arith.mulf %167, %167 : vector<32x32xf32>
    %cst_57 = arith.constant dense<0.000000e+00> : vector<32xf32>
    %169 = vector.multi_reduction <add>, %168, %cst_57 [1] : vector<32x32xf32> to vector<32xf32>
    %170 = vector.shape_cast %169 : vector<32xf32> to vector<32x1xf32>
    %cst_58 = arith.constant 3.200000e+01 : f32
    %171 = vector.broadcast %cst_58 : f32 to vector<32x1xf32>
    %172 = arith.divf %170, %171 : vector<32x1xf32>
    %173 = vector.broadcast %165 : vector<32x1xf32> to vector<32x32xf32>
    %174 = arith.subf %159, %173 : vector<32x32xf32>
    %cst_59 = arith.constant 9.99999997E-7 : f32
    %175 = vector.broadcast %cst_59 : f32 to vector<32x1xf32>
    %176 = arith.addf %172, %175 : vector<32x1xf32>
    %177 = math.rsqrt %176 : vector<32x1xf32>
    %178 = vector.broadcast %177 : vector<32x1xf32> to vector<32x32xf32>
    %179 = arith.mulf %174, %178 : vector<32x32xf32>
    %180 = vector.broadcast %160 : vector<1x32xf32> to vector<32x32xf32>
    %181 = arith.mulf %179, %180 : vector<32x32xf32>
    %182 = vector.broadcast %161 : vector<1x32xf32> to vector<32x32xf32>
    %183 = arith.addf %181, %182 : vector<32x32xf32>
    %184 = arith.truncf %183 : vector<32x32xf32> to vector<32x32xbf16>
    %cst_60 = arith.constant 0.000000e+00 : f32
    %185 = vector.broadcast %cst_60 : f32 to vector<32x32xf32>
    %c0_61 = arith.constant 0 : index
    %c0_62 = arith.constant 0 : index
    %186 = vector.load %arg9[%c0_61, %c0_62] : memref<32x2048xf32, #tpu.memory_space<vmem>>, vector<32x512xf32>
    %187 = arith.truncf %186 : vector<32x512xf32> to vector<32x512xbf16>
    %c0_63 = arith.constant 0 : index
    %c0_64 = arith.constant 0 : index
    %188 = vector.load %arg10[%c0_63, %c0_64] : memref<1x2048xf32, #tpu.memory_space<vmem>>, vector<1x512xf32>
    %cst_65 = arith.constant dense<0.000000e+00> : vector<32x512xf32>
    %189 = tpu.matmul %184, %187, %cst_65 {dimension_numbers = #tpu.dot_dimension_numbers<[1], [0], [0], [1], [0, 0, 1, 1], [], []>} : vector<32x32xbf16>, vector<32x512xbf16>, vector<32x512xf32> -> vector<32x512xf32>
    %190 = vector.broadcast %188 : vector<1x512xf32> to vector<32x512xf32>
    %191 = arith.addf %189, %190 : vector<32x512xf32>
    %cst_66 = arith.constant 0.000000e+00 : f32
    %192 = vector.broadcast %cst_66 : f32 to vector<32x512xf32>
    %193 = arith.maximumf %191, %192 : vector<32x512xf32>
    %c0_67 = arith.constant 0 : index
    %c0_68 = arith.constant 0 : index
    %194 = vector.load %arg11[%c0_67, %c0_68] : memref<2048x32xf32, #tpu.memory_space<vmem>>, vector<512x32xf32>
    %195 = arith.truncf %194 : vector<512x32xf32> to vector<512x32xbf16>
    %196 = arith.truncf %193 : vector<32x512xf32> to vector<32x512xbf16>
    %cst_69 = arith.constant dense<0.000000e+00> : vector<32x32xf32>
    %197 = tpu.matmul %196, %195, %cst_69 {dimension_numbers = #tpu.dot_dimension_numbers<[1], [0], [0], [1], [0, 0, 1, 1], [], []>} : vector<32x512xbf16>, vector<512x32xbf16>, vector<32x32xf32> -> vector<32x32xf32>
    %198 = arith.addf %185, %197 : vector<32x32xf32>
    %c0_70 = arith.constant 0 : index
    %c512 = arith.constant 512 : index
    %199 = vector.load %arg9[%c0_70, %c512] : memref<32x2048xf32, #tpu.memory_space<vmem>>, vector<32x512xf32>
    %200 = arith.truncf %199 : vector<32x512xf32> to vector<32x512xbf16>
    %c0_71 = arith.constant 0 : index
    %c512_72 = arith.constant 512 : index
    %201 = vector.load %arg10[%c0_71, %c512_72] : memref<1x2048xf32, #tpu.memory_space<vmem>>, vector<1x512xf32>
    %cst_73 = arith.constant dense<0.000000e+00> : vector<32x512xf32>
    %202 = tpu.matmul %184, %200, %cst_73 {dimension_numbers = #tpu.dot_dimension_numbers<[1], [0], [0], [1], [0, 0, 1, 1], [], []>} : vector<32x32xbf16>, vector<32x512xbf16>, vector<32x512xf32> -> vector<32x512xf32>
    %203 = vector.broadcast %201 : vector<1x512xf32> to vector<32x512xf32>
    %204 = arith.addf %202, %203 : vector<32x512xf32>
    %cst_74 = arith.constant 0.000000e+00 : f32
    %205 = vector.broadcast %cst_74 : f32 to vector<32x512xf32>
    %206 = arith.maximumf %204, %205 : vector<32x512xf32>
    %c512_75 = arith.constant 512 : index
    %c0_76 = arith.constant 0 : index
    %207 = vector.load %arg11[%c512_75, %c0_76] : memref<2048x32xf32, #tpu.memory_space<vmem>>, vector<512x32xf32>
    %208 = arith.truncf %207 : vector<512x32xf32> to vector<512x32xbf16>
    %209 = arith.truncf %206 : vector<32x512xf32> to vector<32x512xbf16>
    %cst_77 = arith.constant dense<0.000000e+00> : vector<32x32xf32>
    %210 = tpu.matmul %209, %208, %cst_77 {dimension_numbers = #tpu.dot_dimension_numbers<[1], [0], [0], [1], [0, 0, 1, 1], [], []>} : vector<32x512xbf16>, vector<512x32xbf16>, vector<32x32xf32> -> vector<32x32xf32>
    %211 = arith.addf %198, %210 : vector<32x32xf32>
    %c0_78 = arith.constant 0 : index
    %c1024 = arith.constant 1024 : index
    %212 = vector.load %arg9[%c0_78, %c1024] : memref<32x2048xf32, #tpu.memory_space<vmem>>, vector<32x512xf32>
    %213 = arith.truncf %212 : vector<32x512xf32> to vector<32x512xbf16>
    %c0_79 = arith.constant 0 : index
    %c1024_80 = arith.constant 1024 : index
    %214 = vector.load %arg10[%c0_79, %c1024_80] : memref<1x2048xf32, #tpu.memory_space<vmem>>, vector<1x512xf32>
    %cst_81 = arith.constant dense<0.000000e+00> : vector<32x512xf32>
    %215 = tpu.matmul %184, %213, %cst_81 {dimension_numbers = #tpu.dot_dimension_numbers<[1], [0], [0], [1], [0, 0, 1, 1], [], []>} : vector<32x32xbf16>, vector<32x512xbf16>, vector<32x512xf32> -> vector<32x512xf32>
    %216 = vector.broadcast %214 : vector<1x512xf32> to vector<32x512xf32>
    %217 = arith.addf %215, %216 : vector<32x512xf32>
    %cst_82 = arith.constant 0.000000e+00 : f32
    %218 = vector.broadcast %cst_82 : f32 to vector<32x512xf32>
    %219 = arith.maximumf %217, %218 : vector<32x512xf32>
    %c1024_83 = arith.constant 1024 : index
    %c0_84 = arith.constant 0 : index
    %220 = vector.load %arg11[%c1024_83, %c0_84] : memref<2048x32xf32, #tpu.memory_space<vmem>>, vector<512x32xf32>
    %221 = arith.truncf %220 : vector<512x32xf32> to vector<512x32xbf16>
    %222 = arith.truncf %219 : vector<32x512xf32> to vector<32x512xbf16>
    %cst_85 = arith.constant dense<0.000000e+00> : vector<32x32xf32>
    %223 = tpu.matmul %222, %221, %cst_85 {dimension_numbers = #tpu.dot_dimension_numbers<[1], [0], [0], [1], [0, 0, 1, 1], [], []>} : vector<32x512xbf16>, vector<512x32xbf16>, vector<32x32xf32> -> vector<32x32xf32>
    %224 = arith.addf %211, %223 : vector<32x32xf32>
    %c0_86 = arith.constant 0 : index
    %c1536 = arith.constant 1536 : index
    %225 = vector.load %arg9[%c0_86, %c1536] : memref<32x2048xf32, #tpu.memory_space<vmem>>, vector<32x512xf32>
    %226 = arith.truncf %225 : vector<32x512xf32> to vector<32x512xbf16>
    %c0_87 = arith.constant 0 : index
    %c1536_88 = arith.constant 1536 : index
    %227 = vector.load %arg10[%c0_87, %c1536_88] : memref<1x2048xf32, #tpu.memory_space<vmem>>, vector<1x512xf32>
    %cst_89 = arith.constant dense<0.000000e+00> : vector<32x512xf32>
    %228 = tpu.matmul %184, %226, %cst_89 {dimension_numbers = #tpu.dot_dimension_numbers<[1], [0], [0], [1], [0, 0, 1, 1], [], []>} : vector<32x32xbf16>, vector<32x512xbf16>, vector<32x512xf32> -> vector<32x512xf32>
    %229 = vector.broadcast %227 : vector<1x512xf32> to vector<32x512xf32>
    %230 = arith.addf %228, %229 : vector<32x512xf32>
    %cst_90 = arith.constant 0.000000e+00 : f32
    %231 = vector.broadcast %cst_90 : f32 to vector<32x512xf32>
    %232 = arith.maximumf %230, %231 : vector<32x512xf32>
    %c1536_91 = arith.constant 1536 : index
    %c0_92 = arith.constant 0 : index
    %233 = vector.load %arg11[%c1536_91, %c0_92] : memref<2048x32xf32, #tpu.memory_space<vmem>>, vector<512x32xf32>
    %234 = arith.truncf %233 : vector<512x32xf32> to vector<512x32xbf16>
    %235 = arith.truncf %232 : vector<32x512xf32> to vector<32x512xbf16>
    %cst_93 = arith.constant dense<0.000000e+00> : vector<32x32xf32>
    %236 = tpu.matmul %235, %234, %cst_93 {dimension_numbers = #tpu.dot_dimension_numbers<[1], [0], [0], [1], [0, 0, 1, 1], [], []>} : vector<32x512xbf16>, vector<512x32xbf16>, vector<32x32xf32> -> vector<32x32xf32>
    %237 = arith.addf %224, %236 : vector<32x32xf32>
    %c0_94 = arith.constant 0 : index
    %c0_95 = arith.constant 0 : index
    %238 = vector.load %arg12[%c0_94, %c0_95] : memref<1x32xf32, #tpu.memory_space<vmem>>, vector<1x32xf32>
    %239 = vector.broadcast %238 : vector<1x32xf32> to vector<32x32xf32>
    %240 = arith.addf %237, %239 : vector<32x32xf32>
    %241 = arith.addf %159, %240 : vector<32x32xf32>
    %c0_96 = arith.constant 0 : index
    %c0_97 = arith.constant 0 : index
    %242 = vector.load %arg13[%c0_96, %c0_97] : memref<32x32xf32, #tpu.memory_space<vmem>>, vector<32x32xf32>
    tpu.vector_store %arg13[%c0_96, %c0_97], %241 {strides = array<i32>} : memref<32x32xf32, #tpu.memory_space<vmem>>, vector<32x32xf32>,
    return
  }
}

</mosaic_0001>

<bundles_post_ra>
// kernel: tpu_custom_call.1
= control target key start
LH: loop header
LB: loop body
LE: loop exit
PB: predicated region body
PF: predicated region fallthrough
CT: control target
= control target key end

     0   :  { %vm52_vm0 = vcmask 261120   ;;  %s6108_s0 = inlined_call_operand.vmem [shape: f32[32,32], index: 0, kind: input, shape index: {}]   ;;  %s6109_s1 = inlined_call_operand.vmem [shape: f32[1,32], index: 1, kind: input, shape index: {}]   ;;  %s6110_s2 = inlined_call_operand.vmem [shape: f32[1,32], index: 2, kind: input, shape index: {}]   ;;  %s6111_s3 = inlined_call_operand.vmem [shape: f32[32,96], index: 3, kind: input, shape index: {}]   ;;  %s6112_s4 = inlined_call_operand.vmem [shape: f32[1,96], index: 4, kind: input, shape index: {}]   ;;  %s6113_s5 = inlined_call_operand.vmem [shape: f32[32,32], index: 5, kind: input, shape index: {}]   ;;  %s6114_s6 = inlined_call_operand.vmem [shape: f32[1,32], index: 6, kind: input, shape index: {}]   ;;  %s6115_s7 = inlined_call_operand.vmem [shape: f32[1,32], index: 7, kind: input, shape index: {}]   ;;  %s6116_s8 = inlined_call_operand.vmem [shape: f32[1,32], index: 8, kind: input, shape index: {}]   ;;  %s6117_s9 = inlined_call_operand.vmem [shape: f32[32,2048], index: 9, kind: input, shape index: {}]   ;;  %s6118_s10 = inlined_call_operand.vmem [shape: f32[1,2048], index: 10, kind: input, shape index: {}]   ;;  %s6119_s11 = inlined_call_operand.vmem [shape: f32[2048,32], index: 11, kind: input, shape index: {}]   ;;  %s6120_s12 = inlined_call_operand.vmem [shape: f32[1,32], index: 12, kind: input, shape index: {}]   ;;  %s6121_s13 = inlined_call_operand.hbm [shape: f32[32,32], index: 13, kind: output, shape index: {}]  }
   0x1   :  { %v46_v0 = vld [vmem:[%s6108_s0] sm:$0xff]  ;;  %v47_v1 = vld [vmem:[%s6108_s0 + $0x8] sm:$0xff] }
   0x2   :  { %18 = vsyncpa [#allocation3], 0  ;;  %v53_v2 = vsel %vm52_vm0, %v46_v0, 0.0  ;;  %v56_v3 = vsel %vm52_vm0, %v47_v1, 0.0  ;;  %v48_v4 = vld [vmem:[%s6108_s0 + $0x10] sm:$0xff]  ;;  %v49_v15 = vld [vmem:[%s6108_s0 + $0x18] sm:$0xff] }
   0x3   :  { %54 = vadd.xlane.f32.xlu0 %v53_v2  ;;  %v59_v5 = vsel %vm52_vm0, %v48_v4, 0.0  ;;  %v62_v17 = vsel %vm52_vm0, %v49_v15, 0.0  ;;  %v126_v18 = vld [vmem:[%s6111_s3] sm:$0xff]  ;;  %v127_v19 = vld [vmem:[%s6111_s3 + $0x8] sm:$0xff]  ;;  %v128_v20 = vld [vmem:[%s6111_s3 + $0x10] sm:$0xff]  ;;  %vm240_vm1 = vcmask 64512  }
   0x4   :  { %v4133_v21 = vpack.c.bf16 %v127_v19, %v126_v18  ;;  %v129_v22 = vld [vmem:[%s6111_s3 + $0x18] sm:$0xff]  ;;  %v3610_v40 = vld [vmem:[%s6109_s1] ss:$0 sm:$0xff]  ;;  %s4434_s27 = smov 88   ;;  %s4436_s28 = smov 120   ;;  %vm4596_vm2 = vmpackc.low %vm240_vm1, %vm240_vm1  ;;  %vm324_vm3 = vcmask 130048  }
   0x5   :  { %v4137_v23 = vpack.c.bf16 %v129_v22, %v128_v20  ;;  %v3611_v43 = vld [vmem:[%s6110_s2] ss:$0 sm:$0xff]  ;;  %s4437_s29 = smov 80   ;;  %s4438_s30 = smov 112   ;;  %vm1062_vm4 = vcmask 195584  }
   0x6   :  { %4134 = vmatprep.subr.bf16.mxu0 %v4133_v21  ;;  %s4439_s14 = smov 64   ;;  %s4440_s15 = smov 48  }
   0x7   :  { %57 = vadd.xlane.f32.xlu0 %v56_v3  ;;  %4136 = vmatpush3.bf16.msra.mxu0 %v4133_v21  ;;  %s4441_s16 = smov 72   ;;  %s4442_s17 = smov 104  }
   0x8   :  { %4138 = vmatprep.subr.bf16.mxu0 %v4137_v23  ;;  %s4443_s18 = smov 56   ;;  %s4444_s19 = smov 40  }
   0x9   :  { %s4445_s20 = smov 8   ;;  %s4446_s21 = smov 16  }
   0xa   :  { %s4447_s22 = smov 24  }
   0xb   :  { %60 = vadd.xlane.f32.xlu0 %v59_v5  ;;  %4140 = vmatpush3.bf16.msra.mxu0 %v4137_v23 }
  0x90   :  { %v55_v6 = vpop.xlane.xlu0 %54 }
  0x91   :  { %v66_v7 = vmul.f32 0.03125, %v55_v6 }
  0x93   :  { %v70_v8 = vsub.f32 %v46_v0, %v66_v7  ;;  %v4566_v0 = vld [vmem:[%s6112_s4] ss:$0 sm:$0xff]  ;;  %s4435_s4 = smov 96  }
  0x94   :  { %v58_v9 = vpop.xlane.xlu0 %57 }
  0x95   :  { %v67_v10 = vmul.f32 0.03125, %v58_v9  ;;  %v74_v11 = vmul.f32 %v70_v8, %v70_v8 }
  0x97   :  { %v71_v12 = vsub.f32 %v47_v1, %v67_v10  ;;  %v78_v13 = vsel %vm52_vm0, %v74_v11, 0.0 }
  0x98   :  { %79 = vadd.xlane.f32.xlu1 %v78_v13  ;;  %v61_v24 = vpop.xlane.xlu0 %60 }
  0x99   :  { %v75_v14 = vmul.f32 %v71_v12, %v71_v12  ;;  %v68_v25 = vmul.f32 0.03125, %v61_v24 }
  0x9b   :  { %v81_v16 = vsel %vm52_vm0, %v75_v14, 0.0  ;;  %v72_v26 = vsub.f32 %v48_v4, %v68_v25 }
  0x9c   :  { %82 = vadd.xlane.f32.xlu1 %v81_v16 }
  0x9d   :  { %v76_v27 = vmul.f32 %v72_v26, %v72_v26 }
  0x9f   :  { %v84_v28 = vsel %vm52_vm0, %v76_v27, 0.0 }
  0xa0   :  { %63 = vadd.xlane.f32.xlu1 %v62_v17  ;;  %85 = vadd.xlane.f32.xlu0 %v84_v28 }
 0x125   :  { %v80_v29 = vpop.xlane.xlu1 %79 }
 0x126   :  { %v90_v30 = vmul.f32 0.03125, %v80_v29 }
 0x128   :  { %v94_v31 = vadd.f32 1e-06, %v90_v30 }
 0x129   :  { %v83_v32 = vpop.xlane.xlu1 %82 }
 0x12a   :  { %4326 = vrsqrt.f32 %v94_v31  ;;  %v91_v33 = vmul.f32 0.03125, %v83_v32 }
 0x12c   :  { %v95_v34 = vadd.f32 1e-06, %v91_v33 }
 0x12d   :  { %v64_v35 = vpop.xlane.xlu1 %63  ;;  %v86_v50 = vpop.xlane.xlu0 %85 }
 0x12e   :  { %4328 = vrsqrt.f32 %v95_v34  ;;  %v69_v36 = vmul.f32 0.03125, %v64_v35  ;;  %v92_v51 = vmul.f32 0.03125, %v86_v50 }
 0x130   :  { %v73_v37 = vsub.f32 %v49_v15, %v69_v36  ;;  %v96_v52 = vadd.f32 1e-06, %v92_v51 }
 0x132   :  { %v77_v38 = vmul.f32 %v73_v37, %v73_v37  ;;  %4330 = vrsqrt.f32 %v96_v52 }
 0x134   :  { %v4327_v39 = vpop.eup %4326  ;;  %v87_v41 = vsel %vm52_vm0, %v77_v38, 0.0 }
 0x135   :  { %v102_v42 = vmul.f32 %v4327_v39, %v70_v8  ;;  %88 = vadd.xlane.f32.xlu1 %v87_v41 }
 0x137   :  { %v112_v44 = vmul.f32 %v3610_v40, %v102_v42 }
 0x138   :  { %v4329_v45 = vpop.eup %4328 }
 0x139   :  { %v122_v46 = vadd.f32 %v3611_v43, %v112_v44  ;;  %v103_v47 = vmul.f32 %v4329_v45, %v71_v12 }
 0x13b   :  { %4001 = vmatprep.mubr.msk.f32.mxu0 %vm52_vm0, %v122_v46  ;;  %v113_v48 = vmul.f32 %v3610_v40, %v103_v47 }
 0x13c   :  { %v4331_v53 = vpop.eup %4330 }
 0x13d   :  { %v123_v49 = vadd.f32 %v3611_v43, %v113_v48  ;;  %v104_v54 = vmul.f32 %v4331_v53, %v72_v26 }
 0x13f   :  { %4002 = vmatmul.mubr.msk.f32.vlgmr.msra.gmra.mrb[0].mxu0 %vm52_vm0, %v123_v49  ;;  %v114_v55 = vmul.f32 %v3610_v40, %v104_v54 }
 0x141   :  { %v124_v56 = vadd.f32 %v3611_v43, %v114_v55 }
 0x143   :  { %4004 = vmatprep.mubr.msk.f32.mxu0 %vm52_vm0, %v124_v56 }
 0x1c2   :  { %v89_v57 = vpop.xlane.xlu1 %88 }
 0x1c3   :  { %v93_v58 = vmul.f32 0.03125, %v89_v57 }
 0x1c5   :  { %v97_v59 = vadd.f32 1e-06, %v93_v58 }
 0x1c7   :  { %4332 = vrsqrt.f32 %v97_v59 }
 0x1d1   :  { %v4333_v60 = vpop.eup %4332 }
 0x1d2   :  { %v105_v61 = vmul.f32 %v4333_v60, %v73_v37 }
 0x1d4   :  { %v115_v62 = vmul.f32 %v3610_v40, %v105_v61 }
 0x1d6   :  { %v125_v63 = vadd.f32 %v3611_v43, %v115_v62 }
 0x1d8   :  { %4005 = vmatmul.mubr.msk.f32.gmra.mrb[2].mxu0 %vm52_vm0, %v125_v63 }
 0x212   :  { %v4003_v1 = vpop.f32.mrb[0].mxu0 }
 0x213   :  { %v4569_v2 = vadd.f32 %v4003_v1, %v4566_v0  ;;  %v215_v3 = vpop.f32.mrb[1].mxu0 }
 0x214   :  { %v4572_v4 = vadd.f32 %v4566_v0, %v215_v3 }
 0x216   :  { %4011 = vmatprep.mubr.msk.f32.mxu1 %vm240_vm1, %v4572_v4  ;;  %v4578_v5 = vpack.i.bf16 %v4569_v2, %v4572_v4 }
 0x218   :  { %4252 = vrot.lane.b32.xlu1 %v4578_v5, %s4434_s27  ;;  %4247 = vrot.lane.b32.xlu0 %v4578_v5, %s4435_s4 }
 0x21c   :  { %434 = vrot.lane.b32.xlu1 %v4572_v4, %s4436_s28  ;;  %436 = vrot.lane.b32.xlu0 %v4569_v2, %s4436_s28 }
 0x220   :  { %4257 = vrot.lane.b32.xlu1 %v4578_v5, %s4437_s29  ;;  %636 = vrot.lane.b32.xlu0 %v4569_v2, %s4438_s30 }
 0x224   :  { %634 = vrot.lane.b32.xlu1 %v4572_v4, %s4438_s30 }
 0x28a   :  { %v4253_v6 = vpop.permute.xlu1 %4252  ;;  %v4248_v7 = vpop.permute.xlu0 %4247 }
 0x28b   :  { %v4255_v8 = vunpack.i.h.bf16 %v4253_v6  ;;  %v4254_v9 = vunpack.i.l.bf16 %v4253_v6  ;;  %v4250_v10 = vunpack.i.h.bf16 %v4248_v7  ;;  %v4249_v11 = vunpack.i.l.bf16 %v4248_v7 }
 0x28d   :  { %v4151_v13 = vpack.c.bf16 %v4255_v8, %v4254_v9  ;;  %v4141_v14 = vpack.c.bf16 %v4250_v10, %v4249_v11 }
 0x28e   :  { %v435_v15 = vpop.permute.xlu1 %434  ;;  %v437_v21 = vpop.permute.xlu0 %436 }
 0x28f   :  { %4143 = vmatprep.subr.msk.bf16.mxu1 %vm4596_vm2, %v4141_v14  ;;  %4153 = vmatprep.subr.msk.bf16.mxu0 %vm4596_vm2, %v4151_v13 }
 0x290   :  { %4025 = vmatprep.mubr.msk.f32.mxu0 %vm240_vm1, %v435_v15  ;;  %4146 = vmatpush3.bf16.xpose.msk.msra.mxu1 %vm4596_vm2, %v4141_v14 }
 0x291   :  { %4156 = vmatpush3.bf16.xpose.msk.msra.mxu0 %vm4596_vm2, %v4151_v13 }
 0x292   :  { %v4258_v16 = vpop.permute.xlu1 %4257  ;;  %v637_v22 = vpop.permute.xlu0 %636 }
 0x293   :  { %v4260_v17 = vunpack.i.h.bf16 %v4258_v16  ;;  %v4259_v18 = vunpack.i.l.bf16 %v4258_v16 }
 0x295   :  { %v4161_v19 = vpack.c.bf16 %v4260_v17, %v4259_v18 }
 0x296   :  { %v635_v20 = vpop.permute.xlu1 %634 }
 0x297   :  { %4012 = vmatmul.mubr.msk.f32.vlgmr.msra.gmra.mrb[0].mxu1 %vm240_vm1, %v4569_v2  ;;  %4163 = vmatprep.subr.msk.bf16.mxu0 %vm4596_vm2, %v4161_v19 }
 0x298   :  { %4026 = vmatmul.mubr.msk.f32.vlgmr.msra.gmra.mrb[4].mxu0 %vm240_vm1, %v437_v21 }
 0x299   :  { %4166 = vmatpush3.bf16.xpose.msk.msra.mxu0 %vm4596_vm2, %v4161_v19  ;;  %4039 = vmatprep.mubr.msk.f32.mxu0 %vm240_vm1, %v635_v20 }
 0x2a0   :  { %4040 = vmatmul.mubr.msk.f32.vlgmr.msra.gmra.mrb[6].mxu0 %vm240_vm1, %v637_v22 }
 0x2ab   :  { %v4618_v23 = vpop.f32.mrb[2].mxu0 }
 0x2ac   :  { %v225_v24 = vpop.f32.mrb[3].mxu0  ;;  %v4649_v8 = vadd.f32 %v4618_v23, %v4566_v0 }
 0x2ad   :  { %v4621_v25 = vadd.f32 %v4566_v0, %v225_v24 }
 0x2af   :  { %4067 = vmatprep.mubr.msk.f32.mxu0 %vm240_vm1, %v4621_v25  ;;  %v4655_v9 = vpack.i.bf16 %v4649_v8, %v4621_v25 }
 0x36a   :  { %v4013_v26 = vpop.f32.mrb[0].mxu1 }
 0x36b   :  { %v4027_v27 = vpop.f32.mrb[4].mxu0  ;;  %v315_v28 = vpop.f32.mrb[1].mxu1  ;;  %v328_v29 = vsel %vm324_vm3, %v4013_v26, -inf }
 0x36c   :  { %v516_v30 = vpop.f32.mrb[5].mxu0  ;;  %329 = vmax.xlane.f32.xlu0 %v328_v29  ;;  %v325_v31 = vsel %vm324_vm3, %v315_v28, -inf  ;;  %v528_v34 = vsel %vm324_vm3, %v4027_v27, -inf }
 0x36d   :  { %326 = vmax.xlane.f32.xlu1 %v325_v31  ;;  %v525_v32 = vsel %vm324_vm3, %v516_v30, -inf }
 0x370   :  { %526 = vmax.xlane.f32.xlu0 %v525_v32 }
 0x373   :  { %v4041_v33 = vpop.f32.mrb[6].mxu0 }
 0x374   :  { %v716_v35 = vpop.f32.mrb[7].mxu0  ;;  %529 = vmax.xlane.f32.xlu0 %v528_v34  ;;  %v728_v37 = vsel %vm324_vm3, %v4041_v33, -inf }
 0x375   :  { %v725_v36 = vsel %vm324_vm3, %v716_v35, -inf }
 0x376   :  { %726 = vmax.xlane.f32.xlu1 %v725_v36 }
 0x378   :  { %729 = vmax.xlane.f32.xlu0 %v728_v37 }
 0x387   :  { %4262 = vrot.lane.b32.xlu1 %v4578_v5, %s4439_s14 }
 0x3f9   :  { %v330_v38 = vpop.xlane.xlu0 %329 }
 0x3fa   :  { %v332_v39 = vsub.f32 %v4013_v26, %v330_v38  ;;  %v327_v40 = vpop.xlane.xlu1 %326 }
 0x3fb   :  { %v331_v41 = vsub.f32 %v315_v28, %v327_v40 }
 0x3fc   :  { %v335_v42 = vmul.f32 1.442695, %v332_v39 }
 0x3fd   :  { %v333_v43 = vmul.f32 1.442695, %v331_v41  ;;  %v527_v44 = vpop.xlane.xlu0 %526 }
 0x3fe   :  { %4334 = vpow2.f32 %v335_v42  ;;  %v531_v45 = vsub.f32 %v516_v30, %v527_v44 }
 0x3ff   :  { %4336 = vpow2.f32 %v333_v43 }
 0x400   :  { %v533_v46 = vmul.f32 1.442695, %v531_v45 }
 0x401   :  { %v530_v47 = vpop.xlane.xlu0 %529 }
 0x402   :  { %4338 = vpow2.f32 %v533_v46  ;;  %v532_v48 = vsub.f32 %v4027_v27, %v530_v47 }
 0x403   :  { %v727_v49 = vpop.xlane.xlu1 %726 }
 0x404   :  { %v535_v50 = vmul.f32 1.442695, %v532_v48  ;;  %v731_v10 = vsub.f32 %v716_v35, %v727_v49 }
 0x405   :  { %v730_v51 = vpop.xlane.xlu0 %729 }
 0x406   :  { %4340 = vpow2.f32 %v535_v50  ;;  %v732_v52 = vsub.f32 %v4041_v33, %v730_v51  ;;  %v733_v11 = vmul.f32 1.442695, %v731_v10 }
 0x407   :  { %v4263_v53 = vpop.permute.xlu1 %4262 }
 0x408   :  { %v4335_v54 = vpop.eup %4334  ;;  %v735_v55 = vmul.f32 1.442695, %v732_v52  ;;  %v4265_v56 = vunpack.i.h.bf16 %v4263_v53  ;;  %v4264_v57 = vunpack.i.l.bf16 %v4263_v53 }
 0x409   :  { %v4337_v58 = vpop.eup %4336  ;;  %v340_v59 = vsel %vm324_vm3, %v4335_v54, 0.0 }
 0x40a   :  { %4342 = vpow2.f32 %v735_v55  ;;  %v4147_v60 = vpack.c.bf16 %v4265_v56, %v4264_v57  ;;  %341 = vadd.xlane.f32.xlu0 %v340_v59  ;;  %v337_v61 = vsel %vm324_vm3, %v4337_v58, 0.0 }
 0x40b   :  { %338 = vadd.xlane.f32.xlu1 %v337_v61  ;;  %4344 = vpow2.f32 %v733_v11 }
 0x40c   :  { %v4339_v62 = vpop.eup %4338  ;;  %4148 = vmatprep.subr.bf16.mxu1 %v4147_v60 }
 0x40d   :  { %4150 = vmatpush3.bf16.msra.mxu1 %v4147_v60  ;;  %v537_v63 = vsel %vm324_vm3, %v4339_v62, 0.0 }
 0x40f   :  { %538 = vadd.xlane.f32.xlu1 %v537_v63 }
 0x410   :  { %v4341_v1 = vpop.eup %4340 }
 0x411   :  { %v540_v3 = vsel %vm324_vm3, %v4341_v1, 0.0 }
 0x412   :  { %541 = vadd.xlane.f32.xlu0 %v540_v3 }
 0x414   :  { %v4637_v6 = vpop.eup %4342 }
 0x415   :  { %v740_v7 = vsel %vm324_vm3, %v4637_v6, 0.0  ;;  %v4345_v13 = vpop.eup %4344 }
 0x416   :  { %741 = vadd.xlane.f32.xlu0 %v740_v7 }
 0x420   :  { %4272 = vrot.lane.b32.xlu1 %v4578_v5, %s4440_s15 }
 0x424   :  { %4277 = vrot.lane.b32.xlu1 %v4578_v5, %s4441_s16 }
 0x428   :  { %834 = vrot.lane.b32.xlu1 %v4572_v4, %s4442_s17  ;;  %v737_v4 = vsel %vm324_vm3, %v4345_v13, 0.0 }
 0x42c   :  { %4267 = vrot.lane.b32.xlu0 %v4578_v5, %s4443_s18 }
 0x430   :  { %4282 = vrot.lane.b32.xlu0 %v4655_v9, %s4435_s4 }
 0x44c   :  { %738 = vadd.xlane.f32.xlu1 %v737_v4 }
 0x45d   :  { %836 = vrot.lane.b32.xlu1 %v4569_v2, %s4442_s17 }
 0x497   :  { %v342_v0 = vpop.xlane.xlu0 %341 }
 0x498   :  { %4346 = vrcp.f32 %v342_v0  ;;  %v339_v14 = vpop.xlane.xlu1 %338 }
 0x499   :  { %4348 = vrcp.f32 %v339_v14 }
 0x49c   :  { %v539_v15 = vpop.xlane.xlu1 %538 }
 0x49d   :  { %4350 = vrcp.f32 %v539_v15 }
 0x49f   :  { %v542_v16 = vpop.xlane.xlu0 %541 }
 0x4a0   :  { %4352 = vrcp.f32 %v542_v16  ;;  %v4273_v19 = vpop.permute.xlu1 %4272 }
 0x4a1   :  { %v4275_v24 = vunpack.i.h.bf16 %v4273_v19  ;;  %v4274_v26 = vunpack.i.l.bf16 %v4273_v19 }
 0x4a2   :  { %v4347_v17 = vpop.eup %4346 }
 0x4a3   :  { %v4349_v18 = vpop.eup %4348  ;;  %v742_v20 = vpop.xlane.xlu0 %741  ;;  %v346_v22 = vmul.f32 %v4347_v17, %v4335_v54  ;;  %v4167_v33 = vpack.c.bf16 %v4275_v24, %v4274_v26 }
 0x4a4   :  { %v344_v21 = vmul.f32 %v4349_v18, %v4337_v58  ;;  %v4278_v30 = vpop.permute.xlu1 %4277  ;;  %4354 = vrcp.f32 %v742_v20 }
 0x4a5   :  { %v4280_v35 = vunpack.i.h.bf16 %v4278_v30  ;;  %v4279_v36 = vunpack.i.l.bf16 %v4278_v30 }
 0x4a6   :  { %4018 = vmatprep.mubr.msk.f32.mxu1 %vm324_vm3, %v344_v21 }
 0x4a7   :  { %v4351_v23 = vpop.eup %4350  ;;  %v4268_v2 = vpop.permute.xlu0 %4267  ;;  %4019 = vmatmul.mubr.msk.f32.vlgmr.msra.gmra.mrb[2].mxu1 %vm324_vm3, %v346_v22  ;;  %v4171_v41 = vpack.c.bf16 %v4280_v35, %v4279_v36 }
 0x4a8   :  { %v4270_v27 = vunpack.i.h.bf16 %v4268_v2  ;;  %v4269_v28 = vunpack.i.l.bf16 %v4268_v2  ;;  %v544_v29 = vmul.f32 %v4351_v23, %v4339_v62  ;;  %v835_v42 = vpop.permute.xlu1 %834 }
 0x4aa   :  { %v4157_v31 = vpack.c.bf16 %v4270_v27, %v4269_v28  ;;  %4032 = vmatprep.mubr.msk.f32.mxu1 %vm324_vm3, %v544_v29  ;;  %v4353_v32 = vpop.eup %4352 }
 0x4ab   :  { %v4283_v34 = vpop.permute.xlu0 %4282  ;;  %v546_v39 = vmul.f32 %v4353_v32, %v4341_v1 }
 0x4ac   :  { %v4285_v37 = vunpack.i.h.bf16 %v4283_v34  ;;  %v4284_v38 = vunpack.i.l.bf16 %v4283_v34  ;;  %4158 = vmatprep.subr.bf16.mxu1 %v4157_v31 }
 0x4ad   :  { %4160 = vmatpush3.bf16.msra.mxu1 %v4157_v31 }
 0x4ae   :  { %v4181_v40 = vpack.c.bf16 %v4285_v37, %v4284_v38  ;;  %4168 = vmatprep.subr.bf16.mxu1 %v4167_v33  ;;  %v4355_v44 = vpop.eup %4354 }
 0x4af   :  { %v746_v47 = vmul.f32 %v4355_v44, %v4637_v6 }
 0x4b0   :  { %4033 = vmatmul.mubr.msk.f32.vlgmr.msra.gmra.mrb[4].mxu1 %vm324_vm3, %v546_v39  ;;  %4183 = vmatprep.subr.msk.bf16.mxu0 %vm4596_vm2, %v4181_v40 }
 0x4b1   :  { %4170 = vmatpush3.bf16.msra.mxu1 %v4167_v33  ;;  %4186 = vmatpush3.bf16.xpose.msk.msra.mxu0 %vm4596_vm2, %v4181_v40 }
 0x4b2   :  { %4173 = vmatprep.subr.msk.bf16.mxu1 %vm4596_vm2, %v4171_v41 }
 0x4b8   :  { %4068 = vmatmul.mubr.msk.f32.vlgmr.msra.gmra.mrb[8].mxu0 %vm240_vm1, %v4649_v8 }
 0x4d9   :  { %v739_v43 = vpop.xlane.xlu1 %738 }
 0x4da   :  { %4356 = vrcp.f32 %v739_v43 }
 0x4dd   :  { %v837_v48 = vpop.permute.xlu1 %836 }
 0x4e4   :  { %v4357_v45 = vpop.eup %4356 }
 0x4e5   :  { %v744_v46 = vmul.f32 %v4357_v45, %v4345_v13 }
 0x4e7   :  { %4046 = vmatprep.mubr.msk.f32.mxu1 %vm324_vm3, %v744_v46 }
 0x4e8   :  { %4047 = vmatmul.mubr.msk.f32.vlgmr.msra.gmra.mrb[6].mxu1 %vm324_vm3, %v746_v47 }
 0x4e9   :  { %4176 = vmatpush3.bf16.xpose.msk.msra.mxu1 %vm4596_vm2, %v4171_v41  ;;  %4053 = vmatprep.mubr.msk.f32.mxu1 %vm240_vm1, %v835_v42 }
 0x4f0   :  { %4054 = vmatmul.mubr.msk.f32.vlgmr.msra.gmra.mrb[8].mxu1 %vm240_vm1, %v837_v48 }
 0x57a   :  { %v4681_v49 = vpop.f32.mrb[2].mxu1 }
 0x57b   :  { %v4683_v50 = vpop.f32.mrb[3].mxu1 }
 0x583   :  { %v4685_v51 = vpop.f32.mrb[4].mxu1 }
 0x584   :  { %v4687_v52 = vpop.f32.mrb[5].mxu1 }
 0x58b   :  { %v4069_v53 = vpop.f32.mrb[8].mxu0 }
 0x58c   :  { %v1145_v54 = vpop.f32.mrb[9].mxu0  ;;  %v1157_v62 = vsel %vm324_vm3, %v4069_v53, -inf }
 0x58d   :  { %v1154_v61 = vsel %vm324_vm3, %v1145_v54, -inf }
 0x5bb   :  { %v4689_v55 = vpop.f32.mrb[6].mxu1 }
 0x5bc   :  { %v4691_v56 = vpop.f32.mrb[7].mxu1 }
 0x5c3   :  { %v4055_v57 = vpop.f32.mrb[8].mxu1 }
 0x5c4   :  { %v916_v58 = vpop.f32.mrb[9].mxu1  ;;  %v928_v59 = vsel %vm324_vm3, %v4055_v57, -inf }
 0x5c5   :  { %929 = vmax.xlane.f32.xlu1 %v928_v59  ;;  %v925_v60 = vsel %vm324_vm3, %v916_v58, -inf }
 0x5c6   :  { %926 = vmax.xlane.f32.xlu0 %v925_v60 }
 0x5ca   :  { %1155 = vmax.xlane.f32.xlu0 %v1154_v61 }
 0x5ce   :  { %1158 = vmax.xlane.f32.xlu0 %v1157_v62 }
 0x652   :  { %v930_v3 = vpop.xlane.xlu1 %929 }
 0x653   :  { %v927_v63 = vpop.xlane.xlu0 %926  ;;  %v932_v10 = vsub.f32 %v4055_v57, %v930_v3 }
 0x654   :  { %v931_v1 = vsub.f32 %v916_v58, %v927_v63 }
 0x655   :  { %v935_v14 = vmul.f32 1.442695, %v932_v10 }
 0x656   :  { %v933_v11 = vmul.f32 1.442695, %v931_v1 }
 0x657   :  { %v1156_v6 = vpop.xlane.xlu0 %1155 }
 0x658   :  { %v1160_v7 = vsub.f32 %v1145_v54, %v1156_v6 }
 0x65a   :  { %v1162_v13 = vmul.f32 1.442695, %v1160_v7 }
 0x65b   :  { %v1159_v4 = vpop.xlane.xlu0 %1158 }
 0x65c   :  { %4358 = vpow2.f32 %v1162_v13  ;;  %v1161_v0 = vsub.f32 %v4069_v53, %v1159_v4 }
 0x65d   :  { %4360 = vpow2.f32 %v933_v11 }
 0x65e   :  { %v1164_v15 = vmul.f32 1.442695, %v1161_v0 }
 0x660   :  { %4362 = vpow2.f32 %v1164_v15 }
 0x661   :  { %4364 = vpow2.f32 %v935_v14 }
 0x666   :  { %v4359_v16 = vpop.eup %4358 }
 0x667   :  { %v1166_v17 = vsel %vm324_vm3, %v4359_v16, 0.0  ;;  %v4361_v18 = vpop.eup %4360 }
 0x668   :  { %1167 = vadd.xlane.f32.xlu0 %v1166_v17  ;;  %v937_v20 = vsel %vm324_vm3, %v4361_v18, 0.0 }
 0x66a   :  { %v4363_v19 = vpop.eup %4362 }
 0x66b   :  { %v1169_v21 = vsel %vm324_vm3, %v4363_v19, 0.0  ;;  %v4365_v22 = vpop.eup %4364 }
 0x66c   :  { %938 = vadd.xlane.f32.xlu0 %v937_v20  ;;  %1170 = vadd.xlane.f32.xlu1 %v1169_v21  ;;  %v940_v23 = vsel %vm324_vm3, %v4365_v22, 0.0 }
 0x670   :  { %941 = vadd.xlane.f32.xlu1 %v940_v23 }
 0x681   :  { %4292 = vrot.lane.b32.xlu1 %v4655_v9, %s4439_s14 }
 0x682   :  { %4287 = vrot.lane.b32.xlu0 %v4578_v5, %s4444_s19 }
 0x685   :  { %4297 = vrot.lane.b32.xlu1 %v4655_v9, %s4434_s27 }
 0x686   :  { %1265 = vrot.lane.b32.xlu0 %v4649_v8, %s4436_s28 }
 0x689   :  { %1263 = vrot.lane.b32.xlu1 %v4621_v25, %s4436_s28 }
 0x6f5   :  { %v1168_v24 = vpop.xlane.xlu0 %1167 }
 0x6f9   :  { %v1171_v26 = vpop.xlane.xlu1 %1170  ;;  %v939_v2 = vpop.xlane.xlu0 %938 }
 0x6fa   :  { %4366 = vrcp.f32 %v939_v2 }
 0x6fb   :  { %4368 = vrcp.f32 %v1168_v24 }
 0x6fd   :  { %v942_v27 = vpop.xlane.xlu1 %941  ;;  %v4288_v28 = vpop.permute.xlu0 %4287 }
 0x6fe   :  { %4370 = vrcp.f32 %v942_v27  ;;  %v4290_v29 = vunpack.i.h.bf16 %v4288_v28  ;;  %v4289_v30 = vunpack.i.l.bf16 %v4288_v28 }
 0x6ff   :  { %4372 = vrcp.f32 %v1171_v26 }
 0x700   :  { %v4177_v5 = vpack.c.bf16 %v4290_v29, %v4289_v30 }
 0x701   :  { %v4293_v31 = vpop.permute.xlu1 %4292  ;;  %v1266_v48 = vpop.permute.xlu0 %1265 }
 0x702   :  { %v4295_v32 = vunpack.i.h.bf16 %v4293_v31  ;;  %v4294_v33 = vunpack.i.l.bf16 %v4293_v31  ;;  %4178 = vmatprep.subr.bf16.mxu1 %v4177_v5 }
 0x703   :  { %4180 = vmatpush3.bf16.msra.mxu1 %v4177_v5 }
 0x704   :  { %v4187_v34 = vpack.c.bf16 %v4295_v32, %v4294_v33  ;;  %v4367_v35 = vpop.eup %4366 }
 0x705   :  { %v4298_v36 = vpop.permute.xlu1 %4297  ;;  %v944_v37 = vmul.f32 %v4367_v35, %v4361_v18  ;;  %v4369_v38 = vpop.eup %4368 }
 0x706   :  { %4188 = vmatprep.subr.bf16.mxu1 %v4187_v34  ;;  %v4300_v39 = vunpack.i.h.bf16 %v4298_v36  ;;  %v4299_v40 = vunpack.i.l.bf16 %v4298_v36  ;;  %v1173_v44 = vmul.f32 %v4369_v38, %v4359_v16 }
 0x707   :  { %4060 = vmatprep.mubr.msk.f32.mxu1 %vm324_vm3, %v944_v37 }
 0x708   :  { %v4371_v41 = vpop.eup %4370  ;;  %v4191_v45 = vpack.c.bf16 %v4300_v39, %v4299_v40 }
 0x709   :  { %v946_v42 = vmul.f32 %v4371_v41, %v4365_v22  ;;  %v4373_v43 = vpop.eup %4372  ;;  %v1264_v47 = vpop.permute.xlu1 %1263 }
 0x70a   :  { %v1175_v46 = vmul.f32 %v4373_v43, %v4363_v19 }
 0x70b   :  { %4061 = vmatmul.mubr.msk.f32.vlgmr.msra.gmra.mrb[10].mxu1 %vm324_vm3, %v946_v42 }
 0x70c   :  { %4190 = vmatpush3.bf16.msra.mxu1 %v4187_v34  ;;  %4074 = vmatprep.mubr.msk.f32.mxu1 %vm324_vm3, %v1173_v44 }
 0x70d   :  { %4193 = vmatprep.subr.msk.bf16.mxu1 %vm4596_vm2, %v4191_v45 }
 0x70f   :  { %4075 = vmatmul.mubr.msk.f32.vlgmr.msra.gmra.mrb[12].mxu1 %vm324_vm3, %v1175_v46 }
 0x710   :  { %4081 = vmatprep.mubr.msk.f32.mxu1 %vm240_vm1, %v1264_v47 }
 0x715   :  { %4196 = vmatpush3.bf16.xpose.msk.msra.mxu1 %vm4596_vm2, %v4191_v45 }
 0x71c   :  { %4082 = vmatmul.mubr.msk.f32.vlgmr.msra.gmra.mrb[14].mxu1 %vm240_vm1, %v1266_v48 }
 0x7de   :  { %v4721_v53 = vpop.f32.mrb[10].mxu1 }
 0x7df   :  { %v4723_v54 = vpop.f32.mrb[11].mxu1 }
 0x7e2   :  { %v4725_v57 = vpop.f32.mrb[12].mxu1 }
 0x7e3   :  { %v4727_v58 = vpop.f32.mrb[13].mxu1 }
 0x7ef   :  { %v4083_v59 = vpop.f32.mrb[14].mxu1 }
 0x7f0   :  { %v1345_v60 = vpop.f32.mrb[15].mxu1  ;;  %v1357_v61 = vsel %vm324_vm3, %v4083_v59, -inf }
 0x7f1   :  { %1358 = vmax.xlane.f32.xlu0 %v1357_v61  ;;  %v1354_v62 = vsel %vm324_vm3, %v1345_v60, -inf }
 0x7f2   :  { %1355 = vmax.xlane.f32.xlu1 %v1354_v62 }
 0x803   :  { %4302 = vrot.lane.b32.xlu1 %v4655_v9, %s4443_s18 }
 0x807   :  { %1463 = vrot.lane.b32.xlu1 %v4621_v25, %s4438_s30 }
 0x80b   :  { %1465 = vrot.lane.b32.xlu1 %v4649_v8, %s4438_s30 }
 0x87e   :  { %v1359_v63 = vpop.xlane.xlu0 %1358 }
 0x87f   :  { %v1361_v1 = vsub.f32 %v4083_v59, %v1359_v63  ;;  %v1356_v3 = vpop.xlane.xlu1 %1355 }
 0x880   :  { %v1360_v6 = vsub.f32 %v1345_v60, %v1356_v3 }
 0x881   :  { %v1364_v7 = vmul.f32 1.442695, %v1361_v1 }
 0x882   :  { %v1362_v10 = vmul.f32 1.442695, %v1360_v6 }
 0x883   :  { %4374 = vpow2.f32 %v1364_v7  ;;  %v4303_v11 = vpop.permute.xlu1 %4302 }
 0x884   :  { %v4305_v13 = vunpack.i.h.bf16 %v4303_v11  ;;  %v4304_v4 = vunpack.i.l.bf16 %v4303_v11  ;;  %4376 = vpow2.f32 %v1362_v10 }
 0x886   :  { %v4197_v0 = vpack.c.bf16 %v4305_v13, %v4304_v4 }
 0x887   :  { %v1464_v28 = vpop.permute.xlu1 %1463 }
 0x888   :  { %4198 = vmatprep.subr.bf16.mxu0 %v4197_v0 }
 0x889   :  { %4200 = vmatpush3.bf16.msra.mxu0 %v4197_v0 }
 0x88b   :  { %v1466_v29 = vpop.permute.xlu1 %1465 }
 0x88d   :  { %v4375_v14 = vpop.eup %4374 }
 0x88e   :  { %v1369_v15 = vsel %vm324_vm3, %v4375_v14, 0.0  ;;  %v4377_v16 = vpop.eup %4376 }
 0x88f   :  { %1370 = vadd.xlane.f32.xlu0 %v1369_v15  ;;  %v1366_v17 = vsel %vm324_vm3, %v4377_v16, 0.0 }
 0x893   :  { %1367 = vadd.xlane.f32.xlu0 %v1366_v17 }
 0x8a9   :  { %4307 = vrot.lane.b32.xlu0 %v4655_v9, %s4437_s29 }
 0x91c   :  { %v1371_v18 = vpop.xlane.xlu0 %1370 }
 0x91d   :  { %4378 = vrcp.f32 %v1371_v18 }
 0x920   :  { %v1368_v19 = vpop.xlane.xlu0 %1367 }
 0x921   :  { %4380 = vrcp.f32 %v1368_v19 }
 0x924   :  { %v4308_v20 = vpop.permute.xlu0 %4307 }
 0x925   :  { %v4310_v21 = vunpack.i.h.bf16 %v4308_v20  ;;  %v4309_v22 = vunpack.i.l.bf16 %v4308_v20 }
 0x927   :  { %v4201_v23 = vpack.c.bf16 %v4310_v21, %v4309_v22  ;;  %v4379_v24 = vpop.eup %4378 }
 0x928   :  { %v1375_v27 = vmul.f32 %v4379_v24, %v4375_v14  ;;  %v1893_v24 = vld [vmem:[%s6113_s5] sm:$0xff] }
 0x929   :  { %4203 = vmatprep.subr.msk.bf16.mxu0 %vm4596_vm2, %v4201_v23 }
 0x92b   :  { %v4381_v26 = vpop.eup %4380 }
 0x92c   :  { %v1373_v2 = vmul.f32 %v4381_v26, %v4377_v16  ;;  %v1894_v26 = vld [vmem:[%s6113_s5 + $0x8] sm:$0xff] }
 0x92e   :  { %4088 = vmatprep.mubr.msk.f32.mxu0 %vm324_vm3, %v1373_v2  ;;  %v4221_v2 = vpack.c.bf16 %v1894_v26, %v1893_v24 }
 0x92f   :  { %4089 = vmatmul.mubr.msk.f32.vlgmr.msra.gmra.mrb[10].mxu0 %vm324_vm3, %v1375_v27 }
 0x930   :  { %4206 = vmatpush3.bf16.xpose.msk.msra.mxu0 %vm4596_vm2, %v4201_v23  ;;  %4095 = vmatprep.mubr.msk.f32.mxu0 %vm240_vm1, %v1464_v28 }
 0x937   :  { %4096 = vmatmul.mubr.msk.f32.vlgmr.msra.gmra.mrb[12].mxu0 %vm240_vm1, %v1466_v29 }
 0xa02   :  { %v4749_v30 = vpop.f32.mrb[10].mxu0 }
 0xa03   :  { %v4751_v5 = vpop.f32.mrb[11].mxu0 }
 0xa0a   :  { %v4097_v31 = vpop.f32.mrb[12].mxu0 }
 0xa0b   :  { %v1545_v32 = vpop.f32.mrb[13].mxu0  ;;  %v1557_v33 = vsel %vm324_vm3, %v4097_v31, -inf }
 0xa0c   :  { %1558 = vmax.xlane.f32.xlu0 %v1557_v33  ;;  %v1554_v34 = vsel %vm324_vm3, %v1545_v32, -inf  ;;  %v1895_v33 = vld [vmem:[%s6113_s5 + $0x10] sm:$0xff] }
 0xa0d   :  { %1555 = vmax.xlane.f32.xlu1 %v1554_v34 }
 0xa1e   :  { %4312 = vrot.lane.b32.xlu1 %v4655_v9, %s4440_s15 }
 0xa22   :  { %1663 = vrot.lane.b32.xlu1 %v4621_v25, %s4442_s17 }
 0xa26   :  { %1665 = vrot.lane.b32.xlu1 %v4649_v8, %s4442_s17 }
 0xa99   :  { %v1559_v35 = vpop.xlane.xlu0 %1558 }
 0xa9a   :  { %v1561_v36 = vsub.f32 %v4097_v31, %v1559_v35  ;;  %v1556_v37 = vpop.xlane.xlu1 %1555 }
 0xa9b   :  { %v1560_v38 = vsub.f32 %v1545_v32, %v1556_v37 }
 0xa9c   :  { %v1564_v39 = vmul.f32 1.442695, %v1561_v36 }
 0xa9d   :  { %v1562_v40 = vmul.f32 1.442695, %v1560_v38 }
 0xa9e   :  { %4382 = vpow2.f32 %v1564_v39  ;;  %v4313_v41 = vpop.permute.xlu1 %4312 }
 0xa9f   :  { %v4315_v42 = vunpack.i.h.bf16 %v4313_v41  ;;  %v4314_v43 = vunpack.i.l.bf16 %v4313_v41  ;;  %4384 = vpow2.f32 %v1562_v40 }
 0xaa1   :  { %v4207_v44 = vpack.c.bf16 %v4315_v42, %v4314_v43 }
 0xaa2   :  { %v1664_v7 = vpop.permute.xlu1 %1663 }
 0xaa3   :  { %4208 = vmatprep.subr.bf16.mxu1 %v4207_v44 }
 0xaa4   :  { %4210 = vmatpush3.bf16.msra.mxu1 %v4207_v44 }
 0xaa6   :  { %v1666_v10 = vpop.permute.xlu1 %1665 }
 0xaa8   :  { %v4383_v45 = vpop.eup %4382 }
 0xaa9   :  { %v1569_v25 = vsel %vm324_vm3, %v4383_v45, 0.0  ;;  %v4385_v46 = vpop.eup %4384 }
 0xaaa   :  { %1570 = vadd.xlane.f32.xlu0 %v1569_v25  ;;  %v1566_v8 = vsel %vm324_vm3, %v4385_v46, 0.0 }
 0xaae   :  { %1567 = vadd.xlane.f32.xlu0 %v1566_v8  ;;  %v3665_v8 = vld [vmem:[%s6114_s6] ss:$0 sm:$0xff] }
 0xac4   :  { %4317 = vrot.lane.b32.xlu0 %v4655_v9, %s4441_s16 }
 0xb37   :  { %v1571_v47 = vpop.xlane.xlu0 %1570 }
 0xb38   :  { %4386 = vrcp.f32 %v1571_v47 }
 0xb3b   :  { %v1568_v48 = vpop.xlane.xlu0 %1567 }
 0xb3c   :  { %4388 = vrcp.f32 %v1568_v48  ;;  %v4406_v48 = vld [vmem:[%s6108_s0] sm:$0xff] }
 0xb3f   :  { %v4318_v59 = vpop.permute.xlu0 %4317 }
 0xb40   :  { %v4320_v60 = vunpack.i.h.bf16 %v4318_v59  ;;  %v4319_v61 = vunpack.i.l.bf16 %v4318_v59 }
 0xb42   :  { %v4211_v62 = vpack.c.bf16 %v4320_v60, %v4319_v61  ;;  %v4387_v63 = vpop.eup %4386  ;;  %v4407_v60 = vld [vmem:[%s6108_s0 + $0x8] sm:$0xff] }
 0xb43   :  { %v1575_v6 = vmul.f32 %v4387_v63, %v4383_v45 }
 0xb44   :  { %4213 = vmatprep.subr.msk.bf16.mxu1 %vm4596_vm2, %v4211_v62 }
 0xb46   :  { %v4389_v1 = vpop.eup %4388 }
 0xb47   :  { %v1573_v3 = vmul.f32 %v4389_v1, %v4385_v46 }
 0xb49   :  { %4102 = vmatprep.mubr.msk.f32.mxu1 %vm324_vm3, %v1573_v3 }
 0xb4a   :  { %4103 = vmatmul.mubr.msk.f32.vlgmr.msra.gmra.mrb[16].mxu1 %vm324_vm3, %v1575_v6 }
 0xb4b   :  { %4216 = vmatpush3.bf16.xpose.msk.msra.mxu1 %vm4596_vm2, %v4211_v62  ;;  %4109 = vmatprep.mubr.msk.f32.mxu1 %vm240_vm1, %v1664_v7 }
 0xb52   :  { %4110 = vmatmul.mubr.msk.f32.vlgmr.msra.gmra.mrb[18].mxu1 %vm240_vm1, %v1666_v10 }
 0xc1d   :  { %v4104_v11 = vpop.f32.mrb[16].mxu1 }
 0xc1e   :  { %v1654_v13 = vpop.f32.mrb[17].mxu1 }
 0xc25   :  { %v4111_v4 = vpop.f32.mrb[18].mxu1 }
 0xc26   :  { %v1745_v0 = vpop.f32.mrb[19].mxu1  ;;  %v1757_v14 = vsel %vm324_vm3, %v4111_v4, -inf }
 0xc27   :  { %1758 = vmax.xlane.f32.xlu0 %v1757_v14  ;;  %v1754_v15 = vsel %vm324_vm3, %v1745_v0, -inf }
 0xc28   :  { %1755 = vmax.xlane.f32.xlu1 %v1754_v15 }
 0xc39   :  { %4322 = vrot.lane.b32.xlu1 %v4655_v9, %s4444_s19 }
 0xc3d   :  { %1038 = vrot.lane.b32.xlu1 %v4685_v51, %s4445_s20 }
 0xc41   :  { %1044 = vrot.lane.b32.xlu1 %v4691_v56, %s4446_s21 }
 0xc45   :  { %1046 = vrot.lane.b32.xlu1 %v4689_v55, %s4446_s21 }
 0xc49   :  { %1054 = vrot.lane.b32.xlu1 %v4721_v53, %s4447_s22 }
 0xc4d   :  { %1867 = vrot.lane.b32.xlu1 %v4749_v30, %s4445_s20 }
 0xc51   :  { %1875 = vrot.lane.b32.xlu1 %v4104_v11, %s4446_s21 }
 0xcb4   :  { %v1759_v12 = vpop.xlane.xlu0 %1758 }
 0xcb5   :  { %v1761_v9 = vsub.f32 %v4111_v4, %v1759_v12  ;;  %v1756_v16 = vpop.xlane.xlu1 %1755 }
 0xcb6   :  { %v1760_v51 = vsub.f32 %v1745_v0, %v1756_v16 }
 0xcb7   :  { %v1764_v17 = vmul.f32 1.442695, %v1761_v9 }
 0xcb8   :  { %v1762_v18 = vmul.f32 1.442695, %v1760_v51 }
 0xcb9   :  { %v4323_v19 = vpop.permute.xlu1 %4322 }
 0xcba   :  { %4390 = vpow2.f32 %v1762_v18  ;;  %v4325_v56 = vunpack.i.h.bf16 %v4323_v19  ;;  %v4324_v20 = vunpack.i.l.bf16 %v4323_v19 }
 0xcbb   :  { %4392 = vpow2.f32 %v1764_v17 }
 0xcbc   :  { %v4217_v55 = vpack.c.bf16 %v4325_v56, %v4324_v20 }
 0xcbe   :  { %4218 = vmatprep.subr.bf16.mxu0 %v4217_v55 }
 0xcbf   :  { %4220 = vmatpush3.bf16.msra.mxu0 %v4217_v55 }
 0xcc0   :  { %4222 = vmatprep.subr.bf16.mxu0 %v4221_v2 }
 0xcc4   :  { %v4391_v53 = vpop.eup %4390 }
 0xcc5   :  { %v1766_v21 = vsel %vm324_vm3, %v4391_v53, 0.0  ;;  %v4393_v22 = vpop.eup %4392 }
 0xcc6   :  { %1767 = vadd.xlane.f32.xlu0 %v1766_v21  ;;  %v1769_v23 = vsel %vm324_vm3, %v4393_v22, 0.0 }
 0xcca   :  { %1770 = vadd.xlane.f32.xlu0 %v1769_v23  ;;  %v4409_v23 = vld [vmem:[%s6108_s0 + $0x18] sm:$0xff] }
 0xce0   :  { %1036 = vrot.lane.b32.xlu0 %v4687_v52, %s4445_s20  ;;  %v1039_v52 = vpop.permute.xlu1 %1038 }
 0xce4   :  { %1052 = vrot.lane.b32.xlu0 %v4723_v54, %s4447_s22  ;;  %v1045_v30 = vpop.permute.xlu1 %1044  ;;  %v1896_v54 = vld [vmem:[%s6113_s5 + $0x18] sm:$0xff] }
 0xce5   :  { %v4225_v38 = vpack.c.bf16 %v1896_v54, %v1895_v33  ;;  %v2081_v33 = vld [vmem:[%s6117_s9] sm:$0xff] }
 0xce6   :  { %v2085_v54 = vld [vmem:[%s6117_s9 + $0x80] sm:$0xff] }
 0xce8   :  { %1865 = vrot.lane.b32.xlu0 %v4751_v5, %s4445_s20  ;;  %v1047_v36 = vpop.permute.xlu1 %1046 }
 0xcec   :  { %1873 = vrot.lane.b32.xlu0 %v1654_v13, %s4446_s21  ;;  %v1055_v41 = vpop.permute.xlu1 %1054 }
 0xcf0   :  { %v1868_v1 = vpop.permute.xlu1 %1867 }
 0xcf1   :  { %v1888_v13 = vsel %vm240_vm1, %v4725_v57, %v1868_v1 }
 0xcf4   :  { %v1876_v6 = vpop.permute.xlu1 %1875 }
 0xcf5   :  { %v1890_v14 = vsel %vm324_vm3, %v1888_v13, %v1876_v6 }
 0xd53   :  { %v1768_v27 = vpop.xlane.xlu0 %1767 }
 0xd54   :  { %4394 = vrcp.f32 %v1768_v27 }
 0xd57   :  { %v1771_v28 = vpop.xlane.xlu0 %1770 }
 0xd58   :  { %4396 = vrcp.f32 %v1771_v28  ;;  %v2082_v28 = vld [vmem:[%s6117_s9 + $0x8] sm:$0xff] }
 0xd5b   :  { %v1037_v29 = vpop.permute.xlu0 %1036 }
 0xd5c   :  { %v1058_v5 = vsel %vm240_vm1, %v4683_v50, %v1037_v29  ;;  %v1059_v50 = vsel %vm240_vm1, %v4681_v49, %v1039_v52  ;;  %v2086_v29 = vld [vmem:[%s6117_s9 + $0x88] sm:$0xff] }
 0xd5d   :  { %v1060_v39 = vsel %vm324_vm3, %v1058_v5, %v1045_v30  ;;  %v1061_v42 = vsel %vm324_vm3, %v1059_v50, %v1047_v36  ;;  %v2084_v30 = vld [vmem:[%s6117_s9 + $0x18] sm:$0xff]  ;;  %v2087_v36 = vld [vmem:[%s6117_s9 + $0x90] sm:$0xff] }
 0xd5e   :  { %v4395_v31 = vpop.eup %4394  ;;  %v1064_v43 = vsel %vm1062_vm4, %v1061_v42, %v1055_v41  ;;  %v2096_v50 = vld [vmem:[%s6117_s9 + $0x198] sm:$0xff]  ;;  %v2089_v42 = vld [vmem:[%s6117_s9 + $0x100] sm:$0xff] }
 0xd5f   :  { %v1773_v32 = vmul.f32 %v4395_v31, %v4391_v53  ;;  %v1053_v35 = vpop.permute.xlu0 %1052  ;;  %v4408_v53 = vld [vmem:[%s6108_s0 + $0x10] sm:$0xff]  ;;  %v2098_v31 = vpack.c.bf16 %v2086_v29, %v2082_v28 }
 0xd60   :  { %v1063_v40 = vsel %vm1062_vm4, %v1060_v39, %v1053_v35  ;;  %v2083_v35 = vld [vmem:[%s6117_s9 + $0x10] sm:$0xff]  ;;  %v2094_v39 = vld [vmem:[%s6117_s9 + $0x188] sm:$0xff] }
 0xd61   :  { %4116 = vmatprep.mubr.msk.f32.mxu0 %vm324_vm3, %v1773_v32  ;;  %v2088_v32 = vld [vmem:[%s6117_s9 + $0x98] sm:$0xff]  ;;  %2133 = vmatprep.subr.bf16.mxu1 %v2098_v31  ;;  %v2361_v29 = vld [vmem:[%s6117_s9 + $0x30] sm:$0xff]  ;;  %v2368_v31 = vld [vmem:[%s6117_s9 + $0x128] sm:$0xff] }
 0xd62   :  { %v4397_v34 = vpop.eup %4396  ;;  %v2100_v5 = vpack.c.bf16 %v2088_v32, %v2084_v30  ;;  %v2365_v30 = vld [vmem:[%s6117_s9 + $0xb0] sm:$0xff] }
 0xd63   :  { %v1775_v37 = vmul.f32 %v4397_v34, %v4393_v22  ;;  %v1866_v3 = vpop.permute.xlu0 %1865  ;;  %v2097_v34 = vpack.c.bf16 %v2085_v54, %v2081_v33  ;;  %v2377_v32 = vpack.c.bf16 %v2365_v30, %v2361_v29  ;;  %v2372_v33 = vld [vmem:[%s6117_s9 + $0x1a8] sm:$0xff]  ;;  %v2370_v54 = vld [vmem:[%s6117_s9 + $0x138] sm:$0xff]  ;;  %v2531_v29 = vld [vmem:[%s6119_s11 + $0x220] sm:$0xff] }
 0xd64   :  { %v1887_v10 = vsel %vm240_vm1, %v4727_v58, %v1866_v3  ;;  %v2532_v30 = vld [vmem:[%s6119_s11 + $0x228] sm:$0xff] }
 0xd65   :  { %4117 = vmatmul.mubr.msk.f32.vlgmr.msra.gmra.mrb[14].mxu0 %vm324_vm3, %v1775_v37  ;;  %v2099_v37 = vpack.c.bf16 %v2087_v36, %v2083_v35  ;;  %2134 = vmatpush1.bf16.msra.mxu1 %v2097_v34  ;;  %v2380_v34 = vpack.c.bf16 %v2372_v33, %v2368_v31  ;;  %v2367_v36 = vld [vmem:[%s6117_s9 + $0x120] sm:$0xff] }
 0xd66   :  { %4224 = vmatpush3.bf16.msra.mxu0 %v4221_v2  ;;  %4127 = vmatprep.mubr.msk.f32.mxu0 %vm52_vm0, %v1063_v40  ;;  %v2092_v40 = vld [vmem:[%s6117_s9 + $0x118] sm:$0xff]  ;;  %v2563_v33 = vld [vmem:[%s6119_s11 + $0x320] sm:$0xff] }
 0xd67   :  { %4226 = vmatprep.subr.bf16.mxu0 %v4225_v38  ;;  %v1874_v7 = vpop.permute.xlu0 %1873 }
 0xd68   :  { %v1889_v4 = vsel %vm324_vm3, %v1887_v10, %v1874_v7 }
 0xd6a   :  { %4228 = vmatpush3.bf16.msra.mxu0 %v4225_v38  ;;  %v2090_v38 = vld [vmem:[%s6117_s9 + $0x108] sm:$0xff] }
 0xd6b   :  { %2186 = vmatprep.subr.bf16.mxu0 %v2100_v5  ;;  %v2102_v41 = vpack.c.bf16 %v2094_v39, %v2090_v38  ;;  %v2374_v5 = vld [vmem:[%s6117_s9 + $0x1b8] sm:$0xff]  ;;  %v2369_v38 = vld [vmem:[%s6117_s9 + $0x130] sm:$0xff] }
 0xd6c   :  { %v2382_v35 = vpack.c.bf16 %v2374_v5, %v2370_v54  ;;  %v2564_v54 = vld [vmem:[%s6119_s11 + $0x328] sm:$0xff]  ;;  %v2549_v5 = vld [vmem:[%s6119_s11 + $0x2b0] sm:$0xff] }
 0xd6d   :  { %4128 = vmatmul.mubr.msk.f32.vlgmr.msra.gmra.mrb[16].mxu0 %vm52_vm0, %v1064_v43  ;;  %v2093_v43 = vld [vmem:[%s6117_s9 + $0x180] sm:$0xff]  ;;  %2135 = vmatprep.subr.bf16.mxu1 %v2102_v41 }
 0xd6e   :  { %2187 = vmatpush1.bf16.msra.mxu0 %v2099_v37  ;;  %v2371_v37 = vld [vmem:[%s6117_s9 + $0x1a0] sm:$0xff] }
 0xd6f   :  { %v2379_v39 = vpack.c.bf16 %v2371_v37, %v2367_v36  ;;  %v2582_v36 = vld [vmem:[%s6119_s11 + $0x3b8] sm:$0xff]  ;;  %v2593_v37 = vpack.c.bf16 %v2532_v30, %v2531_v29 }
 0xe38   :  { %v4118_v44 = vpop.f32.mrb[14].mxu0 }
 0xe39   :  { %1883 = vrot.lane.b32.xlu1 %v4118_v44, %s4447_s22  ;;  %v1854_v45 = vpop.f32.mrb[15].mxu0  ;;  %v2104_v44 = vpack.c.bf16 %v2096_v50, %v2092_v40  ;;  %v2373_v40 = vld [vmem:[%s6117_s9 + $0x1b0] sm:$0xff]  ;;  %v2543_v50 = vld [vmem:[%s6119_s11 + $0x280] sm:$0xff] }
 0xe3a   :  { %1881 = vrot.lane.b32.xlu0 %v1854_v45, %s4447_s22  ;;  %v2101_v45 = vpack.c.bf16 %v2093_v43, %v2089_v42  ;;  %v2381_v41 = vpack.c.bf16 %v2373_v40, %v2369_v38  ;;  %v2544_v42 = vld [vmem:[%s6119_s11 + $0x288] sm:$0xff]  ;;  %v2575_v43 = vld [vmem:[%s6119_s11 + $0x380] sm:$0xff]  ;;  %v2609_v38 = vpack.c.bf16 %v2564_v54, %v2563_v33 }
 0xe3b   :  { %2188 = vmatprep.subr.bf16.mxu0 %v2104_v44  ;;  %v2599_v44 = vpack.c.bf16 %v2544_v42, %v2543_v50  ;;  %v2534_v50 = vld [vmem:[%s6119_s11 + $0x238] sm:$0xff]  ;;  %v2565_v42 = vld [vmem:[%s6119_s11 + $0x330] sm:$0xff]  ;;  %v2583_v33 = vld [vmem:[%s6119_s11 + $0x3c0] sm:$0xff] }
 0xe3c   :  { %2136 = vmatpush1.bf16.msra.mxu1 %v2101_v45  ;;  %v2576_v45 = vld [vmem:[%s6119_s11 + $0x388] sm:$0xff] }
 0xe40   :  { %v4129_v25 = vpop.f32.mrb[16].mxu0 }
 0xe41   :  { %v1982_v46 = vpop.f32.mrb[17].mxu0  ;;  %v1988_v47 = vadd.f32 %v4129_v25, %v3665_v8  ;;  %v2091_v25 = vld [vmem:[%s6117_s9 + $0x110] sm:$0xff] }
 0xe42   :  { %v1983_v49 = vadd.f32 %v3665_v8, %v1982_v46  ;;  %v2095_v46 = vld [vmem:[%s6117_s9 + $0x190] sm:$0xff] }
 0xe43   :  { %v4834_v61 = vadd.f32 %v4407_v60, %v1988_v47 }
 0xe44   :  { %v4829_v59 = vadd.f32 %v4406_v48, %v1983_v49  ;;  %v4448_v49 = vmov 0  }
 0xe45   :  { %v2010_v63 = vsel %vm52_vm0, %v4834_v61, 0.0  ;;  %2165 = vmatprep.mubr.bf16.mxu1 %v4448_v49 }
 0xe46   :  { %v2007_v62 = vsel %vm52_vm0, %v4829_v59, 0.0 }
 0xe59   :  { %2008 = vadd.xlane.f32.xlu0 %v2007_v62 }
 0xe5d   :  { %2011 = vadd.xlane.f32.xlu1 %v2010_v63 }
 0xeab   :  { %v1884_v11 = vpop.permute.xlu1 %1883 }
 0xeac   :  { %v1882_v0 = vpop.permute.xlu0 %1881  ;;  %v1892_v12 = vsel %vm1062_vm4, %v1890_v14, %v1884_v11 }
 0xead   :  { %v1891_v15 = vsel %vm1062_vm4, %v1889_v4, %v1882_v0 }
 0xeae   :  { %4130 = vmatprep.mubr.msk.f32.mxu0 %vm52_vm0, %v1891_v15 }
 0xeaf   :  { %4131 = vmatmul.mubr.msk.f32.gmra.mrb[18].mxu0 %vm52_vm0, %v1892_v12 }
 0xeb0   :  { %2218 = vmatprep.mubr.bf16.mxu0 %v4448_v49 }
 0xee6   :  { %v2009_v17 = vpop.xlane.xlu0 %2008 }
 0xee7   :  { %v2019_v56 = vmul.f32 0.03125, %v2009_v17 }
 0xee9   :  { %v4862_v22 = vsub.f32 %v4829_v59, %v2019_v56 }
 0xeea   :  { %v2012_v9 = vpop.xlane.xlu1 %2011 }
 0xeeb   :  { %v2020_v16 = vmul.f32 0.03125, %v2012_v9  ;;  %v2027_v27 = vmul.f32 %v4862_v22, %v4862_v22 }
 0xeed   :  { %v4851_v58 = vsub.f32 %v4834_v61, %v2020_v16  ;;  %v2031_v52 = vsel %vm52_vm0, %v2027_v27, 0.0  ;;  %v4942_v16 = vld [vmem:[%s6115_s7] ss:$0 sm:$0xff] }
 0xeee   :  { %v2363_v27 = vld [vmem:[%s6117_s9 + $0xa0] sm:$0xff] }
 0xeef   :  { %v2028_v57 = vmul.f32 %v4851_v58, %v4851_v58 }
 0xef1   :  { %v2034_v51 = vsel %vm52_vm0, %v2028_v57, 0.0 }
 0xef2   :  { %2035 = vadd.xlane.f32.xlu1 %v2034_v51 }
 0xf7f   :  { %v2036_v47 = vpop.xlane.xlu1 %2035 }
 0xf80   :  { %v2044_v48 = vmul.f32 0.03125, %v2036_v47 }
 0xf82   :  { %v4132_v18 = vpop.f32.mrb[18].mxu0  ;;  %v2048_v63 = vadd.f32 1e-06, %v2044_v48 }
 0xf83   :  { %v1992_v19 = vpop.f32.mrb[19].mxu0  ;;  %v1998_v20 = vadd.f32 %v4132_v18, %v3665_v8  ;;  %v4949_v18 = vld [vmem:[%s6116_s8] ss:$0 sm:$0xff] }
 0xf84   :  { %v1993_v55 = vadd.f32 %v3665_v8, %v1992_v19  ;;  %v2103_v8 = vpack.c.bf16 %v2095_v46, %v2091_v25  ;;  %4398 = vrsqrt.f32 %v2048_v63  ;;  %v2615_v25 = vpack.c.bf16 %v2576_v45, %v2575_v43  ;;  %v2566_v43 = vld [vmem:[%s6119_s11 + $0x338] sm:$0xff] }
 0xf85   :  { %v4867_v24 = vadd.f32 %v4409_v23, %v1998_v20  ;;  %v2610_v45 = vpack.c.bf16 %v2566_v43, %v2565_v42  ;;  %v2585_v42 = vld [vmem:[%s6119_s11 + $0x3d0] sm:$0xff] }
 0xf86   :  { %v4859_v21 = vadd.f32 %v4408_v53, %v1993_v55  ;;  %2189 = vmatpush1.bf16.msra.mxu0 %v2103_v8  ;;  %v2360_v55 = vld [vmem:[%s6117_s9 + $0x28] sm:$0xff] }
 0xf87   :  { %v2016_v2 = vsel %vm52_vm0, %v4867_v24, 0.0  ;;  %v2364_v53 = vld [vmem:[%s6117_s9 + $0xa8] sm:$0xff] }
 0xf88   :  { %v2013_v26 = vsel %vm52_vm0, %v4859_v21, 0.0  ;;  %v2376_v23 = vpack.c.bf16 %v2364_v53, %v2360_v55  ;;  %v2561_v53 = vld [vmem:[%s6119_s11 + $0x310] sm:$0xff] }
 0xf89   :  { %2014 = vadd.xlane.f32.xlu0 %v2013_v26  ;;  %v2366_v26 = vld [vmem:[%s6117_s9 + $0xb8] sm:$0xff] }
 0xf8a   :  { %2405 = vmatprep.subr.bf16.mxu1 %v2376_v23  ;;  %v2547_v23 = vld [vmem:[%s6119_s11 + $0x2a0] sm:$0xff] }
 0xf8d   :  { %2017 = vadd.xlane.f32.xlu0 %v2016_v2  ;;  %v2359_v2 = vld [vmem:[%s6117_s9 + $0x20] sm:$0xff] }
 0xf8e   :  { %v4399_v12 = vpop.eup %4398  ;;  %v2375_v28 = vpack.c.bf16 %v2363_v27, %v2359_v2  ;;  %v2579_v2 = vld [vmem:[%s6119_s11 + $0x3a0] sm:$0xff]  ;;  %v2580_v27 = vld [vmem:[%s6119_s11 + $0x3a8] sm:$0xff] }
 0xf8f   :  { %v2056_v9 = vmul.f32 %v4399_v12, %v4851_v58  ;;  %v2560_v12 = vld [vmem:[%s6119_s11 + $0x308] sm:$0xff] }
 0xf91   :  { %2032 = vadd.xlane.f32.xlu0 %v2031_v52  ;;  %v2066_v51 = vmul.f32 %v4942_v16, %v2056_v9  ;;  %v2545_v9 = vld [vmem:[%s6119_s11 + $0x290] sm:$0xff] }
 0xf93   :  { %v2076_v56 = vadd.f32 %v4949_v18, %v2066_v51  ;;  %v2578_v51 = vld [vmem:[%s6119_s11 + $0x398] sm:$0xff] }
0x1016   :  { %v2015_v60 = vpop.xlane.xlu0 %2014 }
0x1017   :  { %v2021_v62 = vmul.f32 0.03125, %v2015_v60 }
0x1019   :  { %v4927_v1 = vsub.f32 %v4859_v21, %v2021_v62 }
0x101a   :  { %v2018_v3 = vpop.xlane.xlu0 %2017 }
0x101b   :  { %v2022_v6 = vmul.f32 0.03125, %v2018_v3  ;;  %v2029_v7 = vmul.f32 %v4927_v1, %v4927_v1 }
0x101d   :  { %v4932_v10 = vsub.f32 %v4867_v24, %v2022_v6  ;;  %v2037_v11 = vsel %vm52_vm0, %v2029_v7, 0.0 }
0x101e   :  { %2038 = vadd.xlane.f32.xlu0 %v2037_v11  ;;  %v2033_v13 = vpop.xlane.xlu0 %2032 }
0x101f   :  { %v2043_v4 = vmul.f32 0.03125, %v2033_v13  ;;  %v2030_v0 = vmul.f32 %v4932_v10, %v4932_v10 }
0x1021   :  { %v2047_v14 = vadd.f32 1e-06, %v2043_v4  ;;  %v2040_v15 = vsel %vm52_vm0, %v2030_v0, 0.0 }
0x1022   :  { %2041 = vadd.xlane.f32.xlu1 %v2040_v15  ;;  %v2559_v15 = vld [vmem:[%s6119_s11 + $0x300] sm:$0xff] }
0x1023   :  { %4400 = vrsqrt.f32 %v2047_v14 }
0x102d   :  { %v4401_v57 = vpop.eup %4400 }
0x102e   :  { %v2055_v17 = vmul.f32 %v4401_v57, %v4862_v22  ;;  %v2362_v22 = vld [vmem:[%s6117_s9 + $0x38] sm:$0xff]  ;;  %v2577_v57 = vld [vmem:[%s6119_s11 + $0x390] sm:$0xff] }
0x102f   :  { %v2378_v52 = vpack.c.bf16 %v2366_v26, %v2362_v22  ;;  %v2616_v55 = vpack.c.bf16 %v2578_v51, %v2577_v57  ;;  %v2562_v22 = vld [vmem:[%s6119_s11 + $0x318] sm:$0xff]  ;;  %v2548_v26 = vld [vmem:[%s6119_s11 + $0x2a8] sm:$0xff] }
0x1030   :  { %v2065_v19 = vmul.f32 %v4942_v16, %v2055_v17  ;;  %v2601_v31 = vpack.c.bf16 %v2548_v26, %v2547_v23 }
0x1031   :  { %2458 = vmatprep.subr.bf16.mxu0 %v2378_v52 }
0x1032   :  { %v2075_v58 = vadd.f32 %v4949_v18, %v2065_v19  ;;  %v2529_v19 = vld [vmem:[%s6119_s11 + $0x210] sm:$0xff] }
0x1034   :  { %v4954_v20 = vpack.c.bf16 %v2076_v56, %v2075_v58  ;;  %v2530_v56 = vld [vmem:[%s6119_s11 + $0x218] sm:$0xff] }
0x1035   :  { %v2592_v52 = vpack.c.bf16 %v2530_v56, %v2529_v19 }
0x1036   :  { %3672 = vmatmul.mubr.msk.bf16.vlgmr.msra.gmra.mrb[20].mxu1 %vm52_vm0, %v4954_v20  ;;  %3674 = vmatmul.mubr.msk.bf16.vlgmr.msra.gmra.mrb[20].mxu0 %vm52_vm0, %v4954_v20 }
0x1037   :  { %2175 = vmatprep.mubr.bf16.mxu1 %v4448_v49  ;;  %2228 = vmatprep.mubr.bf16.mxu0 %v4448_v49 }
0x1038   :  { %2406 = vmatpush1.bf16.msra.mxu1 %v2375_v28  ;;  %2459 = vmatpush1.bf16.msra.mxu0 %v2377_v32  ;;  %v2608_v28 = vpack.c.bf16 %v2562_v22, %v2561_v53  ;;  %v2617_v32 = vpack.c.bf16 %v2580_v27, %v2579_v2 }
0x1039   :  { %2407 = vmatprep.subr.bf16.mxu1 %v2380_v34  ;;  %2460 = vmatprep.subr.bf16.mxu0 %v2382_v35  ;;  %v2550_v34 = vld [vmem:[%s6119_s11 + $0x2b8] sm:$0xff]  ;;  %v2581_v35 = vld [vmem:[%s6119_s11 + $0x3b0] sm:$0xff] }
0x103a   :  { %v2602_v40 = vpack.c.bf16 %v2550_v34, %v2549_v5  ;;  %v2584_v5 = vld [vmem:[%s6119_s11 + $0x3c8] sm:$0xff]  ;;  %v2535_v34 = vld [vmem:[%s6119_s11 + $0x240] sm:$0xff] }
0x103c   :  { %2408 = vmatpush1.bf16.msra.mxu1 %v2379_v39  ;;  %2461 = vmatpush1.bf16.msra.mxu0 %v2381_v41  ;;  %v2533_v39 = vld [vmem:[%s6119_s11 + $0x230] sm:$0xff]  ;;  %v2618_v41 = vpack.c.bf16 %v2582_v36, %v2581_v35  ;;  %v2536_v35 = vld [vmem:[%s6119_s11 + $0x248] sm:$0xff]  ;;  %v2619_v36 = vpack.c.bf16 %v2584_v5, %v2583_v33 }
0x103d   :  { %3769 = vmatprep.subr.bf16.mxu1 %v2599_v44  ;;  %3797 = vmatprep.subr.bf16.mxu0 %v2615_v25  ;;  %v2594_v44 = vpack.c.bf16 %v2534_v50, %v2533_v39  ;;  %v2107_v25 = vlaneseq  ;;  %v2568_v39 = vld [vmem:[%s6119_s11 + $0x348] sm:$0xff]  ;;  %v2554_v50 = vld [vmem:[%s6119_s11 + $0x2d8] sm:$0xff] }
0x103e   :  { %v2272_v5 = vld [vmem:[%s6119_s11 + $0x88] sm:$0xff] }
0x10ab   :  { %v2039_v46 = vpop.xlane.xlu0 %2038 }
0x10ac   :  { %v2045_v8 = vmul.f32 0.03125, %v2039_v46  ;;  %v2108_v46 = vshrl.u32 %v2107_v25, 7  ;;  %v2538_v25 = vld [vmem:[%s6119_s11 + $0x258] sm:$0xff] }
0x10ae   :  { %v2049_v47 = vadd.f32 1e-06, %v2045_v8  ;;  %v5130_v8 = vsub.s32 0, %v2108_v46 }
0x10af   :  { %v2042_v48 = vpop.xlane.xlu1 %2041 }
0x10b0   :  { %4402 = vrsqrt.f32 %v2049_v47  ;;  %v2046_v60 = vmul.f32 0.03125, %v2042_v48  ;;  %v5132_v47 = vsub.s32 2, %v2108_v46  ;;  %v2105_v48 = vld [vmem:[%s6118_s10] sm:$0xf] }
0x10b2   :  { %v2050_v62 = vadd.f32 1e-06, %v2046_v60  ;;  %v5137_v60 = vsub.s32 1, %v2108_v46 }
0x10b4   :  { %4404 = vrsqrt.f32 %v2050_v62  ;;  %v5139_v62 = vsub.s32 3, %v2108_v46 }
0x10ba   :  { %v4403_v63 = vpop.eup %4402 }
0x10bb   :  { %v2057_v3 = vmul.f32 %v4403_v63, %v4927_v1  ;;  %v2527_v1 = vld [vmem:[%s6119_s11 + $0x200] sm:$0xff]  ;;  %v5142_v63 = vrot.slane %v2105_v48, %v5130_v8 }
0x10bd   :  { %v2067_v7 = vmul.f32 %v4942_v16, %v2057_v3  ;;  %v5145_v3 = vrot.slane %v2105_v48, %v5132_v47 }
0x10be   :  { %v4405_v6 = vpop.eup %4404 }
0x10bf   :  { %v2058_v11 = vmul.f32 %v4405_v6, %v4932_v10  ;;  %v2077_v4 = vadd.f32 %v4949_v18, %v2067_v7  ;;  %v2528_v10 = vld [vmem:[%s6119_s11 + $0x208] sm:$0xff]  ;;  %v5148_v6 = vrot.slane %v2105_v48, %v5137_v60  ;;  %v5151_v7 = vrot.slane %v2105_v48, %v5139_v62 }
0x10c0   :  { %v2591_v17 = vpack.c.bf16 %v2528_v10, %v2527_v1 }
0x10c1   :  { %v2068_v13 = vmul.f32 %v4942_v16, %v2058_v11  ;;  %v2546_v16 = vld [vmem:[%s6119_s11 + $0x298] sm:$0xff] }
0x10c2   :  { %v2600_v58 = vpack.c.bf16 %v2546_v16, %v2545_v9 }
0x10c3   :  { %v2078_v0 = vadd.f32 %v4949_v18, %v2068_v13  ;;  %v2607_v18 = vpack.c.bf16 %v2560_v12, %v2559_v15 }
0x10c5   :  { %v5028_v14 = vpack.c.bf16 %v2078_v0, %v2077_v4 }
0x10c7   :  { %3673 = vmatmul.mubr.msk.bf16.gmra.mrb[24].mxu1 %vm52_vm0, %v5028_v14  ;;  %3675 = vmatmul.mubr.msk.bf16.gmra.mrb[24].mxu0 %vm52_vm0, %v5028_v14 }
0x10c8   :  { %2437 = vmatprep.mubr.bf16.mxu1 %v4448_v49  ;;  %2490 = vmatprep.mubr.bf16.mxu0 %v4448_v49 }
0x10cf   :  { %3676 = vmatmul.mubr.msk.bf16.vlgmr.msra.gmra.mrb[28].mxu1 %vm52_vm0, %v4954_v20  ;;  %3678 = vmatmul.mubr.msk.bf16.vlgmr.msra.gmra.mrb[28].mxu0 %vm52_vm0, %v4954_v20 }
0x10d0   :  { %2447 = vmatprep.mubr.bf16.mxu1 %v4448_v49  ;;  %2500 = vmatprep.mubr.bf16.mxu0 %v4448_v49 }
0x10d1   :  { %3770 = vmatpush3.bf16.msra.mxu1 %v2591_v17  ;;  %3798 = vmatpush3.bf16.msra.mxu0 %v2607_v18 }
0x10d2   :  { %3771 = vmatprep.subr.bf16.mxu1 %v2600_v58  ;;  %3799 = vmatprep.subr.bf16.mxu0 %v2616_v55 }
0x10d5   :  { %3772 = vmatpush3.bf16.msra.mxu1 %v2592_v52  ;;  %3800 = vmatpush3.bf16.msra.mxu0 %v2608_v28 }
0x10d6   :  { %3773 = vmatprep.subr.bf16.mxu1 %v2601_v31  ;;  %3801 = vmatprep.subr.bf16.mxu0 %v2617_v32  ;;  %v2551_v31 = vld [vmem:[%s6119_s11 + $0x2c0] sm:$0xff]  ;;  %v2552_v32 = vld [vmem:[%s6119_s11 + $0x2c8] sm:$0xff] }
0x10d7   :  { %3677 = vmatmul.mubr.msk.bf16.gmra.mrb[32].mxu1 %vm52_vm0, %v5028_v14  ;;  %3679 = vmatmul.mubr.msk.bf16.gmra.mrb[32].mxu0 %vm52_vm0, %v5028_v14  ;;  %v2603_v54 = vpack.c.bf16 %v2552_v32, %v2551_v31  ;;  %v2573_v31 = vld [vmem:[%s6119_s11 + $0x370] sm:$0xff]  ;;  %v2574_v32 = vld [vmem:[%s6119_s11 + $0x378] sm:$0xff] }
0x10d8   :  { %v2614_v33 = vpack.c.bf16 %v2574_v32, %v2573_v31 }
0x10d9   :  { %3774 = vmatpush3.bf16.msra.mxu1 %v2593_v37  ;;  %3802 = vmatpush3.bf16.msra.mxu0 %v2609_v38  ;;  %v2595_v37 = vpack.c.bf16 %v2536_v35, %v2535_v34  ;;  %v2567_v38 = vld [vmem:[%s6119_s11 + $0x340] sm:$0xff] }
0x10da   :  { %3775 = vmatprep.subr.bf16.mxu1 %v2602_v40  ;;  %3803 = vmatprep.subr.bf16.mxu0 %v2618_v41  ;;  %v2611_v40 = vpack.c.bf16 %v2568_v39, %v2567_v38  ;;  %v2553_v41 = vld [vmem:[%s6119_s11 + $0x2d0] sm:$0xff]  ;;  %v2303_v34 = vld [vmem:[%s6119_s11 + $0x180] sm:$0xff] }
0x10db   :  { %v2604_v43 = vpack.c.bf16 %v2554_v50, %v2553_v41 }
0x10dd   :  { %3776 = vmatpush3.bf16.msra.mxu1 %v2594_v44  ;;  %3804 = vmatpush3.bf16.msra.mxu0 %v2610_v45  ;;  %v2586_v44 = vld [vmem:[%s6119_s11 + $0x3d8] sm:$0xff]  ;;  %v2537_v45 = vld [vmem:[%s6119_s11 + $0x250] sm:$0xff] }
0x10de   :  { %3777 = vmatprep.subr.bf16.mxu1 %v2603_v54  ;;  %3805 = vmatprep.subr.bf16.mxu0 %v2619_v36  ;;  %v2620_v46 = vpack.c.bf16 %v2586_v44, %v2585_v42  ;;  %v2596_v48 = vpack.c.bf16 %v2538_v25, %v2537_v45  ;;  %v2271_v54 = vld [vmem:[%s6119_s11 + $0x80] sm:$0xff]  ;;  %v2304_v36 = vld [vmem:[%s6119_s11 + $0x188] sm:$0xff] }
0x10df   :  { %v2327_v35 = vpack.c.bf16 %v2272_v5, %v2271_v54 }
0x10e1   :  { %3778 = vmatpush3.bf16.msra.mxu1 %v2595_v37  ;;  %3806 = vmatpush3.bf16.msra.mxu0 %v2611_v40  ;;  %v2343_v37 = vpack.c.bf16 %v2304_v36, %v2303_v34  ;;  %v2383_v40 = vld [vmem:[%s6118_s10 + $0x4] sm:$0xf] }
0x10e2   :  { %3779 = vmatprep.subr.bf16.mxu1 %v2604_v43  ;;  %3807 = vmatprep.subr.bf16.mxu0 %v2620_v46  ;;  %v2255_v36 = vld [vmem:[%s6119_s11] sm:$0xff] }
0x10e5   :  { %3780 = vmatpush3.bf16.msra.mxu1 %v2596_v48 }
0x1109   :  { %v2167_v11 = vpop.f32.mrb[20].mxu1  ;;  %v2220_v13 = vpop.f32.mrb[20].mxu0 }
0x110a   :  { %v2168_v4 = vadd.f32 %v2167_v11, %v5142_v63  ;;  %v2221_v0 = vadd.f32 %v2220_v13, %v5145_v3  ;;  %v2169_v1 = vpop.f32.mrb[21].mxu1  ;;  %v2222_v10 = vpop.f32.mrb[21].mxu0  ;;  %v2569_v11 = vld [vmem:[%s6119_s11 + $0x350] sm:$0xff]  ;;  %v2570_v13 = vld [vmem:[%s6119_s11 + $0x358] sm:$0xff] }
0x110b   :  { %v2170_v15 = vadd.f32 %v2169_v1, %v5148_v6  ;;  %v2223_v12 = vadd.f32 %v2222_v10, %v5151_v7  ;;  %v2171_v9 = vpop.f32.mrb[22].mxu1  ;;  %v2224_v16 = vpop.f32.mrb[22].mxu0  ;;  %v2556_v1 = vld [vmem:[%s6119_s11 + $0x2e8] sm:$0xff]  ;;  %v2587_v10 = vld [vmem:[%s6119_s11 + $0x3e0] sm:$0xff] }
0x110c   :  { %v2172_v57 = vadd.f32 %v2171_v9, %v5142_v63  ;;  %v2225_v51 = vadd.f32 %v2224_v16, %v5145_v3  ;;  %v2173_v17 = vpop.f32.mrb[23].mxu1  ;;  %v2226_v18 = vpop.f32.mrb[23].mxu0  ;;  %v2239_v58 = vmax.f32 %v2168_v4, 0.0  ;;  %v2241_v55 = vmax.f32 %v2221_v0, 0.0  ;;  %v2555_v0 = vld [vmem:[%s6119_s11 + $0x2e0] sm:$0xff]  ;;  %v2540_v16 = vld [vmem:[%s6119_s11 + $0x268] sm:$0xff] }
0x110d   :  { %v2174_v19 = vadd.f32 %v2173_v17, %v5148_v6  ;;  %v2227_v56 = vadd.f32 %v2226_v18, %v5151_v7  ;;  %v2240_v23 = vmax.f32 %v2170_v15, 0.0  ;;  %v2242_v26 = vmax.f32 %v2223_v12, 0.0  ;;  %v2588_v12 = vld [vmem:[%s6119_s11 + $0x3e8] sm:$0xff]  ;;  %v2539_v9 = vld [vmem:[%s6119_s11 + $0x260] sm:$0xff] }
0x110e   :  { %v2243_v53 = vmax.f32 %v2172_v57, 0.0  ;;  %v2245_v22 = vmax.f32 %v2225_v51, 0.0  ;;  %v2612_v4 = vpack.c.bf16 %v2570_v13, %v2569_v11  ;;  %v2605_v15 = vpack.c.bf16 %v2556_v1, %v2555_v0  ;;  %v2571_v17 = vld [vmem:[%s6119_s11 + $0x360] sm:$0xff]  ;;  %v2572_v18 = vld [vmem:[%s6119_s11 + $0x368] sm:$0xff] }
0x110f   :  { %v2244_v2 = vmax.f32 %v2174_v19, 0.0  ;;  %v2246_v27 = vmax.f32 %v2227_v56, 0.0  ;;  %v2621_v57 = vpack.c.bf16 %v2588_v12, %v2587_v10  ;;  %v2597_v51 = vpack.c.bf16 %v2540_v16, %v2539_v9  ;;  %v2557_v56 = vld [vmem:[%s6119_s11 + $0x2f0] sm:$0xff] }
0x1110   :  { %v5161_v52 = vpack.c.bf16 %v2243_v53, %v2239_v58  ;;  %v5163_v28 = vpack.c.bf16 %v2245_v22, %v2241_v55  ;;  %3808 = vmatpush3.bf16.msra.mxu0 %v2612_v4  ;;  %3781 = vmatprep.subr.bf16.mxu1 %v2605_v15  ;;  %v2613_v19 = vpack.c.bf16 %v2572_v18, %v2571_v17  ;;  %v2558_v58 = vld [vmem:[%s6119_s11 + $0x2f8] sm:$0xff]  ;;  %v2589_v55 = vld [vmem:[%s6119_s11 + $0x3f0] sm:$0xff] }
0x1111   :  { %v5165_v29 = vpack.c.bf16 %v2244_v2, %v2240_v23  ;;  %v5167_v30 = vpack.c.bf16 %v2246_v27, %v2242_v26  ;;  %3809 = vmatprep.subr.bf16.mxu0 %v2621_v57  ;;  %3782 = vmatpush3.bf16.msra.mxu1 %v2597_v51  ;;  %v2606_v53 = vpack.c.bf16 %v2558_v58, %v2557_v56  ;;  %v2590_v22 = vld [vmem:[%s6119_s11 + $0x3f8] sm:$0xff]  ;;  %v2541_v23 = vld [vmem:[%s6119_s11 + $0x270] sm:$0xff] }
0x1112   :  { %v2542_v26 = vld [vmem:[%s6119_s11 + $0x278] sm:$0xff]  ;;  %v2622_v2 = vpack.c.bf16 %v2590_v22, %v2589_v55  ;;  %v5287_v0 = vrot.slane %v2383_v40, %v5130_v8  ;;  %v5290_v1 = vrot.slane %v2383_v40, %v5132_v47  ;;  %v5295_v12 = vrot.slane %v2383_v40, %v5137_v60 }
0x1113   :  { %v2598_v27 = vpack.c.bf16 %v2542_v26, %v2541_v23  ;;  %3783 = vmatprep.subr.bf16.mxu1 %v2606_v53  ;;  %v5298_v9 = vrot.slane %v2383_v40, %v5139_v62 }
0x1114   :  { %3810 = vmatpush3.bf16.msra.mxu0 %v2613_v19 }
0x1115   :  { %3811 = vmatprep.subr.bf16.mxu0 %v2622_v2  ;;  %3784 = vmatpush3.bf16.msra.mxu1 %v2598_v27 }
0x1116   :  { %3825 = vmatprep.subr.bf16.mxu1 %v2327_v35 }
0x1118   :  { %3812 = vmatpush3.bf16.msra.mxu0 %v2614_v33 }
0x1119   :  { %3853 = vmatprep.subr.bf16.mxu0 %v2343_v37  ;;  %v2256_v37 = vld [vmem:[%s6119_s11 + $0x8] sm:$0xff] }
0x119a   :  { %v2177_v38 = vpop.f32.mrb[24].mxu1  ;;  %v2230_v39 = vpop.f32.mrb[24].mxu0 }
0x119b   :  { %v2178_v41 = vadd.f32 %v2177_v38, %v5142_v63  ;;  %v2231_v50 = vadd.f32 %v2230_v39, %v5145_v3  ;;  %v2179_v42 = vpop.f32.mrb[25].mxu1  ;;  %v2232_v43 = vpop.f32.mrb[25].mxu0  ;;  %v2287_v38 = vld [vmem:[%s6119_s11 + $0x100] sm:$0xff] }
0x119c   :  { %v2180_v44 = vadd.f32 %v2179_v42, %v5148_v6  ;;  %v2233_v45 = vadd.f32 %v2232_v43, %v5151_v7  ;;  %v2181_v25 = vpop.f32.mrb[26].mxu1  ;;  %v2234_v46 = vpop.f32.mrb[26].mxu0  ;;  %v2274_v42 = vld [vmem:[%s6119_s11 + $0x98] sm:$0xff] }
0x119d   :  { %v2182_v48 = vadd.f32 %v2181_v25, %v5142_v63  ;;  %v2235_v11 = vadd.f32 %v2234_v46, %v5145_v3  ;;  %v2183_v13 = vpop.f32.mrb[27].mxu1  ;;  %v2236_v4 = vpop.f32.mrb[27].mxu0  ;;  %v2247_v63 = vmax.f32 %v2178_v41, 0.0  ;;  %v2249_v3 = vmax.f32 %v2231_v50, 0.0  ;;  %v2288_v41 = vld [vmem:[%s6119_s11 + $0x108] sm:$0xff]  ;;  %v2273_v50 = vld [vmem:[%s6119_s11 + $0x90] sm:$0xff] }
0x119e   :  { %v2184_v10 = vadd.f32 %v2183_v13, %v5148_v6  ;;  %v2237_v15 = vadd.f32 %v2236_v4, %v5151_v7  ;;  %v2248_v51 = vmax.f32 %v2180_v44, 0.0  ;;  %v2250_v17 = vmax.f32 %v2233_v45, 0.0  ;;  %v2305_v46 = vld [vmem:[%s6119_s11 + $0x190] sm:$0xff] }
0x119f   :  { %v2251_v16 = vmax.f32 %v2182_v48, 0.0  ;;  %v2253_v57 = vmax.f32 %v2235_v11, 0.0  ;;  %v2306_v48 = vld [vmem:[%s6119_s11 + $0x198] sm:$0xff] }
0x11a0   :  { %v2252_v18 = vmax.f32 %v2184_v10, 0.0  ;;  %v2254_v19 = vmax.f32 %v2237_v15, 0.0  ;;  %v5343_v15 = vld [vmem:[%s6119_s11 + $0x10] sm:$0xff] }
0x11a1   :  { %v5300_v56 = vpack.c.bf16 %v2251_v16, %v2247_v63  ;;  %v5302_v58 = vpack.c.bf16 %v2253_v57, %v2249_v3  ;;  %v5348_v63 = vld [vmem:[%s6119_s11 + $0x18] sm:$0xff]  ;;  %v2319_v57 = vpack.c.bf16 %v2256_v37, %v2255_v36 }
0x11a2   :  { %v5304_v6 = vpack.c.bf16 %v2252_v18, %v2248_v51  ;;  %v5306_v7 = vpack.c.bf16 %v2254_v19, %v2250_v17  ;;  %v2439_v55 = vpop.f32.mrb[28].mxu1  ;;  %v2492_v53 = vpop.f32.mrb[28].mxu0  ;;  %v2289_v51 = vld [vmem:[%s6119_s11 + $0x110] sm:$0xff]  ;;  %v2290_v17 = vld [vmem:[%s6119_s11 + $0x118] sm:$0xff] }
0x11a3   :  { %v2440_v22 = vadd.f32 %v2439_v55, %v5287_v0  ;;  %v2493_v23 = vadd.f32 %v2492_v53, %v5290_v1  ;;  %v2441_v26 = vpop.f32.mrb[29].mxu1  ;;  %v2494_v2 = vpop.f32.mrb[29].mxu0 }
0x11a4   :  { %v2442_v27 = vadd.f32 %v2441_v26, %v5295_v12  ;;  %v2495_v31 = vadd.f32 %v2494_v2, %v5298_v9  ;;  %v2443_v32 = vpop.f32.mrb[30].mxu1  ;;  %v2496_v33 = vpop.f32.mrb[30].mxu0  ;;  %v2275_v26 = vld [vmem:[%s6119_s11 + $0xa0] sm:$0xff]  ;;  %v2276_v2 = vld [vmem:[%s6119_s11 + $0xa8] sm:$0xff] }
0x11a5   :  { %v2444_v54 = vadd.f32 %v2443_v32, %v5287_v0  ;;  %v2497_v5 = vadd.f32 %v2496_v33, %v5290_v1  ;;  %v2445_v34 = vpop.f32.mrb[31].mxu1  ;;  %v2498_v35 = vpop.f32.mrb[31].mxu0  ;;  %v2511_v43 = vmax.f32 %v2440_v22, 0.0  ;;  %v2513_v44 = vmax.f32 %v2493_v23, 0.0 }
0x11a6   :  { %v2446_v39 = vadd.f32 %v2445_v34, %v5295_v12  ;;  %v2499_v40 = vadd.f32 %v2498_v35, %v5298_v9  ;;  %v2512_v11 = vmax.f32 %v2442_v27, 0.0  ;;  %v2514_v13 = vmax.f32 %v2495_v31, 0.0  ;;  %v2307_v34 = vld [vmem:[%s6119_s11 + $0x1a0] sm:$0xff]  ;;  %v2308_v35 = vld [vmem:[%s6119_s11 + $0x1a8] sm:$0xff] }
0x11a7   :  { %v2515_v45 = vmax.f32 %v2444_v54, 0.0  ;;  %v2517_v25 = vmax.f32 %v2497_v5, 0.0  ;;  %v2335_v22 = vpack.c.bf16 %v2288_v41, %v2287_v38  ;;  %v2328_v23 = vpack.c.bf16 %v2274_v42, %v2273_v50 }
0x11a8   :  { %v2516_v4 = vmax.f32 %v2446_v39, 0.0  ;;  %v2518_v10 = vmax.f32 %v2499_v40, 0.0  ;;  %v2344_v54 = vpack.c.bf16 %v2306_v48, %v2305_v46  ;;  %v2320_v5 = vpack.c.bf16 %v5348_v63, %v5343_v15  ;;  %v2259_v48 = vld [vmem:[%s6119_s11 + $0x20] sm:$0xff] }
0x11a9   :  { %v2623_v3 = vpack.c.bf16 %v2515_v45, %v2511_v43  ;;  %v2625_v16 = vpack.c.bf16 %v2517_v25, %v2513_v44  ;;  %v2336_v40 = vpack.c.bf16 %v2290_v17, %v2289_v51  ;;  %v2329_v44 = vpack.c.bf16 %v2276_v2, %v2275_v26  ;;  %v2261_v26 = vld [vmem:[%s6119_s11 + $0x30] sm:$0xff]  ;;  %v2262_v2 = vld [vmem:[%s6119_s11 + $0x38] sm:$0xff] }
0x11aa   :  { %v2624_v18 = vpack.c.bf16 %v2516_v4, %v2512_v11  ;;  %v2626_v19 = vpack.c.bf16 %v2518_v10, %v2514_v13  ;;  %v2449_v55 = vpop.f32.mrb[32].mxu1  ;;  %v2502_v53 = vpop.f32.mrb[32].mxu0  ;;  %v2345_v46 = vpack.c.bf16 %v2308_v35, %v2307_v34  ;;  %v2311_v34 = vld [vmem:[%s6119_s11 + $0x1c0] sm:$0xff]  ;;  %v2312_v35 = vld [vmem:[%s6119_s11 + $0x1c8] sm:$0xff] }
0x11ab   :  { %v2450_v27 = vadd.f32 %v2449_v55, %v5287_v0  ;;  %v2503_v31 = vadd.f32 %v2502_v53, %v5290_v1  ;;  %v2451_v32 = vpop.f32.mrb[33].mxu1  ;;  %v2504_v33 = vpop.f32.mrb[33].mxu0  ;;  %v2310_v55 = vld [vmem:[%s6119_s11 + $0x1b8] sm:$0xff] }
0x11ac   :  { %v2452_v36 = vadd.f32 %v2451_v32, %v5295_v12  ;;  %v2505_v37 = vadd.f32 %v2504_v33, %v5298_v9  ;;  %v2453_v38 = vpop.f32.mrb[34].mxu1  ;;  %v2506_v39 = vpop.f32.mrb[34].mxu0  ;;  %2663 = vmatprep.mubr.bf16.mxu1 %v2624_v18  ;;  %2712 = vmatprep.mubr.bf16.mxu0 %v2626_v19  ;;  %v2278_v18 = vld [vmem:[%s6119_s11 + $0xb8] sm:$0xff]  ;;  %v2309_v19 = vld [vmem:[%s6119_s11 + $0x1b0] sm:$0xff]  ;;  %v2279_v32 = vld [vmem:[%s6119_s11 + $0xc0] sm:$0xff] }
0x11ad   :  { %v2454_v41 = vadd.f32 %v2453_v38, %v5287_v0  ;;  %v2507_v50 = vadd.f32 %v2506_v39, %v5290_v1  ;;  %v2455_v42 = vpop.f32.mrb[35].mxu1  ;;  %v2508_v43 = vpop.f32.mrb[35].mxu0  ;;  %2664 = vmatmul.mubr.bf16.vlgmr.msra.gmra.mrb[36].mxu1 %v2623_v3  ;;  %2713 = vmatmul.mubr.bf16.vlgmr.msra.gmra.mrb[36].mxu0 %v2625_v16  ;;  %v2260_v0 = vld [vmem:[%s6119_s11 + $0x28] sm:$0xff]  ;;  %v2519_v1 = vmax.f32 %v2450_v27, 0.0  ;;  %v2521_v11 = vmax.f32 %v2503_v31, 0.0  ;;  %v2277_v16 = vld [vmem:[%s6119_s11 + $0xb0] sm:$0xff] }
0x11ae   :  { %v2456_v45 = vadd.f32 %v2455_v42, %v5295_v12  ;;  %v2509_v25 = vadd.f32 %v2508_v43, %v5298_v9  ;;  %3826 = vmatpush3.bf16.msra.mxu1 %v2319_v57  ;;  %3854 = vmatpush3.bf16.msra.mxu0 %v2335_v22  ;;  %v2291_v12 = vld [vmem:[%s6119_s11 + $0x120] sm:$0xff]  ;;  %v2292_v9 = vld [vmem:[%s6119_s11 + $0x128] sm:$0xff]  ;;  %v2520_v10 = vmax.f32 %v2452_v36, 0.0  ;;  %v2522_v15 = vmax.f32 %v2505_v37, 0.0  ;;  %v2293_v27 = vld [vmem:[%s6119_s11 + $0x130] sm:$0xff] }
0x11af   :  { %v2523_v13 = vmax.f32 %v2454_v41, 0.0  ;;  %v2525_v4 = vmax.f32 %v2507_v50, 0.0  ;;  %3827 = vmatprep.subr.bf16.mxu1 %v2328_v23  ;;  %3855 = vmatprep.subr.bf16.mxu0 %v2344_v54  ;;  %v2321_v17 = vpack.c.bf16 %v2260_v0, %v2259_v48  ;;  %v2337_v23 = vpack.c.bf16 %v2292_v9, %v2291_v12  ;;  %v2294_v31 = vld [vmem:[%s6119_s11 + $0x138] sm:$0xff]  ;;  %v2263_v38 = vld [vmem:[%s6119_s11 + $0x40] sm:$0xff]  ;;  %v2264_v39 = vld [vmem:[%s6119_s11 + $0x48] sm:$0xff] }
0x11b0   :  { %v2524_v63 = vmax.f32 %v2456_v45, 0.0  ;;  %v2526_v3 = vmax.f32 %v2509_v25, 0.0  ;;  %v2330_v33 = vpack.c.bf16 %v2278_v18, %v2277_v16  ;;  %v2346_v54 = vpack.c.bf16 %v2310_v55, %v2309_v19  ;;  %v2295_v50 = vld [vmem:[%s6119_s11 + $0x140] sm:$0xff]  ;;  %v2296_v42 = vld [vmem:[%s6119_s11 + $0x148] sm:$0xff]  ;;  %v2281_v43 = vld [vmem:[%s6119_s11 + $0xd0] sm:$0xff] }
0x11b1   :  { %v2627_v57 = vpack.c.bf16 %v2523_v13, %v2519_v1  ;;  %v2629_v51 = vpack.c.bf16 %v2525_v4, %v2521_v11  ;;  %v2322_v36 = vpack.c.bf16 %v2262_v2, %v2261_v26  ;;  %v2338_v37 = vpack.c.bf16 %v2294_v31, %v2293_v27  ;;  %v2266_v48 = vld [vmem:[%s6119_s11 + $0x58] sm:$0xff]  ;;  %v2297_v11 = vld [vmem:[%s6119_s11 + $0x150] sm:$0xff]  ;;  %v2283_v4 = vld [vmem:[%s6119_s11 + $0xe0] sm:$0xff] }
0x11b2   :  { %v2628_v53 = vpack.c.bf16 %v2524_v63, %v2520_v10  ;;  %v2630_v22 = vpack.c.bf16 %v2526_v3, %v2522_v15  ;;  %3828 = vmatpush3.bf16.msra.mxu1 %v2320_v5  ;;  %3856 = vmatpush3.bf16.msra.mxu0 %v2336_v40  ;;  %v2280_v5 = vld [vmem:[%s6119_s11 + $0xc8] sm:$0xff]  ;;  %v2347_v41 = vpack.c.bf16 %v2312_v35, %v2311_v34  ;;  %v2298_v13 = vld [vmem:[%s6119_s11 + $0x158] sm:$0xff]  ;;  %v2315_v9 = vld [vmem:[%s6119_s11 + $0x1e0] sm:$0xff] }
0x11b3   :  { %3829 = vmatprep.subr.bf16.mxu1 %v2329_v44  ;;  %3857 = vmatprep.subr.bf16.mxu0 %v2345_v46  ;;  %v2331_v40 = vpack.c.bf16 %v2280_v5, %v2279_v32  ;;  %v2314_v44 = vld [vmem:[%s6119_s11 + $0x1d8] sm:$0xff]  ;;  %v2323_v45 = vpack.c.bf16 %v2264_v39, %v2263_v38  ;;  %v2339_v25 = vpack.c.bf16 %v2296_v42, %v2295_v50  ;;  %v2265_v46 = vld [vmem:[%s6119_s11 + $0x50] sm:$0xff]  ;;  %v2284_v12 = vld [vmem:[%s6119_s11 + $0xe8] sm:$0xff] }
0x11b4   :  { %2671 = vmatprep.mubr.bf16.mxu1 %v2628_v53  ;;  %2720 = vmatprep.mubr.bf16.mxu0 %v2630_v22  ;;  %v2316_v10 = vld [vmem:[%s6119_s11 + $0x1e8] sm:$0xff]  ;;  %v2324_v15 = vpack.c.bf16 %v2266_v48, %v2265_v46  ;;  %v2340_v63 = vpack.c.bf16 %v2298_v13, %v2297_v11  ;;  %v2267_v3 = vld [vmem:[%s6119_s11 + $0x60] sm:$0xff]  ;;  %v2285_v19 = vld [vmem:[%s6119_s11 + $0xf0] sm:$0xff] }
0x11b5   :  { %2672 = vmatmul.mubr.bf16.gmra.mrb[40].mxu1 %v2627_v57  ;;  %2721 = vmatmul.mubr.bf16.gmra.mrb[40].mxu0 %v2629_v51  ;;  %v2268_v16 = vld [vmem:[%s6119_s11 + $0x68] sm:$0xff]  ;;  %v2333_v57 = vpack.c.bf16 %v2284_v12, %v2283_v4  ;;  %v2349_v51 = vpack.c.bf16 %v2316_v10, %v2315_v9  ;;  %v2286_v55 = vld [vmem:[%s6119_s11 + $0xf8] sm:$0xff]  ;;  %v2317_v53 = vld [vmem:[%s6119_s11 + $0x1f0] sm:$0xff] }
0x11b6   :  { %3830 = vmatpush3.bf16.msra.mxu1 %v2321_v17  ;;  %3858 = vmatpush3.bf16.msra.mxu0 %v2337_v23  ;;  %v2299_v17 = vld [vmem:[%s6119_s11 + $0x160] sm:$0xff]  ;;  %v2300_v18 = vld [vmem:[%s6119_s11 + $0x168] sm:$0xff]  ;;  %v2318_v22 = vld [vmem:[%s6119_s11 + $0x1f8] sm:$0xff]  ;;  %v2325_v23 = vpack.c.bf16 %v2268_v16, %v2267_v3  ;;  %v2334_v31 = vpack.c.bf16 %v2286_v55, %v2285_v19 }
0x11b7   :  { %2761 = vmatprep.mubr.bf16.mxu1 %v5165_v29  ;;  %2810 = vmatprep.mubr.bf16.mxu0 %v5167_v30  ;;  %v2282_v29 = vld [vmem:[%s6119_s11 + $0xd8] sm:$0xff]  ;;  %v2313_v30 = vld [vmem:[%s6119_s11 + $0x1d0] sm:$0xff]  ;;  %v2341_v26 = vpack.c.bf16 %v2300_v18, %v2299_v17  ;;  %v2350_v32 = vpack.c.bf16 %v2318_v22, %v2317_v53  ;;  %v2828_v5 = vld [vmem:[%s6117_s9 + $0x48] sm:$0xff] }
0x11b8   :  { %3831 = vmatprep.subr.bf16.mxu1 %v2330_v33  ;;  %3859 = vmatprep.subr.bf16.mxu0 %v2346_v54  ;;  %v2332_v0 = vpack.c.bf16 %v2282_v29, %v2281_v43  ;;  %v2348_v1 = vpack.c.bf16 %v2314_v44, %v2313_v30  ;;  %v2269_v2 = vld [vmem:[%s6119_s11 + $0x70] sm:$0xff]  ;;  %v2270_v27 = vld [vmem:[%s6119_s11 + $0x78] sm:$0xff]  ;;  %v2832_v34 = vld [vmem:[%s6117_s9 + $0xc8] sm:$0xff] }
0x11b9   :  { %v2301_v33 = vld [vmem:[%s6119_s11 + $0x170] sm:$0xff]  ;;  %v2302_v54 = vld [vmem:[%s6119_s11 + $0x178] sm:$0xff]  ;;  %v2844_v39 = vpack.c.bf16 %v2832_v34, %v2828_v5  ;;  %v2831_v50 = vld [vmem:[%s6117_s9 + $0xc0] sm:$0xff] }
0x11ba   :  { %3832 = vmatpush3.bf16.msra.mxu1 %v2322_v36  ;;  %3860 = vmatpush3.bf16.msra.mxu0 %v2338_v37  ;;  %v2830_v35 = vld [vmem:[%s6117_s9 + $0x58] sm:$0xff]  ;;  %v2326_v37 = vpack.c.bf16 %v2270_v27, %v2269_v2  ;;  %v2342_v38 = vpack.c.bf16 %v2302_v54, %v2301_v33  ;;  %v2829_v42 = vld [vmem:[%s6117_s9 + $0x50] sm:$0xff]  ;;  %v2836_v29 = vld [vmem:[%s6117_s9 + $0x148] sm:$0xff] }
0x11bb   :  { %3833 = vmatprep.subr.bf16.mxu1 %v2331_v40  ;;  %3861 = vmatprep.subr.bf16.mxu0 %v2347_v41  ;;  %v2834_v36 = vld [vmem:[%s6117_s9 + $0xd8] sm:$0xff]  ;;  %v2827_v41 = vld [vmem:[%s6117_s9 + $0x40] sm:$0xff]  ;;  %v2833_v43 = vld [vmem:[%s6117_s9 + $0xd0] sm:$0xff] }
0x11bc   :  { %v2846_v40 = vpack.c.bf16 %v2834_v36, %v2830_v35  ;;  %v2840_v30 = vld [vmem:[%s6117_s9 + $0x1c8] sm:$0xff]  ;;  %v2838_v44 = vld [vmem:[%s6117_s9 + $0x158] sm:$0xff]  ;;  %v2845_v46 = vpack.c.bf16 %v2833_v43, %v2829_v42  ;;  %v2835_v48 = vld [vmem:[%s6117_s9 + $0x140] sm:$0xff] }
0x11bd   :  { %v2839_v11 = vld [vmem:[%s6117_s9 + $0x1c0] sm:$0xff]  ;;  %v2837_v13 = vld [vmem:[%s6117_s9 + $0x150] sm:$0xff]  ;;  %v2996_v10 = vld [vmem:[%s6119_s11 + $0x408] sm:$0xff] }
0x11be   :  { %3834 = vmatpush3.bf16.msra.mxu1 %v2323_v45  ;;  %3862 = vmatpush3.bf16.msra.mxu0 %v2339_v25  ;;  %v2842_v45 = vld [vmem:[%s6117_s9 + $0x1d8] sm:$0xff]  ;;  %v2843_v25 = vpack.c.bf16 %v2831_v50, %v2827_v41  ;;  %v2841_v4 = vld [vmem:[%s6117_s9 + $0x1d0] sm:$0xff]  ;;  %v2847_v12 = vpack.c.bf16 %v2839_v11, %v2835_v48  ;;  %v3027_v3 = vld [vmem:[%s6119_s11 + $0x500] sm:$0xff] }
0x11bf   :  { %3835 = vmatprep.subr.bf16.mxu1 %v2332_v0  ;;  %3863 = vmatprep.subr.bf16.mxu0 %v2348_v1  ;;  %v2848_v0 = vpack.c.bf16 %v2840_v30, %v2836_v29  ;;  %v2850_v1 = vpack.c.bf16 %v2842_v45, %v2838_v44  ;;  %v2849_v9 = vpack.c.bf16 %v2841_v4, %v2837_v13  ;;  %v3028_v16 = vld [vmem:[%s6119_s11 + $0x508] sm:$0xff]  ;;  %v3014_v17 = vld [vmem:[%s6119_s11 + $0x498] sm:$0xff]  ;;  %v3045_v18 = vld [vmem:[%s6119_s11 + $0x590] sm:$0xff] }
0x11c0   :  { %v3046_v19 = vld [vmem:[%s6119_s11 + $0x598] sm:$0xff]  ;;  %v2997_v22 = vld [vmem:[%s6119_s11 + $0x410] sm:$0xff]  ;;  %v3016_v33 = vld [vmem:[%s6119_s11 + $0x4a8] sm:$0xff] }
0x11c1   :  { %v3084_v53 = vpack.c.bf16 %v3046_v19, %v3045_v18  ;;  %v3030_v27 = vld [vmem:[%s6119_s11 + $0x518] sm:$0xff]  ;;  %v3047_v54 = vld [vmem:[%s6119_s11 + $0x5a0] sm:$0xff]  ;;  %v3048_v34 = vld [vmem:[%s6119_s11 + $0x5a8] sm:$0xff] }
0x11c2   :  { %3836 = vmatpush3.bf16.msra.mxu1 %v2324_v15  ;;  %3864 = vmatpush3.bf16.msra.mxu0 %v2340_v63  ;;  %v2999_v35 = vld [vmem:[%s6119_s11 + $0x420] sm:$0xff]  ;;  %v3000_v36 = vld [vmem:[%s6119_s11 + $0x428] sm:$0xff]  ;;  %v3017_v50 = vld [vmem:[%s6119_s11 + $0x4b0] sm:$0xff] }
0x11c3   :  { %3837 = vmatprep.subr.bf16.mxu1 %v2333_v57  ;;  %3865 = vmatprep.subr.bf16.mxu0 %v2349_v51  ;;  %v3013_v57 = vld [vmem:[%s6119_s11 + $0x490] sm:$0xff]  ;;  %v3075_v51 = vpack.c.bf16 %v3028_v16, %v3027_v3  ;;  %v3018_v42 = vld [vmem:[%s6119_s11 + $0x4b8] sm:$0xff]  ;;  %v3019_v11 = vld [vmem:[%s6119_s11 + $0x4c0] sm:$0xff] }
0x11c4   :  { %v3068_v55 = vpack.c.bf16 %v3014_v17, %v3013_v57  ;;  %v3049_v43 = vld [vmem:[%s6119_s11 + $0x5b0] sm:$0xff]  ;;  %v3070_v29 = vpack.c.bf16 %v3018_v42, %v3017_v50  ;;  %v3050_v30 = vld [vmem:[%s6119_s11 + $0x5b8] sm:$0xff]  ;;  %v3020_v13 = vld [vmem:[%s6119_s11 + $0x4c8] sm:$0xff] }
0x11c5   :  { %v3001_v44 = vld [vmem:[%s6119_s11 + $0x430] sm:$0xff]  ;;  %v3002_v45 = vld [vmem:[%s6119_s11 + $0x438] sm:$0xff]  ;;  %v3051_v4 = vld [vmem:[%s6119_s11 + $0x5c0] sm:$0xff] }
0x11c6   :  { %3838 = vmatpush3.bf16.msra.mxu1 %v2325_v23  ;;  %3866 = vmatpush3.bf16.msra.mxu0 %v2341_v26  ;;  %v2998_v23 = vld [vmem:[%s6119_s11 + $0x418] sm:$0xff]  ;;  %v3029_v26 = vld [vmem:[%s6119_s11 + $0x510] sm:$0xff] }
0x11c7   :  { %3839 = vmatprep.subr.bf16.mxu1 %v2334_v31  ;;  %3867 = vmatprep.subr.bf16.mxu0 %v2350_v32  ;;  %v3060_v2 = vpack.c.bf16 %v2998_v23, %v2997_v22  ;;  %v3076_v31 = vpack.c.bf16 %v3030_v27, %v3029_v26  ;;  %v3015_v32 = vld [vmem:[%s6119_s11 + $0x4a0] sm:$0xff]  ;;  %v3033_v48 = vld [vmem:[%s6119_s11 + $0x530] sm:$0xff]  ;;  %v3054_v57 = vld [vmem:[%s6119_s11 + $0x5d8] sm:$0xff] }
0x11c8   :  { %v3069_v5 = vpack.c.bf16 %v3016_v33, %v3015_v32  ;;  %v3053_v3 = vld [vmem:[%s6119_s11 + $0x5d0] sm:$0xff]  ;;  %v3006_v17 = vld [vmem:[%s6119_s11 + $0x458] sm:$0xff]  ;;  %v3023_v23 = vld [vmem:[%s6119_s11 + $0x4e0] sm:$0xff] }
0x11c9   :  { %v3088_v18 = vpack.c.bf16 %v3054_v57, %v3053_v3  ;;  %v3024_v26 = vld [vmem:[%s6119_s11 + $0x4e8] sm:$0xff]  ;;  %v3007_v32 = vld [vmem:[%s6119_s11 + $0x460] sm:$0xff]  ;;  %v3009_v50 = vld [vmem:[%s6119_s11 + $0x470] sm:$0xff] }
0x11ca   :  { %3840 = vmatpush3.bf16.msra.mxu1 %v2326_v37  ;;  %3868 = vmatpush3.bf16.msra.mxu0 %v2342_v38  ;;  %v3085_v37 = vpack.c.bf16 %v3048_v34, %v3047_v54  ;;  %v3061_v38 = vpack.c.bf16 %v3000_v36, %v2999_v35  ;;  %v3073_v27 = vpack.c.bf16 %v3024_v26, %v3023_v23  ;;  %v3008_v33 = vld [vmem:[%s6119_s11 + $0x468] sm:$0xff]  ;;  %v3039_v34 = vld [vmem:[%s6119_s11 + $0x560] sm:$0xff]  ;;  %v3010_v42 = vld [vmem:[%s6119_s11 + $0x478] sm:$0xff] }
0x11cb   :  { %2873 = vmatprep.subr.bf16.mxu1 %v2844_v39  ;;  %2926 = vmatprep.subr.bf16.mxu0 %v2846_v40  ;;  %v3031_v39 = vld [vmem:[%s6119_s11 + $0x520] sm:$0xff]  ;;  %v3032_v40 = vld [vmem:[%s6119_s11 + $0x528] sm:$0xff] }
0x11cc   :  { %v3077_v41 = vpack.c.bf16 %v3032_v40, %v3031_v39  ;;  %v3040_v35 = vld [vmem:[%s6119_s11 + $0x568] sm:$0xff]  ;;  %v3057_v39 = vld [vmem:[%s6119_s11 + $0x5f0] sm:$0xff] }
0x11cd   :  { %2762 = vmatmul.mubr.bf16.vlgmr.msra.gmra.mrb[44].mxu1 %v5161_v52  ;;  %2811 = vmatmul.mubr.bf16.vlgmr.msra.gmra.mrb[44].mxu0 %v5163_v28  ;;  %v3011_v52 = vld [vmem:[%s6119_s11 + $0x480] sm:$0xff]  ;;  %v3012_v28 = vld [vmem:[%s6119_s11 + $0x488] sm:$0xff]  ;;  %v3081_v36 = vpack.c.bf16 %v3040_v35, %v3039_v34 }
0x11ce   :  { %2769 = vmatprep.mubr.bf16.mxu1 %v5304_v6  ;;  %2818 = vmatprep.mubr.bf16.mxu0 %v5306_v7  ;;  %v3044_v6 = vld [vmem:[%s6119_s11 + $0x588] sm:$0xff]  ;;  %v2995_v7 = vld [vmem:[%s6119_s11 + $0x400] sm:$0xff] }
0x11cf   :  { %2874 = vmatpush1.bf16.msra.mxu1 %v2843_v25  ;;  %2927 = vmatpush1.bf16.msra.mxu0 %v2845_v46  ;;  %v3059_v63 = vpack.c.bf16 %v2996_v10, %v2995_v7  ;;  %v3086_v25 = vpack.c.bf16 %v3050_v30, %v3049_v43  ;;  %v3062_v46 = vpack.c.bf16 %v3002_v45, %v3001_v44  ;;  %v3036_v7 = vld [vmem:[%s6119_s11 + $0x548] sm:$0xff]  ;;  %v3041_v30 = vld [vmem:[%s6119_s11 + $0x570] sm:$0xff]  ;;  %v3042_v44 = vld [vmem:[%s6119_s11 + $0x578] sm:$0xff] }
0x11d0   :  { %2875 = vmatprep.subr.bf16.mxu1 %v2848_v0  ;;  %2928 = vmatprep.subr.bf16.mxu0 %v2850_v1  ;;  %v3034_v0 = vld [vmem:[%s6119_s11 + $0x538] sm:$0xff]  ;;  %v3082_v45 = vpack.c.bf16 %v3042_v44, %v3041_v30 }
0x11d1   :  { %v3078_v1 = vpack.c.bf16 %v3034_v0, %v3033_v48  ;;  %v3204_v48 = vld [vmem:[%s6117_s9 + $0x78] sm:$0xff] }
0x11d3   :  { %2876 = vmatpush1.bf16.msra.mxu1 %v2847_v12  ;;  %2929 = vmatpush1.bf16.msra.mxu0 %v2849_v9  ;;  %v3071_v12 = vpack.c.bf16 %v3020_v13, %v3019_v11  ;;  %v3052_v9 = vld [vmem:[%s6119_s11 + $0x5c8] sm:$0xff] }
0x11d5   :  { %2770 = vmatmul.mubr.bf16.gmra.mrb[48].mxu1 %v5300_v56  ;;  %2819 = vmatmul.mubr.bf16.gmra.mrb[48].mxu0 %v5302_v58  ;;  %v3043_v56 = vld [vmem:[%s6119_s11 + $0x580] sm:$0xff]  ;;  %v3067_v58 = vpack.c.bf16 %v3012_v28, %v3011_v52  ;;  %v3004_v28 = vld [vmem:[%s6119_s11 + $0x448] sm:$0xff] }
0x11d6   :  { %2905 = vmatprep.mubr.bf16.mxu1 %v4448_v49  ;;  %2958 = vmatprep.mubr.bf16.mxu0 %v4448_v49  ;;  %v3083_v15 = vpack.c.bf16 %v3044_v6, %v3043_v56  ;;  %v3003_v52 = vld [vmem:[%s6119_s11 + $0x440] sm:$0xff]  ;;  %v3087_v56 = vpack.c.bf16 %v3052_v9, %v3051_v4 }
0x11d7   :  { %3881 = vmatprep.subr.bf16.mxu1 %v3067_v58  ;;  %v3063_v58 = vpack.c.bf16 %v3004_v28, %v3003_v52  ;;  %v3035_v6 = vld [vmem:[%s6119_s11 + $0x540] sm:$0xff] }
0x11d8   :  { %3909 = vmatprep.subr.bf16.mxu0 %v3083_v15  ;;  %v3079_v10 = vpack.c.bf16 %v3036_v7, %v3035_v6  ;;  %v3021_v15 = vld [vmem:[%s6119_s11 + $0x4d0] sm:$0xff] }
0x11dd   :  { %3680 = vmatmul.mubr.msk.bf16.vlgmr.msra.gmra.mrb[52].mxu1 %vm52_vm0, %v4954_v20  ;;  %3682 = vmatmul.mubr.msk.bf16.vlgmr.msra.gmra.mrb[52].mxu0 %vm52_vm0, %v4954_v20 }
0x11de   :  { %2915 = vmatprep.mubr.bf16.mxu1 %v4448_v49  ;;  %2968 = vmatprep.mubr.bf16.mxu0 %v4448_v49 }
0x11df   :  { %3882 = vmatpush3.bf16.msra.mxu1 %v3059_v63  ;;  %3910 = vmatpush3.bf16.msra.mxu0 %v3075_v51  ;;  %v3022_v63 = vld [vmem:[%s6119_s11 + $0x4d8] sm:$0xff]  ;;  %v3005_v51 = vld [vmem:[%s6119_s11 + $0x450] sm:$0xff] }
0x11e0   :  { %3883 = vmatprep.subr.bf16.mxu1 %v3068_v55  ;;  %3911 = vmatprep.subr.bf16.mxu0 %v3084_v53  ;;  %v3072_v16 = vpack.c.bf16 %v3022_v63, %v3021_v15  ;;  %v3064_v19 = vpack.c.bf16 %v3006_v17, %v3005_v51  ;;  %v3037_v55 = vld [vmem:[%s6119_s11 + $0x550] sm:$0xff]  ;;  %v3038_v53 = vld [vmem:[%s6119_s11 + $0x558] sm:$0xff] }
0x11e1   :  { %v3080_v22 = vpack.c.bf16 %v3038_v53, %v3037_v55 }
0x11e3   :  { %3884 = vmatpush3.bf16.msra.mxu1 %v3060_v2  ;;  %3912 = vmatpush3.bf16.msra.mxu0 %v3076_v31  ;;  %v3055_v2 = vld [vmem:[%s6119_s11 + $0x5e0] sm:$0xff]  ;;  %v3056_v31 = vld [vmem:[%s6119_s11 + $0x5e8] sm:$0xff] }
0x11e4   :  { %3885 = vmatprep.subr.bf16.mxu1 %v3069_v5  ;;  %3913 = vmatprep.subr.bf16.mxu0 %v3085_v37  ;;  %v3089_v54 = vpack.c.bf16 %v3056_v31, %v3055_v2  ;;  %v3065_v5 = vpack.c.bf16 %v3008_v33, %v3007_v32  ;;  %v3025_v37 = vld [vmem:[%s6119_s11 + $0x4f0] sm:$0xff] }
0x11e5   :  { %3681 = vmatmul.mubr.msk.bf16.gmra.mrb[56].mxu1 %vm52_vm0, %v5028_v14  ;;  %3683 = vmatmul.mubr.msk.bf16.gmra.mrb[56].mxu0 %vm52_vm0, %v5028_v14 }
0x11e7   :  { %3886 = vmatpush3.bf16.msra.mxu1 %v3061_v38  ;;  %3914 = vmatpush3.bf16.msra.mxu0 %v3077_v41  ;;  %v3026_v38 = vld [vmem:[%s6119_s11 + $0x4f8] sm:$0xff] }
0x11e8   :  { %3887 = vmatprep.subr.bf16.mxu1 %v3070_v29  ;;  %3915 = vmatprep.subr.bf16.mxu0 %v3086_v25  ;;  %v3074_v40 = vpack.c.bf16 %v3026_v38, %v3025_v37  ;;  %v3058_v41 = vld [vmem:[%s6119_s11 + $0x5f8] sm:$0xff]  ;;  %v3066_v29 = vpack.c.bf16 %v3010_v42, %v3009_v50  ;;  %v3202_v25 = vld [vmem:[%s6117_s9 + $0x68] sm:$0xff] }
0x11e9   :  { %v3090_v43 = vpack.c.bf16 %v3058_v41, %v3057_v39 }
0x11eb   :  { %3888 = vmatpush3.bf16.msra.mxu1 %v3062_v46  ;;  %3916 = vmatpush3.bf16.msra.mxu0 %v3078_v1  ;;  %v3206_v46 = vld [vmem:[%s6117_s9 + $0xe8] sm:$0xff]  ;;  %v3208_v1 = vld [vmem:[%s6117_s9 + $0xf8] sm:$0xff] }
0x11ec   :  { %3889 = vmatprep.subr.bf16.mxu1 %v3071_v12  ;;  %3917 = vmatprep.subr.bf16.mxu0 %v3087_v56  ;;  %v3218_v0 = vpack.c.bf16 %v3206_v46, %v3202_v25  ;;  %v3220_v11 = vpack.c.bf16 %v3208_v1, %v3204_v48 }
0x11ef   :  { %3890 = vmatpush3.bf16.msra.mxu1 %v3063_v58  ;;  %3918 = vmatpush3.bf16.msra.mxu0 %v3079_v10 }
0x11f0   :  { %3891 = vmatprep.subr.bf16.mxu1 %v3072_v16  ;;  %3919 = vmatprep.subr.bf16.mxu0 %v3088_v18 }
0x11f3   :  { %3892 = vmatpush3.bf16.msra.mxu1 %v3064_v19  ;;  %3920 = vmatpush3.bf16.msra.mxu0 %v3080_v22 }
0x11f4   :  { %3893 = vmatprep.subr.bf16.mxu1 %v3073_v27  ;;  %3921 = vmatprep.subr.bf16.mxu0 %v3089_v54 }
0x11f7   :  { %3894 = vmatpush3.bf16.msra.mxu1 %v3065_v5  ;;  %3922 = vmatpush3.bf16.msra.mxu0 %v3081_v36 }
0x11f8   :  { %3895 = vmatprep.subr.bf16.mxu1 %v3074_v40  ;;  %3923 = vmatprep.subr.bf16.mxu0 %v3090_v43 }
0x11fb   :  { %3896 = vmatpush3.bf16.msra.mxu1 %v3066_v29  ;;  %3924 = vmatpush3.bf16.msra.mxu0 %v3082_v45 }
0x11fc   :  { %3247 = vmatprep.subr.bf16.mxu1 %v3218_v0  ;;  %3300 = vmatprep.subr.bf16.mxu0 %v3220_v11  ;;  %v2851_v11 = vld [vmem:[%s6118_s10 + $0x8] sm:$0xf] }
0x1280   :  { %v3785_v13 = vpop.f32.mrb[36].mxu1  ;;  %v3813_v4 = vpop.f32.mrb[36].mxu0 }
0x1281   :  { %v3786_v12 = vpop.f32.mrb[37].mxu1  ;;  %v3814_v9 = vpop.f32.mrb[37].mxu0 }
0x1282   :  { %v3787_v52 = vadd.f32 %v3786_v12, %v3785_v13  ;;  %v3815_v28 = vadd.f32 %v3814_v9, %v3813_v4  ;;  %v3788_v56 = vpop.f32.mrb[38].mxu1  ;;  %v3816_v58 = vpop.f32.mrb[38].mxu0 }
0x1283   :  { %v3789_v6 = vpop.f32.mrb[39].mxu1  ;;  %v3817_v7 = vpop.f32.mrb[39].mxu0 }
0x1284   :  { %v2715_v10 = vadd.f32 %v3815_v28, %v3787_v52  ;;  %v3790_v15 = vadd.f32 %v3789_v6, %v3788_v56  ;;  %v3818_v63 = vadd.f32 %v3817_v7, %v3816_v58  ;;  %v5790_v28 = vrot.slane %v2851_v11, %v5130_v8 }
0x1285   :  { %v5793_v56 = vrot.slane %v2851_v11, %v5132_v47  ;;  %v5798_v7 = vrot.slane %v2851_v11, %v5137_v60 }
0x1286   :  { %v2718_v3 = vadd.f32 %v3818_v63, %v3790_v15 }
0x1288   :  { %v3791_v16 = vpop.f32.mrb[40].mxu1  ;;  %v3819_v57 = vpop.f32.mrb[40].mxu0 }
0x1289   :  { %v3792_v51 = vpop.f32.mrb[41].mxu1  ;;  %v3820_v17 = vpop.f32.mrb[41].mxu0 }
0x128a   :  { %v3793_v18 = vadd.f32 %v3792_v51, %v3791_v16  ;;  %v3821_v19 = vadd.f32 %v3820_v17, %v3819_v57  ;;  %v3794_v55 = vpop.f32.mrb[42].mxu1  ;;  %v3822_v53 = vpop.f32.mrb[42].mxu0 }
0x128b   :  { %v3795_v22 = vpop.f32.mrb[43].mxu1  ;;  %v3823_v23 = vpop.f32.mrb[43].mxu0 }
0x128c   :  { %v2723_v26 = vadd.f32 %v3821_v19, %v3793_v18  ;;  %v3796_v2 = vadd.f32 %v3795_v22, %v3794_v55  ;;  %v3824_v27 = vadd.f32 %v3823_v23, %v3822_v53 }
0x128e   :  { %v2726_v31 = vadd.f32 %v3824_v27, %v3796_v2  ;;  %v3201_v27 = vld [vmem:[%s6117_s9 + $0x60] sm:$0xff] }
0x12a0   :  { %v3841_v32 = vpop.f32.mrb[44].mxu1  ;;  %v3869_v33 = vpop.f32.mrb[44].mxu0 }
0x12a1   :  { %v3842_v54 = vpop.f32.mrb[45].mxu1  ;;  %v3870_v5 = vpop.f32.mrb[45].mxu0 }
0x12a2   :  { %v3843_v34 = vadd.f32 %v3842_v54, %v3841_v32  ;;  %v3871_v35 = vadd.f32 %v3870_v5, %v3869_v33  ;;  %v3844_v36 = vpop.f32.mrb[46].mxu1  ;;  %v3872_v37 = vpop.f32.mrb[46].mxu0  ;;  %v3203_v32 = vld [vmem:[%s6117_s9 + $0x70] sm:$0xff] }
0x12a3   :  { %v3845_v38 = vpop.f32.mrb[47].mxu1  ;;  %v3873_v39 = vpop.f32.mrb[47].mxu0  ;;  %v3207_v5 = vld [vmem:[%s6117_s9 + $0xf0] sm:$0xff] }
0x12a4   :  { %v2764_v40 = vadd.f32 %v3843_v34, %v2715_v10  ;;  %v3846_v41 = vadd.f32 %v3845_v38, %v3844_v36  ;;  %v3874_v50 = vadd.f32 %v3873_v39, %v3872_v37  ;;  %v5801_v10 = vrot.slane %v2851_v11, %v5139_v62  ;;  %v3210_v34 = vld [vmem:[%s6117_s9 + $0x168] sm:$0xff]  ;;  %v3215_v11 = vld [vmem:[%s6117_s9 + $0x1f0] sm:$0xff] }
0x12a6   :  { %v5782_v42 = vadd.f32 %v3871_v35, %v2764_v40  ;;  %v2767_v43 = vadd.f32 %v3846_v41, %v2718_v3  ;;  %v3214_v35 = vld [vmem:[%s6117_s9 + $0x1e8] sm:$0xff]  ;;  %v3212_v40 = vld [vmem:[%s6117_s9 + $0x178] sm:$0xff] }
0x12a7   :  { %v3216_v41 = vld [vmem:[%s6117_s9 + $0x1f8] sm:$0xff] }
0x12a8   :  { %v5784_v29 = vadd.f32 %v3874_v50, %v2767_v43  ;;  %v3847_v30 = vpop.f32.mrb[48].mxu1  ;;  %v3875_v44 = vpop.f32.mrb[48].mxu0 }
0x12a9   :  { %v3848_v45 = vpop.f32.mrb[49].mxu1  ;;  %v3876_v25 = vpop.f32.mrb[49].mxu0 }
0x12aa   :  { %v3849_v46 = vadd.f32 %v3848_v45, %v3847_v30  ;;  %v3877_v48 = vadd.f32 %v3876_v25, %v3875_v44  ;;  %v3850_v0 = vpop.f32.mrb[50].mxu1  ;;  %v3878_v1 = vpop.f32.mrb[50].mxu0  ;;  %v3209_v45 = vld [vmem:[%s6117_s9 + $0x160] sm:$0xff] }
0x12ab   :  { %v3851_v13 = vpop.f32.mrb[51].mxu1  ;;  %v3879_v4 = vpop.f32.mrb[51].mxu0  ;;  %v3213_v25 = vld [vmem:[%s6117_s9 + $0x1e0] sm:$0xff] }
0x12ac   :  { %v2772_v12 = vadd.f32 %v3849_v46, %v2723_v26  ;;  %v3852_v9 = vadd.f32 %v3851_v13, %v3850_v0  ;;  %v3880_v52 = vadd.f32 %v3879_v4, %v3878_v1  ;;  %v3211_v1 = vld [vmem:[%s6117_s9 + $0x170] sm:$0xff] }
0x12ae   :  { %v5795_v58 = vadd.f32 %v3877_v48, %v2772_v12  ;;  %v2775_v6 = vadd.f32 %v3852_v9, %v2726_v31  ;;  %v3205_v31 = vld [vmem:[%s6117_s9 + $0xe0] sm:$0xff] }
0x12af   :  { %v3217_v0 = vpack.c.bf16 %v3205_v31, %v3201_v27  ;;  %v3223_v27 = vpack.c.bf16 %v3215_v11, %v3211_v1  ;;  %v3419_v1 = vld [vmem:[%s6119_s11 + $0x790] sm:$0xff]  ;;  %v3420_v11 = vld [vmem:[%s6119_s11 + $0x798] sm:$0xff] }
0x12b0   :  { %v5803_v15 = vadd.f32 %v3880_v52, %v2775_v6  ;;  %v2907_v63 = vpop.f32.mrb[52].mxu1  ;;  %v2960_v3 = vpop.f32.mrb[52].mxu0  ;;  %v3219_v52 = vpack.c.bf16 %v3207_v5, %v3203_v32  ;;  %v3222_v6 = vpack.c.bf16 %v3214_v35, %v3210_v34 }
0x12b1   :  { %v2908_v16 = vadd.f32 %v2907_v63, %v5790_v28  ;;  %v2961_v57 = vadd.f32 %v2960_v3, %v5793_v56  ;;  %v2909_v51 = vpop.f32.mrb[53].mxu1  ;;  %v2962_v17 = vpop.f32.mrb[53].mxu0  ;;  %v3385_v63 = vld [vmem:[%s6119_s11 + $0x680] sm:$0xff]  ;;  %v3386_v3 = vld [vmem:[%s6119_s11 + $0x688] sm:$0xff] }
0x12b2   :  { %v2910_v18 = vadd.f32 %v2909_v51, %v5798_v7  ;;  %v2963_v19 = vadd.f32 %v2962_v17, %v5801_v10  ;;  %v2911_v55 = vpop.f32.mrb[54].mxu1  ;;  %v2964_v53 = vpop.f32.mrb[54].mxu0  ;;  %v3441_v5 = vpack.c.bf16 %v3386_v3, %v3385_v63  ;;  %v3404_v63 = vld [vmem:[%s6119_s11 + $0x718] sm:$0xff] }
0x12b3   :  { %v2912_v22 = vadd.f32 %v2911_v55, %v5790_v28  ;;  %v2965_v23 = vadd.f32 %v2964_v53, %v5793_v56  ;;  %v2913_v26 = vpop.f32.mrb[55].mxu1  ;;  %v2966_v2 = vpop.f32.mrb[55].mxu0  ;;  %v2979_v36 = vmax.f32 %v2908_v16, 0.0  ;;  %v2981_v37 = vmax.f32 %v2961_v57, 0.0  ;;  %v3417_v55 = vld [vmem:[%s6119_s11 + $0x780] sm:$0xff]  ;;  %v3418_v53 = vld [vmem:[%s6119_s11 + $0x788] sm:$0xff] }
0x12b4   :  { %v2914_v33 = vadd.f32 %v2913_v26, %v5798_v7  ;;  %v2967_v54 = vadd.f32 %v2966_v2, %v5801_v10  ;;  %v2980_v50 = vmax.f32 %v2910_v18, 0.0  ;;  %v2982_v43 = vmax.f32 %v2963_v19, 0.0 }
0x12b5   :  { %v2983_v38 = vmax.f32 %v2912_v22, 0.0  ;;  %v2985_v39 = vmax.f32 %v2965_v23, 0.0  ;;  %v3224_v18 = vpack.c.bf16 %v3216_v41, %v3212_v40  ;;  %v3221_v19 = vpack.c.bf16 %v3213_v25, %v3209_v45  ;;  %v3401_v25 = vld [vmem:[%s6119_s11 + $0x700] sm:$0xff] }
0x12b6   :  { %v2984_v30 = vmax.f32 %v2914_v33, 0.0  ;;  %v2986_v44 = vmax.f32 %v2967_v54, 0.0 }
0x12b7   :  { %v3091_v46 = vpack.c.bf16 %v2983_v38, %v2979_v36  ;;  %v3093_v48 = vpack.c.bf16 %v2985_v39, %v2981_v37  ;;  %v3457_v36 = vpack.c.bf16 %v3418_v53, %v3417_v55 }
0x12b8   :  { %v3092_v13 = vpack.c.bf16 %v2984_v30, %v2980_v50  ;;  %v3094_v4 = vpack.c.bf16 %v2986_v44, %v2982_v43  ;;  %v2917_v12 = vpop.f32.mrb[56].mxu1  ;;  %v2970_v9 = vpop.f32.mrb[56].mxu0 }
0x12b9   :  { %v2918_v16 = vadd.f32 %v2917_v12, %v5790_v28  ;;  %v2971_v57 = vadd.f32 %v2970_v9, %v5793_v56  ;;  %v2919_v51 = vpop.f32.mrb[57].mxu1  ;;  %v2972_v17 = vpop.f32.mrb[57].mxu0  ;;  %v3458_v9 = vpack.c.bf16 %v3420_v11, %v3419_v1  ;;  %v3428_v1 = vld [vmem:[%s6119_s11 + $0x7d8] sm:$0xff]  ;;  %v3379_v11 = vld [vmem:[%s6119_s11 + $0x650] sm:$0xff] }
0x12ba   :  { %v2920_v22 = vadd.f32 %v2919_v51, %v5798_v7  ;;  %v2973_v23 = vadd.f32 %v2972_v17, %v5801_v10  ;;  %v2921_v26 = vpop.f32.mrb[58].mxu1  ;;  %v2974_v2 = vpop.f32.mrb[58].mxu0  ;;  %3131 = vmatprep.mubr.bf16.mxu1 %v3092_v13  ;;  %3180 = vmatprep.mubr.bf16.mxu0 %v3094_v4  ;;  %v3422_v17 = vld [vmem:[%s6119_s11 + $0x7a8] sm:$0xff] }
0x12bb   :  { %v2922_v31 = vadd.f32 %v2921_v26, %v5790_v28  ;;  %v2975_v32 = vadd.f32 %v2974_v2, %v5793_v56  ;;  %v2923_v33 = vpop.f32.mrb[59].mxu1  ;;  %v2976_v54 = vpop.f32.mrb[59].mxu0  ;;  %3132 = vmatmul.mubr.bf16.vlgmr.msra.gmra.mrb[60].mxu1 %v3091_v46  ;;  %3181 = vmatmul.mubr.bf16.vlgmr.msra.gmra.mrb[60].mxu0 %v3093_v48  ;;  %v2987_v37 = vmax.f32 %v2918_v16, 0.0  ;;  %v2989_v38 = vmax.f32 %v2971_v57, 0.0  ;;  %v3402_v46 = vld [vmem:[%s6119_s11 + $0x708] sm:$0xff]  ;;  %v3387_v48 = vld [vmem:[%s6119_s11 + $0x690] sm:$0xff] }
0x12bc   :  { %v2924_v34 = vadd.f32 %v2923_v33, %v5798_v7  ;;  %v2977_v35 = vadd.f32 %v2976_v54, %v5801_v10  ;;  %3248 = vmatpush1.bf16.msra.mxu1 %v3217_v0  ;;  %3301 = vmatpush1.bf16.msra.mxu0 %v3219_v52  ;;  %v2988_v28 = vmax.f32 %v2920_v22, 0.0  ;;  %v2990_v56 = vmax.f32 %v2973_v23, 0.0  ;;  %v3369_v7 = vld [vmem:[%s6119_s11 + $0x600] sm:$0xff]  ;;  %v3370_v10 = vld [vmem:[%s6119_s11 + $0x608] sm:$0xff]  ;;  %v3388_v0 = vld [vmem:[%s6119_s11 + $0x698] sm:$0xff] }
0x12bd   :  { %v2991_v39 = vmax.f32 %v2922_v31, 0.0  ;;  %v2993_v40 = vmax.f32 %v2975_v32, 0.0  ;;  %3249 = vmatprep.subr.bf16.mxu1 %v3222_v6  ;;  %3302 = vmatprep.subr.bf16.mxu0 %v3224_v18  ;;  %v3433_v13 = vpack.c.bf16 %v3370_v10, %v3369_v7  ;;  %v3449_v4 = vpack.c.bf16 %v3402_v46, %v3401_v25  ;;  %v3371_v52 = vld [vmem:[%s6119_s11 + $0x610] sm:$0xff]  ;;  %v3390_v16 = vld [vmem:[%s6119_s11 + $0x6a8] sm:$0xff]  ;;  %v3421_v57 = vld [vmem:[%s6119_s11 + $0x7a0] sm:$0xff] }
0x12be   :  { %v2992_v41 = vmax.f32 %v2924_v34, 0.0  ;;  %v2994_v50 = vmax.f32 %v2977_v35, 0.0  ;;  %v3442_v12 = vpack.c.bf16 %v3388_v0, %v3387_v48  ;;  %v3373_v18 = vld [vmem:[%s6119_s11 + $0x620] sm:$0xff]  ;;  %v3459_v55 = vpack.c.bf16 %v3422_v17, %v3421_v57  ;;  %v3406_v23 = vld [vmem:[%s6119_s11 + $0x728] sm:$0xff]  ;;  %v3391_v2 = vld [vmem:[%s6119_s11 + $0x6b0] sm:$0xff] }
0x12bf   :  { %v3095_v43 = vpack.c.bf16 %v2991_v39, %v2987_v37  ;;  %v3097_v30 = vpack.c.bf16 %v2993_v40, %v2989_v38  ;;  %v3405_v22 = vld [vmem:[%s6119_s11 + $0x720] sm:$0xff]  ;;  %v3423_v31 = vld [vmem:[%s6119_s11 + $0x7b0] sm:$0xff]  ;;  %v3424_v33 = vld [vmem:[%s6119_s11 + $0x7b8] sm:$0xff] }
0x12c0   :  { %v3096_v44 = vpack.c.bf16 %v2992_v41, %v2988_v28  ;;  %v3098_v45 = vpack.c.bf16 %v2994_v50, %v2990_v56  ;;  %3250 = vmatpush1.bf16.msra.mxu1 %v3221_v19  ;;  %3303 = vmatpush1.bf16.msra.mxu0 %v3223_v27  ;;  %v3374_v19 = vld [vmem:[%s6119_s11 + $0x628] sm:$0xff]  ;;  %v3451_v26 = vpack.c.bf16 %v3406_v23, %v3405_v22  ;;  %v3392_v27 = vld [vmem:[%s6119_s11 + $0x6b8] sm:$0xff]  ;;  %v3375_v54 = vld [vmem:[%s6119_s11 + $0x630] sm:$0xff] }
0x12c1   :  { %3937 = vmatprep.subr.bf16.mxu1 %v3441_v5  ;;  %3965 = vmatprep.subr.bf16.mxu0 %v3457_v36  ;;  %v3435_v53 = vpack.c.bf16 %v3374_v19, %v3373_v18  ;;  %v3444_v32 = vpack.c.bf16 %v3392_v27, %v3391_v2  ;;  %v3376_v5 = vld [vmem:[%s6119_s11 + $0x638] sm:$0xff]  ;;  %v3460_v34 = vpack.c.bf16 %v3424_v33, %v3423_v31  ;;  %v3407_v36 = vld [vmem:[%s6119_s11 + $0x730] sm:$0xff]  ;;  %v3393_v39 = vld [vmem:[%s6119_s11 + $0x6c0] sm:$0xff] }
0x12c2   :  { %3139 = vmatprep.mubr.bf16.mxu1 %v3096_v44  ;;  %3188 = vmatprep.mubr.bf16.mxu0 %v3098_v45  ;;  %v3436_v35 = vpack.c.bf16 %v3376_v5, %v3375_v54  ;;  %v3408_v37 = vld [vmem:[%s6119_s11 + $0x738] sm:$0xff]  ;;  %v3394_v40 = vld [vmem:[%s6119_s11 + $0x6c8] sm:$0xff]  ;;  %v3425_v28 = vld [vmem:[%s6119_s11 + $0x7c0] sm:$0xff] }
0x12c3   :  { %3140 = vmatmul.mubr.bf16.gmra.mrb[64].mxu1 %v3095_v43  ;;  %3189 = vmatmul.mubr.bf16.gmra.mrb[64].mxu0 %v3097_v30  ;;  %v3452_v38 = vpack.c.bf16 %v3408_v37, %v3407_v36  ;;  %v3445_v56 = vpack.c.bf16 %v3394_v40, %v3393_v39  ;;  %v3426_v41 = vld [vmem:[%s6119_s11 + $0x7c8] sm:$0xff]  ;;  %v3377_v50 = vld [vmem:[%s6119_s11 + $0x640] sm:$0xff]  ;;  %v3395_v25 = vld [vmem:[%s6119_s11 + $0x6d0] sm:$0xff] }
0x12c4   :  { %3279 = vmatprep.mubr.bf16.mxu1 %v4448_v49  ;;  %3332 = vmatprep.mubr.bf16.mxu0 %v4448_v49  ;;  %v3378_v43 = vld [vmem:[%s6119_s11 + $0x648] sm:$0xff]  ;;  %v3461_v30 = vpack.c.bf16 %v3426_v41, %v3425_v28  ;;  %v3409_v45 = vld [vmem:[%s6119_s11 + $0x740] sm:$0xff]  ;;  %v3396_v46 = vld [vmem:[%s6119_s11 + $0x6d8] sm:$0xff] }
0x12c5   :  { %v3437_v44 = vpack.c.bf16 %v3378_v43, %v3377_v50  ;;  %v3410_v7 = vld [vmem:[%s6119_s11 + $0x748] sm:$0xff]  ;;  %v3427_v48 = vld [vmem:[%s6119_s11 + $0x7d0] sm:$0xff]  ;;  %v3446_v0 = vpack.c.bf16 %v3396_v46, %v3395_v25  ;;  %v3413_v18 = vld [vmem:[%s6119_s11 + $0x760] sm:$0xff] }
0x12c6   :  { %v3453_v10 = vpack.c.bf16 %v3410_v7, %v3409_v45  ;;  %v3382_v57 = vld [vmem:[%s6119_s11 + $0x668] sm:$0xff]  ;;  %v3400_v22 = vld [vmem:[%s6119_s11 + $0x6f8] sm:$0xff]  ;;  %v3431_v23 = vld [vmem:[%s6119_s11 + $0x7f0] sm:$0xff] }
0x12c7   :  { %v3414_v19 = vld [vmem:[%s6119_s11 + $0x768] sm:$0xff]  ;;  %v3432_v2 = vld [vmem:[%s6119_s11 + $0x7f8] sm:$0xff]  ;;  %v3383_v27 = vld [vmem:[%s6119_s11 + $0x670] sm:$0xff] }
0x12c8   :  { %v3384_v31 = vld [vmem:[%s6119_s11 + $0x678] sm:$0xff]  ;;  %v3415_v54 = vld [vmem:[%s6119_s11 + $0x770] sm:$0xff] }
0x12c9   :  { %v3440_v33 = vpack.c.bf16 %v3384_v31, %v3383_v27  ;;  %v3416_v5 = vld [vmem:[%s6119_s11 + $0x778] sm:$0xff] }
0x12cb   :  { %3684 = vmatmul.mubr.msk.bf16.vlgmr.msra.gmra.mrb[68].mxu1 %vm52_vm0, %v4954_v20  ;;  %3686 = vmatmul.mubr.msk.bf16.vlgmr.msra.gmra.mrb[68].mxu0 %vm52_vm0, %v4954_v20  ;;  %v3372_v20 = vld [vmem:[%s6119_s11 + $0x618] sm:$0xff] }
0x12cc   :  { %3289 = vmatprep.mubr.bf16.mxu1 %v4448_v49  ;;  %3342 = vmatprep.mubr.bf16.mxu0 %v4448_v49  ;;  %v3403_v49 = vld [vmem:[%s6119_s11 + $0x710] sm:$0xff]  ;;  %v3434_v6 = vpack.c.bf16 %v3372_v20, %v3371_v52  ;;  %v3412_v52 = vld [vmem:[%s6119_s11 + $0x758] sm:$0xff] }
0x12cd   :  { %3938 = vmatpush3.bf16.msra.mxu1 %v3433_v13  ;;  %3966 = vmatpush3.bf16.msra.mxu0 %v3449_v4  ;;  %v3450_v3 = vpack.c.bf16 %v3404_v63, %v3403_v49  ;;  %v3380_v13 = vld [vmem:[%s6119_s11 + $0x658] sm:$0xff]  ;;  %v3462_v4 = vpack.c.bf16 %v3428_v1, %v3427_v48  ;;  %v3397_v49 = vld [vmem:[%s6119_s11 + $0x6e0] sm:$0xff] }
0x12ce   :  { %3939 = vmatprep.subr.bf16.mxu1 %v3442_v12  ;;  %3967 = vmatprep.subr.bf16.mxu0 %v3458_v9  ;;  %v3438_v12 = vpack.c.bf16 %v3380_v13, %v3379_v11  ;;  %v3411_v9 = vld [vmem:[%s6119_s11 + $0x750] sm:$0xff]  ;;  %v3429_v63 = vld [vmem:[%s6119_s11 + $0x7e0] sm:$0xff] }
0x12cf   :  { %v3454_v20 = vpack.c.bf16 %v3412_v52, %v3411_v9 }
0x12d1   :  { %3940 = vmatpush3.bf16.msra.mxu1 %v3434_v6  ;;  %3968 = vmatpush3.bf16.msra.mxu0 %v3450_v3  ;;  %v3398_v6 = vld [vmem:[%s6119_s11 + $0x6e8] sm:$0xff] }
0x12d2   :  { %3969 = vmatprep.subr.bf16.mxu0 %v3459_v55  ;;  %v3447_v3 = vpack.c.bf16 %v3398_v6, %v3397_v49  ;;  %v3455_v55 = vpack.c.bf16 %v3414_v19, %v3413_v18 }
0x12d3   :  { %3685 = vmatmul.mubr.msk.bf16.gmra.mrb[72].mxu1 %vm52_vm0, %v5028_v14  ;;  %3687 = vmatmul.mubr.msk.bf16.gmra.mrb[72].mxu0 %vm52_vm0, %v5028_v14  ;;  %v3389_v14 = vld [vmem:[%s6119_s11 + $0x6a0] sm:$0xff] }
0x12d4   :  { %v3443_v51 = vpack.c.bf16 %v3390_v16, %v3389_v14  ;;  %v3430_v14 = vld [vmem:[%s6119_s11 + $0x7e8] sm:$0xff]  ;;  %v3381_v16 = vld [vmem:[%s6119_s11 + $0x660] sm:$0xff] }
0x12d5   :  { %3970 = vmatpush3.bf16.msra.mxu0 %v3451_v26  ;;  %v3439_v17 = vpack.c.bf16 %v3382_v57, %v3381_v16 }
0x12d6   :  { %3941 = vmatprep.subr.bf16.mxu1 %v3443_v51  ;;  %3971 = vmatprep.subr.bf16.mxu0 %v3460_v34  ;;  %v3463_v51 = vpack.c.bf16 %v3430_v14, %v3429_v63  ;;  %v3456_v34 = vpack.c.bf16 %v3416_v5, %v3415_v54 }
0x12d7   :  { %3942 = vmatpush3.bf16.msra.mxu1 %v3435_v53  ;;  %v3399_v53 = vld [vmem:[%s6119_s11 + $0x6f0] sm:$0xff] }
0x12d8   :  { %3943 = vmatprep.subr.bf16.mxu1 %v3444_v32  ;;  %v3448_v26 = vpack.c.bf16 %v3400_v22, %v3399_v53  ;;  %v3464_v32 = vpack.c.bf16 %v3432_v2, %v3431_v23 }
0x12d9   :  { %3972 = vmatpush3.bf16.msra.mxu0 %v3452_v38 }
0x12da   :  { %3973 = vmatprep.subr.bf16.mxu0 %v3461_v30 }
0x12db   :  { %3944 = vmatpush3.bf16.msra.mxu1 %v3436_v35 }
0x12dc   :  { %3945 = vmatprep.subr.bf16.mxu1 %v3445_v56 }
0x12dd   :  { %3974 = vmatpush3.bf16.msra.mxu0 %v3453_v10 }
0x12de   :  { %3975 = vmatprep.subr.bf16.mxu0 %v3462_v4 }
0x12df   :  { %3946 = vmatpush3.bf16.msra.mxu1 %v3437_v44 }
0x12e0   :  { %3947 = vmatprep.subr.bf16.mxu1 %v3446_v0 }
0x12e1   :  { %3976 = vmatpush3.bf16.msra.mxu0 %v3454_v20 }
0x12e2   :  { %3977 = vmatprep.subr.bf16.mxu0 %v3463_v51 }
0x12e3   :  { %3948 = vmatpush3.bf16.msra.mxu1 %v3438_v12  ;;  %v3225_v12 = vld [vmem:[%s6118_s10 + $0xc] sm:$0xf] }
0x12e4   :  { %3949 = vmatprep.subr.bf16.mxu1 %v3447_v3  ;;  %v3238_v6 = vrot.slane %v3225_v12, %v5132_v47  ;;  %v3234_v14 = vrot.slane %v3225_v12, %v5137_v60  ;;  %v3242_v16 = vrot.slane %v3225_v12, %v5139_v62 }
0x12e5   :  { %3978 = vmatpush3.bf16.msra.mxu0 %v3455_v55 }
0x12e6   :  { %3979 = vmatprep.subr.bf16.mxu0 %v3464_v32 }
0x12e7   :  { %3950 = vmatpush3.bf16.msra.mxu1 %v3439_v17 }
0x12e8   :  { %3951 = vmatprep.subr.bf16.mxu1 %v3448_v26 }
0x12e9   :  { %3980 = vmatpush3.bf16.msra.mxu0 %v3456_v34 }
0x12eb   :  { %3952 = vmatpush3.bf16.msra.mxu1 %v3440_v33 }
0x138e   :  { %v3897_v35 = vpop.f32.mrb[60].mxu1  ;;  %v3925_v36 = vpop.f32.mrb[60].mxu0 }
0x138f   :  { %v3898_v37 = vpop.f32.mrb[61].mxu1  ;;  %v3926_v38 = vpop.f32.mrb[61].mxu0 }
0x1390   :  { %v3899_v39 = vadd.f32 %v3898_v37, %v3897_v35  ;;  %v3927_v40 = vadd.f32 %v3926_v38, %v3925_v36  ;;  %v3900_v28 = vpop.f32.mrb[62].mxu1  ;;  %v3928_v56 = vpop.f32.mrb[62].mxu0 }
0x1391   :  { %v3901_v41 = vpop.f32.mrb[63].mxu1  ;;  %v3929_v50 = vpop.f32.mrb[63].mxu0 }
0x1392   :  { %v3183_v43 = vadd.f32 %v3927_v40, %v3899_v39  ;;  %v3902_v30 = vadd.f32 %v3901_v41, %v3900_v28  ;;  %v3930_v44 = vadd.f32 %v3929_v50, %v3928_v56 }
0x1394   :  { %v6062_v45 = vadd.f32 %v3183_v43, %v5782_v42  ;;  %v3186_v7 = vadd.f32 %v3930_v44, %v3902_v30 }
0x1396   :  { %v6065_v10 = vadd.f32 %v3186_v7, %v5784_v29  ;;  %v3903_v25 = vpop.f32.mrb[64].mxu1  ;;  %v3931_v46 = vpop.f32.mrb[64].mxu0  ;;  %v3230_v29 = vrot.slane %v3225_v12, %v5130_v8 }
0x1397   :  { %v3904_v48 = vpop.f32.mrb[65].mxu1  ;;  %v3932_v0 = vpop.f32.mrb[65].mxu0 }
0x1398   :  { %v3905_v1 = vadd.f32 %v3904_v48, %v3903_v25  ;;  %v3933_v11 = vadd.f32 %v3932_v0, %v3931_v46  ;;  %v3906_v13 = vpop.f32.mrb[66].mxu1  ;;  %v3934_v4 = vpop.f32.mrb[66].mxu0 }
0x1399   :  { %v3907_v9 = vpop.f32.mrb[67].mxu1  ;;  %v3935_v52 = vpop.f32.mrb[67].mxu0 }
0x139a   :  { %v3191_v42 = vadd.f32 %v3933_v11, %v3905_v1  ;;  %v3908_v20 = vadd.f32 %v3907_v9, %v3906_v13  ;;  %v3936_v49 = vadd.f32 %v3935_v52, %v3934_v4 }
0x139c   :  { %v6073_v63 = vadd.f32 %v3191_v42, %v5795_v58  ;;  %v3194_v3 = vadd.f32 %v3936_v49, %v3908_v20 }
0x139e   :  { %v6078_v57 = vadd.f32 %v3194_v3, %v5803_v15  ;;  %v3281_v51 = vpop.f32.mrb[68].mxu1  ;;  %v3334_v17 = vpop.f32.mrb[68].mxu0 }
0x139f   :  { %v3282_v18 = vadd.f32 %v3281_v51, %v3230_v29  ;;  %v3335_v19 = vadd.f32 %v3334_v17, %v3238_v6  ;;  %v3283_v55 = vpop.f32.mrb[69].mxu1  ;;  %v3336_v53 = vpop.f32.mrb[69].mxu0 }
0x13a0   :  { %v3284_v8 = vadd.f32 %v3283_v55, %v3234_v14  ;;  %v3337_v22 = vadd.f32 %v3336_v53, %v3242_v16  ;;  %v3285_v47 = vpop.f32.mrb[70].mxu1  ;;  %v3338_v23 = vpop.f32.mrb[70].mxu0 }
0x13a1   :  { %v3286_v58 = vadd.f32 %v3285_v47, %v3230_v29  ;;  %v3339_v26 = vadd.f32 %v3338_v23, %v3238_v6  ;;  %v3287_v2 = vpop.f32.mrb[71].mxu1  ;;  %v3340_v27 = vpop.f32.mrb[71].mxu0  ;;  %v3353_v62 = vmax.f32 %v3282_v18, 0.0  ;;  %v3355_v32 = vmax.f32 %v3335_v19, 0.0 }
0x13a2   :  { %v3288_v60 = vadd.f32 %v3287_v2, %v3234_v14  ;;  %v3341_v31 = vadd.f32 %v3340_v27, %v3242_v16  ;;  %v3354_v54 = vmax.f32 %v3284_v8, 0.0  ;;  %v3356_v5 = vmax.f32 %v3337_v22, 0.0  ;;  %v3688_v27 = vld [vmem:[%s6120_s12] ss:$0 sm:$0xff]  ;;  %s4449_s12 = smov [#allocation2]  }
0x13a3   :  { %v3357_v15 = vmax.f32 %v3286_v58, 0.0  ;;  %v3359_v33 = vmax.f32 %v3339_v26, 0.0  ;;  %s3599_s17 = sshll.u32 %s4449_s12, 4  ;;  %s3600_s17 = int_to_ptr.vmem [resolvable:$true] %s3599_s17 }
0x13a4   :  { %v3358_v34 = vmax.f32 %v3288_v60, 0.0  ;;  %v3360_v35 = vmax.f32 %v3341_v31, 0.0  ;;  %s4410_s18 = scalar_lea.vmem %s3600_s17, 512  ;;  %p4415_p1 = scmp.lt.s32.totalorder %s3600_s17, %s3600_s17 }
0x13a5   :  { %v3465_v36 = vpack.c.bf16 %v3357_v15, %v3353_v62  ;;  %v3467_v37 = vpack.c.bf16 %v3359_v33, %v3355_v32  ;;  %p4411_p0 = scmp.ne.s32.totalorder %s3600_s17, %s4410_s18  ;;  %p4416_p2 = scmp.lt.s32.totalorder %s4410_s18, %s4410_s18 }
0x13a6   :  { %v3466_v38 = vpack.c.bf16 %v3358_v34, %v3354_v54  ;;  %v3468_v39 = vpack.c.bf16 %v3360_v35, %v3356_v5  ;;  %v3291_v40 = vpop.f32.mrb[72].mxu1  ;;  %v3344_v28 = vpop.f32.mrb[72].mxu0 }
0x13a7   :  { %v3292_v56 = vadd.f32 %v3291_v40, %v3230_v29  ;;  %v3345_v41 = vadd.f32 %v3344_v28, %v3238_v6  ;;  %v3293_v50 = vpop.f32.mrb[73].mxu1  ;;  %v3346_v43 = vpop.f32.mrb[73].mxu0  ;;  %p4417_p3 = por %p4416_p2, %p4415_p1 }
0x13a8   :  { %v3294_v30 = vadd.f32 %v3293_v50, %v3234_v14  ;;  %v3347_v44 = vadd.f32 %v3346_v43, %v3242_v16  ;;  %v3295_v7 = vpop.f32.mrb[74].mxu1  ;;  %v3348_v25 = vpop.f32.mrb[74].mxu0  ;;  %3505 = vmatprep.mubr.bf16.mxu1 %v3466_v38  ;;  %3554 = vmatprep.mubr.bf16.mxu0 %v3468_v39 }
0x13a9   :  { %v3296_v46 = vadd.f32 %v3295_v7, %v3230_v29  ;;  %v3349_v48 = vadd.f32 %v3348_v25, %v3238_v6  ;;  %v3297_v0 = vpop.f32.mrb[75].mxu1  ;;  %v3350_v1 = vpop.f32.mrb[75].mxu0  ;;  %3506 = vmatmul.mubr.bf16.vlgmr.msra.gmra.mrb[76].mxu1 %v3465_v36  ;;  %3555 = vmatmul.mubr.bf16.vlgmr.msra.gmra.mrb[76].mxu0 %v3467_v37  ;;  %v3361_v4 = vmax.f32 %v3292_v56, 0.0  ;;  %v3363_v12 = vmax.f32 %v3345_v41, 0.0  ;;  %p4418_p4 = pnand %p4417_p3, %p4411_p0 }
0x13aa   :  { %v3298_v11 = vadd.f32 %v3297_v0, %v3234_v14  ;;  %v3351_v13 = vadd.f32 %v3350_v1, %v3242_v16  ;;  %v3362_v42 = vmax.f32 %v3294_v30, 0.0  ;;  %v3364_v20 = vmax.f32 %v3347_v44, 0.0 }
0x13ab   :  { %v3365_v9 = vmax.f32 %v3296_v46, 0.0  ;;  %v3367_v52 = vmax.f32 %v3349_v48, 0.0 }
0x13ac   :  { %v3366_v49 = vmax.f32 %v3298_v11, 0.0  ;;  %v3368_v3 = vmax.f32 %v3351_v13, 0.0 }
0x13ad   :  { %v3469_v51 = vpack.c.bf16 %v3365_v9, %v3361_v4  ;;  %v3471_v17 = vpack.c.bf16 %v3367_v52, %v3363_v12 }
0x13ae   :  { %v3470_v18 = vpack.c.bf16 %v3366_v49, %v3362_v42  ;;  %v3472_v19 = vpack.c.bf16 %v3368_v3, %v3364_v20 }
0x13b0   :  { %3513 = vmatprep.mubr.bf16.mxu1 %v3470_v18  ;;  %3562 = vmatprep.mubr.bf16.mxu0 %v3472_v19 }
0x13b1   :  { %3514 = vmatmul.mubr.bf16.gmra.mrb[80].mxu1 %v3469_v51  ;;  %3563 = vmatmul.mubr.bf16.gmra.mrb[80].mxu0 %v3471_v17 }
0x147c   :  { %v3953_v29 = vpop.f32.mrb[76].mxu1  ;;  %v3981_v6 = vpop.f32.mrb[76].mxu0 }
0x147d   :  { %v3954_v14 = vpop.f32.mrb[77].mxu1  ;;  %v3982_v16 = vpop.f32.mrb[77].mxu0 }
0x147e   :  { %v3955_v55 = vadd.f32 %v3954_v14, %v3953_v29  ;;  %v3983_v53 = vadd.f32 %v3982_v16, %v3981_v6  ;;  %v3956_v8 = vpop.f32.mrb[78].mxu1  ;;  %v3984_v22 = vpop.f32.mrb[78].mxu0 }
0x147f   :  { %v3957_v47 = vpop.f32.mrb[79].mxu1  ;;  %v3985_v23 = vpop.f32.mrb[79].mxu0 }
0x1480   :  { %v3557_v58 = vadd.f32 %v3983_v53, %v3955_v55  ;;  %v3958_v26 = vadd.f32 %v3957_v47, %v3956_v8  ;;  %v3986_v2 = vadd.f32 %v3985_v23, %v3984_v22 }
0x1482   :  { %v3571_v60 = vadd.f32 %v3557_v58, %v6062_v45  ;;  %v3560_v31 = vadd.f32 %v3986_v2, %v3958_v26 }
0x1484   :  { %v3582_v62 = vadd.f32 %v3688_v27, %v3571_v60  ;;  %v3572_v32 = vadd.f32 %v3560_v31, %v6065_v10  ;;  %v3959_v15 = vpop.f32.mrb[80].mxu1  ;;  %v3987_v33 = vpop.f32.mrb[80].mxu0 }
0x1485   :  { %v3960_v54 = vpop.f32.mrb[81].mxu1  ;;  %v3988_v5 = vpop.f32.mrb[81].mxu0 }
0x1486   :  { %v3586_v34 = vadd.f32 %v3582_v62, %v4829_v59  ;;  %v3583_v35 = vadd.f32 %v3688_v27, %v3572_v32  ;;  %v3961_v36 = vadd.f32 %v3960_v54, %v3959_v15  ;;  %v3989_v37 = vadd.f32 %v3988_v5, %v3987_v33  ;;  %v3962_v38 = vpop.f32.mrb[82].mxu1  ;;  %v3990_v39 = vpop.f32.mrb[82].mxu0 }
0x1487   :  { %v3963_v40 = vpop.f32.mrb[83].mxu1  ;;  %v3991_v28 = vpop.f32.mrb[83].mxu0 }
0x1488   :  { %3590 = vst.msk [vmem:[#allocation2] sm:$0xff] %vm52_vm0, %v3586_v34  ;;  %v3587_v45 = vadd.f32 %v3583_v35, %v4834_v61  ;;  %v3565_v56 = vadd.f32 %v3989_v37, %v3961_v36  ;;  %v3964_v41 = vadd.f32 %v3963_v40, %v3962_v38  ;;  %v3992_v10 = vadd.f32 %v3991_v28, %v3990_v39 }
0x148a   :  { %3591 = vst.msk [vmem:[#allocation2 + $0x8] sm:$0xff] %vm52_vm0, %v3587_v45  ;;  %v3573_v50 = vadd.f32 %v3565_v56, %v6073_v63  ;;  %v3568_v43 = vadd.f32 %v3992_v10, %v3964_v41 }
0x148c   :  { %v3584_v59 = vadd.f32 %v3688_v27, %v3573_v50  ;;  %v3574_v30 = vadd.f32 %v3568_v43, %v6078_v57 }
0x148e   :  { %v3588_v44 = vadd.f32 %v3584_v59, %v4859_v21  ;;  %v3585_v7 = vadd.f32 %v3688_v27, %v3574_v30 }
0x1490   :  { %3592 = vst.msk [vmem:[#allocation2 + $0x10] sm:$0xff] %vm52_vm0, %v3588_v44  ;;  %v3589_v61 = vadd.f32 %v3585_v7, %v4867_v24 }
0x1492   :  { %3593 = vst.msk [vmem:[#allocation2 + $0x18] sm:$0xff] %vm52_vm0, %v3589_v61 }
0x1493   :  { %4421 = shalt.err (!%p4418_p4)
}
0x1494   :  { %s4422_s9 = scalar_lea.hbm %s6121_s13, 512 }
0x1495   :  { %p4423_p5 = scmp.ne.s32.totalorder %s6121_s13, %s4422_s9  ;;  %p4426_p6 = scmp.lt.u32.totalorder %s4422_s9, %s6121_s13 }
0x1497   :  { %p4428_p7 = pnand %p4426_p6, %p4423_p5 }
0x1499   :  { %4431 = shalt.err (!%p4428_p7)
}
0x149a   :  { %s4450_s24 = smov 128  }
0x149b   :  { %3605 = dma.vmem_to_hbm [thread:$0]  %s3600_s17, 512, %s6121_s13, [#allocation3], %s4450_s24, %s4450_s24, %s4445_s20  }
0x149c   :  { %4432 = dma.done.wait [#allocation3], 512  }
0x149d   :  { %4433 = vsyncadd [#allocation3], 4294966784 }
0x149e   :  { %3609 = vsyncpa [#allocation3], 1 }

</bundles_post_ra>
